<compile_context>
chip_gen: v6e
topology: v6e:2x2x1
jax: 0.10.0
libtpu: 0.0.40
codegen_flags: <defaults>
</compile_context>

<pallas_src>
import functools
import math

import jax
import jax.numpy as jnp
from jax.experimental import pallas as pl
from jax.experimental.pallas import tpu as pltpu


# ----------------------------- fused Pallas kernel ------------------------------

def _full_spec(shape):
    nd = len(shape)
    return pl.BlockSpec(shape, lambda i: (0,) * nd)


def _bert_fused_kernel(seed_ref, ids_ref, mask_ref,
                       word_emb_ref, pos_emb_ref, type_emb_ref,
                       emb_ln_g_ref, emb_ln_b_ref,
                       wq_ref, wk_ref, wv_ref, bq_ref, bk_ref, bv_ref,
                       wo_ref, bo_ref, ln1_g_ref, ln1_b_ref,
                       w1_ref, b1_ref, w2_ref, b2_ref,
                       ln2_g_ref, ln2_b_ref,
                       pool_w_ref, pool_b_ref, fc_w_ref, fc_b_ref,
                       out_ref,
                       emb_scr, attn_scr,
                       *, B, S, H, Dh, L, rate, training):
    D = H * Dh
    scale = 1.0 / math.sqrt(Dh)

    def ln(x, g, b, eps=1e-12):
        mean = jnp.mean(x, axis=-1, keepdims=True)
        cen = x - mean
        var = jnp.mean(cen * cen, axis=-1, keepdims=True)
        return cen * jax.lax.rsqrt(var + eps) * g + b

    def gelu(x):
        # tanh-approx GELU (EUP tanh). TODO(synk): exact-erf GELU differs ~1e-3 from HF BERT.
        return 0.5 * x * (1.0 + jnp.tanh(0.7978845608028654 * (x + 0.044715 * x * x * x)))

    if training and rate > 0.0:
        pltpu.prng_seed(seed_ref[0])

    # --- in-kernel embedding: word gather (dynamic row loads) + pos + type + LayerNorm ---
    for t in range(B * S):
        emb_scr[t:t + 1, :] = word_emb_ref[pl.ds(ids_ref[t], 1), :]
    pos = pos_emb_ref[...]                                     # (S, D)
    pos_full = jnp.concatenate([pos] * B, axis=0)              # (B*S, D)
    emb = emb_scr[...] + pos_full + type_emb_ref[...]          # type-0 row broadcasts
    x = ln(emb, emb_ln_g_ref[...], emb_ln_b_ref[...])          # (B*S, D)

    # additive attention-mask bias per batch (computed once, hoisted out of layer loop)
    neg = (1.0 - mask_ref[...]) * (-1e9)                       # (B, S)

    # --- encoder layers (statically unrolled; all weights resident in VMEM) ---
    for l in range(L):
        # per-head Q/K/V projections: head selection is a weight leading-axis index,
        # so activations never get lane-offset sliced.
        q = [jnp.dot(x, wq_ref[l, h], preferred_element_type=jnp.float32) + bq_ref[l, h]
             for h in range(H)]
        k = [jnp.dot(x, wk_ref[l, h], preferred_element_type=jnp.float32) + bk_ref[l, h]
             for h in range(H)]
        v = [jnp.dot(x, wv_ref[l, h], preferred_element_type=jnp.float32) + bv_ref[l, h]
             for h in range(H)]

        # scores for all (b, h) packed into one (B*H*S, S) tile -> ONE softmax per layer
        s_list = []
        for b in range(B):
            rows = slice(b * S, (b + 1) * S)
            for h in range(H):
                s_bh = jnp.dot(q[h][rows, :], k[h][rows, :].T,
                               preferred_element_type=jnp.float32) * scale
                s_list.append(s_bh + neg[b:b + 1, :])
        s_all = jnp.concatenate(s_list, axis=0)                # (B*H*S, S)
        m = jnp.max(s_all, axis=-1, keepdims=True)
        p = jnp.exp(s_all - m)
        p = p * pl.reciprocal(jnp.sum(p, axis=-1, keepdims=True), approx=True)

        # per-head context placed into its 16-lane slice of attn_scr, then one Wo matmul
        for b in range(B):
            rows = slice(b * S, (b + 1) * S)
            for h in range(H):
                r0 = (b * H + h) * S
                ctx = jnp.dot(p[r0:r0 + S, :], v[h][rows, :],
                              preferred_element_type=jnp.float32)          # (S, Dh)
                attn_scr[rows, h * Dh:(h + 1) * Dh] = ctx
        attn = jnp.dot(attn_scr[...], wo_ref[l],
                       preferred_element_type=jnp.float32) + bo_ref[l]

        x = ln(attn + x, ln1_g_ref[l], ln1_b_ref[l])

        h1 = gelu(jnp.dot(x, w1_ref[l], preferred_element_type=jnp.float32) + b1_ref[l])
        h2 = jnp.dot(h1, w2_ref[l], preferred_element_type=jnp.float32) + b2_ref[l]
        x = ln(h2 + x, ln2_g_ref[l], ln2_b_ref[l])

    # --- batched pooler tanh(dense(CLS)) -> fc -> relu -> dropout, single output store ---
    cls = jnp.concatenate([x[b * S:b * S + 1, :] for b in range(B)], axis=0)   # (B, D)
    pooled = jnp.tanh(jnp.dot(cls, pool_w_ref[...],
                              preferred_element_type=jnp.float32) + pool_b_ref[...])
    y = jnp.maximum(jnp.dot(pooled, fc_w_ref[...],
                            preferred_element_type=jnp.float32) + fc_b_ref[...], 0.0)
    if training and rate > 0.0:
        bits = pltpu.bitcast(pltpu.prng_random_bits(y.shape), jnp.uint32)
        uniform = (bits >> jnp.uint32(8)).astype(jnp.float32) * (1.0 / float(1 << 24))
        y = jnp.where(uniform >= rate, y * (1.0 / (1.0 - rate)), 0.0)
    out_ref[...] = y.astype(out_ref.dtype)


# --------------------------- model config & params ------------------------------

CFG = dict(vocab=100, max_pos=32, type_vocab=2, hidden=32, heads=2,
           layers=2, intermediate=64, fc_hidden=16, dropout=0.3)


def init_params(key, cfg):
    # TODO(synk): pretrained BERT weight loading has no in-script equivalent; weights are synthetic.
    D, I, L, H = cfg["hidden"], cfg["intermediate"], cfg["layers"], cfg["heads"]
    Dh = D // H

    def nrm(k, shape, scale=0.02):
        return (scale * jax.random.normal(k, shape)).astype(jnp.float32)

    keys = iter(jax.random.split(key, 8 + 6 * L))
    p = {
        "word_emb": nrm(next(keys), (cfg["vocab"], D)),
        "pos_emb": nrm(next(keys), (cfg["max_pos"], D)),
        "type_emb": nrm(next(keys), (cfg["type_vocab"], D)),
        "emb_ln_g": jnp.ones((1, D), jnp.float32),
        "emb_ln_b": jnp.zeros((1, D), jnp.float32),
        "pool_w": nrm(next(keys), (D, D)),
        "pool_b": jnp.zeros((1, D), jnp.float32),
        "fc_w": nrm(next(keys), (D, cfg["fc_hidden"])),
        "fc_b": jnp.zeros((1, cfg["fc_hidden"]), jnp.float32),
    }

    def per_head(w):   # (D, D) -> (H, D, Dh); head h = w[:, h*Dh:(h+1)*Dh]
        return w.reshape(D, H, Dh).transpose(1, 0, 2)

    wq, wk, wv, wo, w1, w2 = [], [], [], [], [], []
    for _ in range(L):
        wq.append(per_head(nrm(next(keys), (D, D))))
        wk.append(per_head(nrm(next(keys), (D, D))))
        wv.append(per_head(nrm(next(keys), (D, D))))
        wo.append(nrm(next(keys), (D, D)))
        w1.append(nrm(next(keys), (D, I)))
        w2.append(nrm(next(keys), (I, D)))
    p["wq"] = jnp.stack(wq)                                   # (L, H, D, Dh)
    p["wk"] = jnp.stack(wk)
    p["wv"] = jnp.stack(wv)
    p["bq"] = jnp.zeros((L, H, 1, Dh), jnp.float32)
    p["bk"] = jnp.zeros((L, H, 1, Dh), jnp.float32)
    p["bv"] = jnp.zeros((L, H, 1, Dh), jnp.float32)
    p["wo"] = jnp.stack(wo)                                   # (L, D, D)
    p["bo"] = jnp.zeros((L, 1, D), jnp.float32)
    p["ln1_g"] = jnp.ones((L, 1, D), jnp.float32)
    p["ln1_b"] = jnp.zeros((L, 1, D), jnp.float32)
    p["w1"] = jnp.stack(w1)                                   # (L, D, I)
    p["b1"] = jnp.zeros((L, 1, I), jnp.float32)
    p["w2"] = jnp.stack(w2)                                   # (L, I, D)
    p["b2"] = jnp.zeros((L, 1, D), jnp.float32)
    p["ln2_g"] = jnp.ones((L, 1, D), jnp.float32)
    p["ln2_b"] = jnp.zeros((L, 1, D), jnp.float32)
    return p


# ------------------------------- forward wrapper --------------------------------

def bert_emotion_forward(params, input_ids, attention_mask, cfg=CFG,
                         training=False, seed=0):
    B, S = input_ids.shape
    D, H, L, F = cfg["hidden"], cfg["heads"], cfg["layers"], cfg["fc_hidden"]
    Dh = D // H

    # parameter prep only (no activation math in JAX glue)
    V = params["word_emb"].shape[0]
    Vp = ((V + 7) // 8) * 8                                    # sublane-group-pad the vocab table
    word_emb = jnp.pad(params["word_emb"], ((0, Vp - V), (0, 0)))
    pos_emb = params["pos_emb"][:S]                            # (S, D)
    type_emb = params["type_emb"][0:1]                         # TODO(synk): token_type_ids assumed all-zero
    ids = input_ids.reshape(B * S).astype(jnp.int32)
    mask = attention_mask.astype(jnp.float32)                  # (B, S)
    seed_arr = jnp.array([seed], dtype=jnp.int32)

    args = (seed_arr, ids, mask, word_emb, pos_emb, type_emb,
            params["emb_ln_g"], params["emb_ln_b"],
            params["wq"], params["wk"], params["wv"],
            params["bq"], params["bk"], params["bv"],
            params["wo"], params["bo"], params["ln1_g"], params["ln1_b"],
            params["w1"], params["b1"], params["w2"], params["b2"],
            params["ln2_g"], params["ln2_b"],
            params["pool_w"], params["pool_b"],
            params["fc_w"], params["fc_b"])

    kernel = functools.partial(_bert_fused_kernel, B=B, S=S, H=H, Dh=Dh, L=L,
                               rate=cfg["dropout"], training=training)

    in_specs = [pl.BlockSpec(memory_space=pltpu.MemorySpace.SMEM),   # seed
                pl.BlockSpec(memory_space=pltpu.MemorySpace.SMEM)] + \
               [_full_spec(a.shape) for a in args[2:]]

    return pl.pallas_call(
        kernel,
        out_shape=jax.ShapeDtypeStruct((B, F), jnp.float32),
        grid=(1,),
        in_specs=in_specs,
        out_specs=_full_spec((B, F)),
        scratch_shapes=[pltpu.VMEM((B * S, D), jnp.float32),   # emb_scr
                        pltpu.VMEM((B * S, D), jnp.float32)],  # attn_scr
        compiler_params=pltpu.CompilerParams(dimension_semantics=("arbitrary",)),
    )(*args)


# ------------------------------------ main ---------------------------------------

if __name__ == "__main__":
    key = jax.random.PRNGKey(0)
    k_param, k_ids = jax.random.split(key)

    B, S = 2, 8
    params = init_params(k_param, CFG)
    input_ids = jax.random.randint(k_ids, (B, S), 0, CFG["vocab"], dtype=jnp.int32)
    attention_mask = jnp.array([[1, 1, 1, 1, 1, 1, 1, 1],
                                [1, 1, 1, 1, 1, 1, 0, 0]], dtype=jnp.int32)

    out = bert_emotion_forward(params, input_ids, attention_mask, training=False)
    out = jax.block_until_ready(out)
    assert out.shape == (B, CFG["fc_hidden"]) and out.dtype == jnp.float32
    assert bool(jnp.all(jnp.isfinite(out)))
    print("KERNEL_OK")
</pallas_src>

<mosaic_0001>
module attributes {stable_mosaic.version = 11 : i64} {
  func.func @_bert_fused_kernel(%arg0: i32, %arg1: memref<1xi32, #tpu.memory_space<smem>>, %arg2: memref<16xi32, #tpu.memory_space<smem>>, %arg3: memref<2x8xf32, #tpu.memory_space<vmem>>, %arg4: memref<104x32xf32, #tpu.memory_space<vmem>>, %arg5: memref<8x32xf32, #tpu.memory_space<vmem>>, %arg6: memref<1x32xf32, #tpu.memory_space<vmem>>, %arg7: memref<1x32xf32, #tpu.memory_space<vmem>>, %arg8: memref<1x32xf32, #tpu.memory_space<vmem>>, %arg9: memref<2x2x32x16xf32, #tpu.memory_space<vmem>>, %arg10: memref<2x2x32x16xf32, #tpu.memory_space<vmem>>, %arg11: memref<2x2x32x16xf32, #tpu.memory_space<vmem>>, %arg12: memref<2x2x1x16xf32, #tpu.memory_space<vmem>>, %arg13: memref<2x2x1x16xf32, #tpu.memory_space<vmem>>, %arg14: memref<2x2x1x16xf32, #tpu.memory_space<vmem>>, %arg15: memref<2x32x32xf32, #tpu.memory_space<vmem>>, %arg16: memref<2x1x32xf32, #tpu.memory_space<vmem>>, %arg17: memref<2x1x32xf32, #tpu.memory_space<vmem>>, %arg18: memref<2x1x32xf32, #tpu.memory_space<vmem>>, %arg19: memref<2x32x64xf32, #tpu.memory_space<vmem>>, %arg20: memref<2x1x64xf32, #tpu.memory_space<vmem>>, %arg21: memref<2x64x32xf32, #tpu.memory_space<vmem>>, %arg22: memref<2x1x32xf32, #tpu.memory_space<vmem>>, %arg23: memref<2x1x32xf32, #tpu.memory_space<vmem>>, %arg24: memref<2x1x32xf32, #tpu.memory_space<vmem>>, %arg25: memref<32x32xf32, #tpu.memory_space<vmem>>, %arg26: memref<1x32xf32, #tpu.memory_space<vmem>>, %arg27: memref<32x16xf32, #tpu.memory_space<vmem>>, %arg28: memref<1x16xf32, #tpu.memory_space<vmem>>, %arg29: memref<2x16xf32, #tpu.memory_space<vmem>>, %arg30: memref<16x32xf32, #tpu.memory_space<vmem>>, %arg31: memref<16x32xf32, #tpu.memory_space<vmem>>) attributes {dimension_semantics = [#tpu.dimension_semantics<arbitrary>], iteration_bounds = array<i64: 1>, scalar_prefetch = 0 : i64, scratch_operands = 2 : i64, tpu.core_type = #tpu.core_type<tc>, window_params = [{transform_indices = @transform_0, window_bounds = array<i64: 1>}, {transform_indices = @transform_1, window_bounds = array<i64: 16>}, {pipeline_mode = #tpu.pipeline_mode<synchronous>, transform_indices = @transform_2, window_bounds = array<i64: 2, 8>}, {pipeline_mode = #tpu.pipeline_mode<synchronous>, transform_indices = @transform_3, window_bounds = array<i64: 104, 32>}, {pipeline_mode = #tpu.pipeline_mode<synchronous>, transform_indices = @transform_4, window_bounds = array<i64: 8, 32>}, {pipeline_mode = #tpu.pipeline_mode<synchronous>, transform_indices = @transform_5, window_bounds = array<i64: 1, 32>}, {pipeline_mode = #tpu.pipeline_mode<synchronous>, transform_indices = @transform_6, window_bounds = array<i64: 1, 32>}, {pipeline_mode = #tpu.pipeline_mode<synchronous>, transform_indices = @transform_7, window_bounds = array<i64: 1, 32>}, {pipeline_mode = #tpu.pipeline_mode<synchronous>, transform_indices = @transform_8, window_bounds = array<i64: 2, 2, 32, 16>}, {pipeline_mode = #tpu.pipeline_mode<synchronous>, transform_indices = @transform_9, window_bounds = array<i64: 2, 2, 32, 16>}, {pipeline_mode = #tpu.pipeline_mode<synchronous>, transform_indices = @transform_10, window_bounds = array<i64: 2, 2, 32, 16>}, {pipeline_mode = #tpu.pipeline_mode<synchronous>, transform_indices = @transform_11, window_bounds = array<i64: 2, 2, 1, 16>}, {pipeline_mode = #tpu.pipeline_mode<synchronous>, transform_indices = @transform_12, window_bounds = array<i64: 2, 2, 1, 16>}, {pipeline_mode = #tpu.pipeline_mode<synchronous>, transform_indices = @transform_13, window_bounds = array<i64: 2, 2, 1, 16>}, {pipeline_mode = #tpu.pipeline_mode<synchronous>, transform_indices = @transform_14, window_bounds = array<i64: 2, 32, 32>}, {pipeline_mode = #tpu.pipeline_mode<synchronous>, transform_indices = @transform_15, window_bounds = array<i64: 2, 1, 32>}, {pipeline_mode = #tpu.pipeline_mode<synchronous>, transform_indices = @transform_16, window_bounds = array<i64: 2, 1, 32>}, {pipeline_mode = #tpu.pipeline_mode<synchronous>, transform_indices = @transform_17, window_bounds = array<i64: 2, 1, 32>}, {pipeline_mode = #tpu.pipeline_mode<synchronous>, transform_indices = @transform_18, window_bounds = array<i64: 2, 32, 64>}, {pipeline_mode = #tpu.pipeline_mode<synchronous>, transform_indices = @transform_19, window_bounds = array<i64: 2, 1, 64>}, {pipeline_mode = #tpu.pipeline_mode<synchronous>, transform_indices = @transform_20, window_bounds = array<i64: 2, 64, 32>}, {pipeline_mode = #tpu.pipeline_mode<synchronous>, transform_indices = @transform_21, window_bounds = array<i64: 2, 1, 32>}, {pipeline_mode = #tpu.pipeline_mode<synchronous>, transform_indices = @transform_22, window_bounds = array<i64: 2, 1, 32>}, {pipeline_mode = #tpu.pipeline_mode<synchronous>, transform_indices = @transform_23, window_bounds = array<i64: 2, 1, 32>}, {pipeline_mode = #tpu.pipeline_mode<synchronous>, transform_indices = @transform_24, window_bounds = array<i64: 32, 32>}, {pipeline_mode = #tpu.pipeline_mode<synchronous>, transform_indices = @transform_25, window_bounds = array<i64: 1, 32>}, {pipeline_mode = #tpu.pipeline_mode<synchronous>, transform_indices = @transform_26, window_bounds = array<i64: 32, 16>}, {pipeline_mode = #tpu.pipeline_mode<synchronous>, transform_indices = @transform_27, window_bounds = array<i64: 1, 16>}, {pipeline_mode = #tpu.pipeline_mode<synchronous>, transform_indices = @transform_28, window_bounds = array<i64: 2, 16>}]} {
    %c0 = arith.constant 0 : index
    %0 = memref.load %arg2[%c0] : memref<16xi32, #tpu.memory_space<smem>>
    %1 = arith.index_cast %0 : i32 to index
    %c0_0 = arith.constant 0 : index
    %2 = vector.load %arg4[%1, %c0_0] : memref<104x32xf32, #tpu.memory_space<vmem>>, vector<1x32xf32>
    %c0_1 = arith.constant 0 : index
    %c0_2 = arith.constant 0 : index
    %3 = vector.load %arg30[%c0_1, %c0_2] : memref<16x32xf32, #tpu.memory_space<vmem>>, vector<1x32xf32>
    tpu.vector_store %arg30[%c0_1, %c0_2], %2 {strides = array<i32>} : memref<16x32xf32, #tpu.memory_space<vmem>>, vector<1x32xf32>,
    %c1 = arith.constant 1 : index
    %4 = memref.load %arg2[%c1] : memref<16xi32, #tpu.memory_space<smem>>
    %5 = arith.index_cast %4 : i32 to index
    %c0_3 = arith.constant 0 : index
    %6 = vector.load %arg4[%5, %c0_3] : memref<104x32xf32, #tpu.memory_space<vmem>>, vector<1x32xf32>
    %c1_4 = arith.constant 1 : index
    %c0_5 = arith.constant 0 : index
    %7 = vector.load %arg30[%c1_4, %c0_5] : memref<16x32xf32, #tpu.memory_space<vmem>>, vector<1x32xf32>
    tpu.vector_store %arg30[%c1_4, %c0_5], %6 {strides = array<i32>} : memref<16x32xf32, #tpu.memory_space<vmem>>, vector<1x32xf32>,
    %c2 = arith.constant 2 : index
    %8 = memref.load %arg2[%c2] : memref<16xi32, #tpu.memory_space<smem>>
    %9 = arith.index_cast %8 : i32 to index
    %c0_6 = arith.constant 0 : index
    %10 = vector.load %arg4[%9, %c0_6] : memref<104x32xf32, #tpu.memory_space<vmem>>, vector<1x32xf32>
    %c2_7 = arith.constant 2 : index
    %c0_8 = arith.constant 0 : index
    %11 = vector.load %arg30[%c2_7, %c0_8] : memref<16x32xf32, #tpu.memory_space<vmem>>, vector<1x32xf32>
    tpu.vector_store %arg30[%c2_7, %c0_8], %10 {strides = array<i32>} : memref<16x32xf32, #tpu.memory_space<vmem>>, vector<1x32xf32>,
    %c3 = arith.constant 3 : index
    %12 = memref.load %arg2[%c3] : memref<16xi32, #tpu.memory_space<smem>>
    %13 = arith.index_cast %12 : i32 to index
    %c0_9 = arith.constant 0 : index
    %14 = vector.load %arg4[%13, %c0_9] : memref<104x32xf32, #tpu.memory_space<vmem>>, vector<1x32xf32>
    %c3_10 = arith.constant 3 : index
    %c0_11 = arith.constant 0 : index
    %15 = vector.load %arg30[%c3_10, %c0_11] : memref<16x32xf32, #tpu.memory_space<vmem>>, vector<1x32xf32>
    tpu.vector_store %arg30[%c3_10, %c0_11], %14 {strides = array<i32>} : memref<16x32xf32, #tpu.memory_space<vmem>>, vector<1x32xf32>,
    %c4 = arith.constant 4 : index
    %16 = memref.load %arg2[%c4] : memref<16xi32, #tpu.memory_space<smem>>
    %17 = arith.index_cast %16 : i32 to index
    %c0_12 = arith.constant 0 : index
    %18 = vector.load %arg4[%17, %c0_12] : memref<104x32xf32, #tpu.memory_space<vmem>>, vector<1x32xf32>
    %c4_13 = arith.constant 4 : index
    %c0_14 = arith.constant 0 : index
    %19 = vector.load %arg30[%c4_13, %c0_14] : memref<16x32xf32, #tpu.memory_space<vmem>>, vector<1x32xf32>
    tpu.vector_store %arg30[%c4_13, %c0_14], %18 {strides = array<i32>} : memref<16x32xf32, #tpu.memory_space<vmem>>, vector<1x32xf32>,
    %c5 = arith.constant 5 : index
    %20 = memref.load %arg2[%c5] : memref<16xi32, #tpu.memory_space<smem>>
    %21 = arith.index_cast %20 : i32 to index
    %c0_15 = arith.constant 0 : index
    %22 = vector.load %arg4[%21, %c0_15] : memref<104x32xf32, #tpu.memory_space<vmem>>, vector<1x32xf32>
    %c5_16 = arith.constant 5 : index
    %c0_17 = arith.constant 0 : index
    %23 = vector.load %arg30[%c5_16, %c0_17] : memref<16x32xf32, #tpu.memory_space<vmem>>, vector<1x32xf32>
    tpu.vector_store %arg30[%c5_16, %c0_17], %22 {strides = array<i32>} : memref<16x32xf32, #tpu.memory_space<vmem>>, vector<1x32xf32>,
    %c6 = arith.constant 6 : index
    %24 = memref.load %arg2[%c6] : memref<16xi32, #tpu.memory_space<smem>>
    %25 = arith.index_cast %24 : i32 to index
    %c0_18 = arith.constant 0 : index
    %26 = vector.load %arg4[%25, %c0_18] : memref<104x32xf32, #tpu.memory_space<vmem>>, vector<1x32xf32>
    %c6_19 = arith.constant 6 : index
    %c0_20 = arith.constant 0 : index
    %27 = vector.load %arg30[%c6_19, %c0_20] : memref<16x32xf32, #tpu.memory_space<vmem>>, vector<1x32xf32>
    tpu.vector_store %arg30[%c6_19, %c0_20], %26 {strides = array<i32>} : memref<16x32xf32, #tpu.memory_space<vmem>>, vector<1x32xf32>,
    %c7 = arith.constant 7 : index
    %28 = memref.load %arg2[%c7] : memref<16xi32, #tpu.memory_space<smem>>
    %29 = arith.index_cast %28 : i32 to index
    %c0_21 = arith.constant 0 : index
    %30 = vector.load %arg4[%29, %c0_21] : memref<104x32xf32, #tpu.memory_space<vmem>>, vector<1x32xf32>
    %c7_22 = arith.constant 7 : index
    %c0_23 = arith.constant 0 : index
    %31 = vector.load %arg30[%c7_22, %c0_23] : memref<16x32xf32, #tpu.memory_space<vmem>>, vector<1x32xf32>
    tpu.vector_store %arg30[%c7_22, %c0_23], %30 {strides = array<i32>} : memref<16x32xf32, #tpu.memory_space<vmem>>, vector<1x32xf32>,
    %c8 = arith.constant 8 : index
    %32 = memref.load %arg2[%c8] : memref<16xi32, #tpu.memory_space<smem>>
    %33 = arith.index_cast %32 : i32 to index
    %c0_24 = arith.constant 0 : index
    %34 = vector.load %arg4[%33, %c0_24] : memref<104x32xf32, #tpu.memory_space<vmem>>, vector<1x32xf32>
    %c8_25 = arith.constant 8 : index
    %c0_26 = arith.constant 0 : index
    %35 = vector.load %arg30[%c8_25, %c0_26] : memref<16x32xf32, #tpu.memory_space<vmem>>, vector<1x32xf32>
    tpu.vector_store %arg30[%c8_25, %c0_26], %34 {strides = array<i32>} : memref<16x32xf32, #tpu.memory_space<vmem>>, vector<1x32xf32>,
    %c9 = arith.constant 9 : index
    %36 = memref.load %arg2[%c9] : memref<16xi32, #tpu.memory_space<smem>>
    %37 = arith.index_cast %36 : i32 to index
    %c0_27 = arith.constant 0 : index
    %38 = vector.load %arg4[%37, %c0_27] : memref<104x32xf32, #tpu.memory_space<vmem>>, vector<1x32xf32>
    %c9_28 = arith.constant 9 : index
    %c0_29 = arith.constant 0 : index
    %39 = vector.load %arg30[%c9_28, %c0_29] : memref<16x32xf32, #tpu.memory_space<vmem>>, vector<1x32xf32>
    tpu.vector_store %arg30[%c9_28, %c0_29], %38 {strides = array<i32>} : memref<16x32xf32, #tpu.memory_space<vmem>>, vector<1x32xf32>,
    %c10 = arith.constant 10 : index
    %40 = memref.load %arg2[%c10] : memref<16xi32, #tpu.memory_space<smem>>
    %41 = arith.index_cast %40 : i32 to index
    %c0_30 = arith.constant 0 : index
    %42 = vector.load %arg4[%41, %c0_30] : memref<104x32xf32, #tpu.memory_space<vmem>>, vector<1x32xf32>
    %c10_31 = arith.constant 10 : index
    %c0_32 = arith.constant 0 : index
    %43 = vector.load %arg30[%c10_31, %c0_32] : memref<16x32xf32, #tpu.memory_space<vmem>>, vector<1x32xf32>
    tpu.vector_store %arg30[%c10_31, %c0_32], %42 {strides = array<i32>} : memref<16x32xf32, #tpu.memory_space<vmem>>, vector<1x32xf32>,
    %c11 = arith.constant 11 : index
    %44 = memref.load %arg2[%c11] : memref<16xi32, #tpu.memory_space<smem>>
    %45 = arith.index_cast %44 : i32 to index
    %c0_33 = arith.constant 0 : index
    %46 = vector.load %arg4[%45, %c0_33] : memref<104x32xf32, #tpu.memory_space<vmem>>, vector<1x32xf32>
    %c11_34 = arith.constant 11 : index
    %c0_35 = arith.constant 0 : index
    %47 = vector.load %arg30[%c11_34, %c0_35] : memref<16x32xf32, #tpu.memory_space<vmem>>, vector<1x32xf32>
    tpu.vector_store %arg30[%c11_34, %c0_35], %46 {strides = array<i32>} : memref<16x32xf32, #tpu.memory_space<vmem>>, vector<1x32xf32>,
    %c12 = arith.constant 12 : index
    %48 = memref.load %arg2[%c12] : memref<16xi32, #tpu.memory_space<smem>>
    %49 = arith.index_cast %48 : i32 to index
    %c0_36 = arith.constant 0 : index
    %50 = vector.load %arg4[%49, %c0_36] : memref<104x32xf32, #tpu.memory_space<vmem>>, vector<1x32xf32>
    %c12_37 = arith.constant 12 : index
    %c0_38 = arith.constant 0 : index
    %51 = vector.load %arg30[%c12_37, %c0_38] : memref<16x32xf32, #tpu.memory_space<vmem>>, vector<1x32xf32>
    tpu.vector_store %arg30[%c12_37, %c0_38], %50 {strides = array<i32>} : memref<16x32xf32, #tpu.memory_space<vmem>>, vector<1x32xf32>,
    %c13 = arith.constant 13 : index
    %52 = memref.load %arg2[%c13] : memref<16xi32, #tpu.memory_space<smem>>
    %53 = arith.index_cast %52 : i32 to index
    %c0_39 = arith.constant 0 : index
    %54 = vector.load %arg4[%53, %c0_39] : memref<104x32xf32, #tpu.memory_space<vmem>>, vector<1x32xf32>
    %c13_40 = arith.constant 13 : index
    %c0_41 = arith.constant 0 : index
    %55 = vector.load %arg30[%c13_40, %c0_41] : memref<16x32xf32, #tpu.memory_space<vmem>>, vector<1x32xf32>
    tpu.vector_store %arg30[%c13_40, %c0_41], %54 {strides = array<i32>} : memref<16x32xf32, #tpu.memory_space<vmem>>, vector<1x32xf32>,
    %c14 = arith.constant 14 : index
    %56 = memref.load %arg2[%c14] : memref<16xi32, #tpu.memory_space<smem>>
    %57 = arith.index_cast %56 : i32 to index
    %c0_42 = arith.constant 0 : index
    %58 = vector.load %arg4[%57, %c0_42] : memref<104x32xf32, #tpu.memory_space<vmem>>, vector<1x32xf32>
    %c14_43 = arith.constant 14 : index
    %c0_44 = arith.constant 0 : index
    %59 = vector.load %arg30[%c14_43, %c0_44] : memref<16x32xf32, #tpu.memory_space<vmem>>, vector<1x32xf32>
    tpu.vector_store %arg30[%c14_43, %c0_44], %58 {strides = array<i32>} : memref<16x32xf32, #tpu.memory_space<vmem>>, vector<1x32xf32>,
    %c15 = arith.constant 15 : index
    %60 = memref.load %arg2[%c15] : memref<16xi32, #tpu.memory_space<smem>>
    %61 = arith.index_cast %60 : i32 to index
    %c0_45 = arith.constant 0 : index
    %62 = vector.load %arg4[%61, %c0_45] : memref<104x32xf32, #tpu.memory_space<vmem>>, vector<1x32xf32>
    %c15_46 = arith.constant 15 : index
    %c0_47 = arith.constant 0 : index
    %63 = vector.load %arg30[%c15_46, %c0_47] : memref<16x32xf32, #tpu.memory_space<vmem>>, vector<1x32xf32>
    tpu.vector_store %arg30[%c15_46, %c0_47], %62 {strides = array<i32>} : memref<16x32xf32, #tpu.memory_space<vmem>>, vector<1x32xf32>,
    %c0_48 = arith.constant 0 : index
    %c0_49 = arith.constant 0 : index
    %64 = vector.load %arg5[%c0_48, %c0_49] : memref<8x32xf32, #tpu.memory_space<vmem>>, vector<8x32xf32>
    %65 = tpu.concatenate %64, %64 in 0 : vector<8x32xf32>, vector<8x32xf32> -> vector<16x32xf32>
    %c0_50 = arith.constant 0 : index
    %c0_51 = arith.constant 0 : index
    %66 = vector.load %arg30[%c0_50, %c0_51] : memref<16x32xf32, #tpu.memory_space<vmem>>, vector<16x32xf32>
    %67 = arith.addf %66, %65 : vector<16x32xf32>
    %c0_52 = arith.constant 0 : index
    %c0_53 = arith.constant 0 : index
    %68 = vector.load %arg6[%c0_52, %c0_53] : memref<1x32xf32, #tpu.memory_space<vmem>>, vector<1x32xf32>
    %69 = vector.broadcast %68 : vector<1x32xf32> to vector<16x32xf32>
    %70 = arith.addf %67, %69 : vector<16x32xf32>
    %c0_54 = arith.constant 0 : index
    %c0_55 = arith.constant 0 : index
    %71 = vector.load %arg7[%c0_54, %c0_55] : memref<1x32xf32, #tpu.memory_space<vmem>>, vector<1x32xf32>
    %c0_56 = arith.constant 0 : index
    %c0_57 = arith.constant 0 : index
    %72 = vector.load %arg8[%c0_56, %c0_57] : memref<1x32xf32, #tpu.memory_space<vmem>>, vector<1x32xf32>
    %cst = arith.constant dense<0.000000e+00> : vector<16xf32>
    %73 = vector.multi_reduction <add>, %70, %cst [1] : vector<16x32xf32> to vector<16xf32>
    %74 = vector.shape_cast %73 : vector<16xf32> to vector<16x1xf32>
    %cst_58 = arith.constant 3.200000e+01 : f32
    %75 = vector.broadcast %cst_58 : f32 to vector<16x1xf32>
    %76 = arith.divf %74, %75 : vector<16x1xf32>
    %77 = vector.broadcast %76 : vector<16x1xf32> to vector<16x32xf32>
    %78 = arith.subf %70, %77 : vector<16x32xf32>
    %79 = arith.mulf %78, %78 : vector<16x32xf32>
    %cst_59 = arith.constant dense<0.000000e+00> : vector<16xf32>
    %80 = vector.multi_reduction <add>, %79, %cst_59 [1] : vector<16x32xf32> to vector<16xf32>
    %81 = vector.shape_cast %80 : vector<16xf32> to vector<16x1xf32>
    %cst_60 = arith.constant 3.200000e+01 : f32
    %82 = vector.broadcast %cst_60 : f32 to vector<16x1xf32>
    %83 = arith.divf %81, %82 : vector<16x1xf32>
    %cst_61 = arith.constant 9.99999996E-13 : f32
    %84 = vector.broadcast %cst_61 : f32 to vector<16x1xf32>
    %85 = arith.addf %83, %84 : vector<16x1xf32>
    %86 = math.rsqrt %85 : vector<16x1xf32>
    %87 = vector.broadcast %86 : vector<16x1xf32> to vector<16x32xf32>
    %88 = arith.mulf %78, %87 : vector<16x32xf32>
    %89 = vector.broadcast %71 : vector<1x32xf32> to vector<16x32xf32>
    %90 = arith.mulf %88, %89 : vector<16x32xf32>
    %91 = vector.broadcast %72 : vector<1x32xf32> to vector<16x32xf32>
    %92 = arith.addf %90, %91 : vector<16x32xf32>
    %c0_62 = arith.constant 0 : index
    %c0_63 = arith.constant 0 : index
    %93 = vector.load %arg3[%c0_62, %c0_63] : memref<2x8xf32, #tpu.memory_space<vmem>>, vector<2x8xf32>
    %cst_64 = arith.constant 1.000000e+00 : f32
    %94 = vector.broadcast %cst_64 : f32 to vector<2x8xf32>
    %95 = arith.subf %94, %93 : vector<2x8xf32>
    %cst_65 = arith.constant -1.000000e+09 : f32
    %96 = vector.broadcast %cst_65 : f32 to vector<2x8xf32>
    %97 = arith.mulf %95, %96 : vector<2x8xf32>
    %c0_66 = arith.constant 0 : index
    %c0_67 = arith.constant 0 : index
    %c0_68 = arith.constant 0 : index
    %c0_69 = arith.constant 0 : index
    %98 = vector.load %arg9[%c0_66, %c0_67, %c0_68, %c0_69] : memref<2x2x32x16xf32, #tpu.memory_space<vmem>>, vector<1x1x32x16xf32>
    %99 = vector.shape_cast %98 : vector<1x1x32x16xf32> to vector<32x16xf32>
    %cst_70 = arith.constant dense<0.000000e+00> : vector<16x16xf32>
    %100 = tpu.matmul %92, %99, %cst_70 {dimension_numbers = #tpu.dot_dimension_numbers<[1], [0], [0], [1], [0, 0, 1, 1], [], []>} : vector<16x32xf32>, vector<32x16xf32>, vector<16x16xf32> -> vector<16x16xf32>
    %c0_71 = arith.constant 0 : index
    %c0_72 = arith.constant 0 : index
    %c0_73 = arith.constant 0 : index
    %c0_74 = arith.constant 0 : index
    %101 = vector.load %arg12[%c0_71, %c0_72, %c0_73, %c0_74] : memref<2x2x1x16xf32, #tpu.memory_space<vmem>>, vector<1x1x1x16xf32>
    %102 = vector.shape_cast %101 : vector<1x1x1x16xf32> to vector<1x16xf32>
    %103 = vector.broadcast %102 : vector<1x16xf32> to vector<16x16xf32>
    %104 = arith.addf %100, %103 : vector<16x16xf32>
    %c0_75 = arith.constant 0 : index
    %c1_76 = arith.constant 1 : index
    %c0_77 = arith.constant 0 : index
    %c0_78 = arith.constant 0 : index
    %105 = vector.load %arg9[%c0_75, %c1_76, %c0_77, %c0_78] : memref<2x2x32x16xf32, #tpu.memory_space<vmem>>, vector<1x1x32x16xf32>
    %106 = vector.shape_cast %105 : vector<1x1x32x16xf32> to vector<32x16xf32>
    %cst_79 = arith.constant dense<0.000000e+00> : vector<16x16xf32>
    %107 = tpu.matmul %92, %106, %cst_79 {dimension_numbers = #tpu.dot_dimension_numbers<[1], [0], [0], [1], [0, 0, 1, 1], [], []>} : vector<16x32xf32>, vector<32x16xf32>, vector<16x16xf32> -> vector<16x16xf32>
    %c0_80 = arith.constant 0 : index
    %c1_81 = arith.constant 1 : index
    %c0_82 = arith.constant 0 : index
    %c0_83 = arith.constant 0 : index
    %108 = vector.load %arg12[%c0_80, %c1_81, %c0_82, %c0_83] : memref<2x2x1x16xf32, #tpu.memory_space<vmem>>, vector<1x1x1x16xf32>
    %109 = vector.shape_cast %108 : vector<1x1x1x16xf32> to vector<1x16xf32>
    %110 = vector.broadcast %109 : vector<1x16xf32> to vector<16x16xf32>
    %111 = arith.addf %107, %110 : vector<16x16xf32>
    %c0_84 = arith.constant 0 : index
    %c0_85 = arith.constant 0 : index
    %c0_86 = arith.constant 0 : index
    %c0_87 = arith.constant 0 : index
    %112 = vector.load %arg10[%c0_84, %c0_85, %c0_86, %c0_87] : memref<2x2x32x16xf32, #tpu.memory_space<vmem>>, vector<1x1x32x16xf32>
    %113 = vector.shape_cast %112 : vector<1x1x32x16xf32> to vector<32x16xf32>
    %cst_88 = arith.constant dense<0.000000e+00> : vector<16x16xf32>
    %114 = tpu.matmul %92, %113, %cst_88 {dimension_numbers = #tpu.dot_dimension_numbers<[1], [0], [0], [1], [0, 0, 1, 1], [], []>} : vector<16x32xf32>, vector<32x16xf32>, vector<16x16xf32> -> vector<16x16xf32>
    %c0_89 = arith.constant 0 : index
    %c0_90 = arith.constant 0 : index
    %c0_91 = arith.constant 0 : index
    %c0_92 = arith.constant 0 : index
    %115 = vector.load %arg13[%c0_89, %c0_90, %c0_91, %c0_92] : memref<2x2x1x16xf32, #tpu.memory_space<vmem>>, vector<1x1x1x16xf32>
    %116 = vector.shape_cast %115 : vector<1x1x1x16xf32> to vector<1x16xf32>
    %117 = vector.broadcast %116 : vector<1x16xf32> to vector<16x16xf32>
    %118 = arith.addf %114, %117 : vector<16x16xf32>
    %c0_93 = arith.constant 0 : index
    %c1_94 = arith.constant 1 : index
    %c0_95 = arith.constant 0 : index
    %c0_96 = arith.constant 0 : index
    %119 = vector.load %arg10[%c0_93, %c1_94, %c0_95, %c0_96] : memref<2x2x32x16xf32, #tpu.memory_space<vmem>>, vector<1x1x32x16xf32>
    %120 = vector.shape_cast %119 : vector<1x1x32x16xf32> to vector<32x16xf32>
    %cst_97 = arith.constant dense<0.000000e+00> : vector<16x16xf32>
    %121 = tpu.matmul %92, %120, %cst_97 {dimension_numbers = #tpu.dot_dimension_numbers<[1], [0], [0], [1], [0, 0, 1, 1], [], []>} : vector<16x32xf32>, vector<32x16xf32>, vector<16x16xf32> -> vector<16x16xf32>
    %c0_98 = arith.constant 0 : index
    %c1_99 = arith.constant 1 : index
    %c0_100 = arith.constant 0 : index
    %c0_101 = arith.constant 0 : index
    %122 = vector.load %arg13[%c0_98, %c1_99, %c0_100, %c0_101] : memref<2x2x1x16xf32, #tpu.memory_space<vmem>>, vector<1x1x1x16xf32>
    %123 = vector.shape_cast %122 : vector<1x1x1x16xf32> to vector<1x16xf32>
    %124 = vector.broadcast %123 : vector<1x16xf32> to vector<16x16xf32>
    %125 = arith.addf %121, %124 : vector<16x16xf32>
    %c0_102 = arith.constant 0 : index
    %c0_103 = arith.constant 0 : index
    %c0_104 = arith.constant 0 : index
    %c0_105 = arith.constant 0 : index
    %126 = vector.load %arg11[%c0_102, %c0_103, %c0_104, %c0_105] : memref<2x2x32x16xf32, #tpu.memory_space<vmem>>, vector<1x1x32x16xf32>
    %127 = vector.shape_cast %126 : vector<1x1x32x16xf32> to vector<32x16xf32>
    %cst_106 = arith.constant dense<0.000000e+00> : vector<16x16xf32>
    %128 = tpu.matmul %92, %127, %cst_106 {dimension_numbers = #tpu.dot_dimension_numbers<[1], [0], [0], [1], [0, 0, 1, 1], [], []>} : vector<16x32xf32>, vector<32x16xf32>, vector<16x16xf32> -> vector<16x16xf32>
    %c0_107 = arith.constant 0 : index
    %c0_108 = arith.constant 0 : index
    %c0_109 = arith.constant 0 : index
    %c0_110 = arith.constant 0 : index
    %129 = vector.load %arg14[%c0_107, %c0_108, %c0_109, %c0_110] : memref<2x2x1x16xf32, #tpu.memory_space<vmem>>, vector<1x1x1x16xf32>
    %130 = vector.shape_cast %129 : vector<1x1x1x16xf32> to vector<1x16xf32>
    %131 = vector.broadcast %130 : vector<1x16xf32> to vector<16x16xf32>
    %132 = arith.addf %128, %131 : vector<16x16xf32>
    %c0_111 = arith.constant 0 : index
    %c1_112 = arith.constant 1 : index
    %c0_113 = arith.constant 0 : index
    %c0_114 = arith.constant 0 : index
    %133 = vector.load %arg11[%c0_111, %c1_112, %c0_113, %c0_114] : memref<2x2x32x16xf32, #tpu.memory_space<vmem>>, vector<1x1x32x16xf32>
    %134 = vector.shape_cast %133 : vector<1x1x32x16xf32> to vector<32x16xf32>
    %cst_115 = arith.constant dense<0.000000e+00> : vector<16x16xf32>
    %135 = tpu.matmul %92, %134, %cst_115 {dimension_numbers = #tpu.dot_dimension_numbers<[1], [0], [0], [1], [0, 0, 1, 1], [], []>} : vector<16x32xf32>, vector<32x16xf32>, vector<16x16xf32> -> vector<16x16xf32>
    %c0_116 = arith.constant 0 : index
    %c1_117 = arith.constant 1 : index
    %c0_118 = arith.constant 0 : index
    %c0_119 = arith.constant 0 : index
    %136 = vector.load %arg14[%c0_116, %c1_117, %c0_118, %c0_119] : memref<2x2x1x16xf32, #tpu.memory_space<vmem>>, vector<1x1x1x16xf32>
    %137 = vector.shape_cast %136 : vector<1x1x1x16xf32> to vector<1x16xf32>
    %138 = vector.broadcast %137 : vector<1x16xf32> to vector<16x16xf32>
    %139 = arith.addf %135, %138 : vector<16x16xf32>
    %140 = vector.extract_strided_slice %104 {offsets = [0, 0], sizes = [8, 16], strides = [1, 1]} : vector<16x16xf32> to vector<8x16xf32>
    %141 = vector.extract_strided_slice %118 {offsets = [0, 0], sizes = [8, 16], strides = [1, 1]} : vector<16x16xf32> to vector<8x16xf32>
    %142 = tpu.transpose %141, [1, 0] : vector<8x16xf32> -> vector<16x8xf32>
    %cst_120 = arith.constant dense<0.000000e+00> : vector<8x8xf32>
    %143 = tpu.matmul %140, %142, %cst_120 {dimension_numbers = #tpu.dot_dimension_numbers<[1], [0], [0], [1], [0, 0, 1, 1], [], []>} : vector<8x16xf32>, vector<16x8xf32>, vector<8x8xf32> -> vector<8x8xf32>
    %cst_121 = arith.constant 2.500000e-01 : f32
    %144 = vector.broadcast %cst_121 : f32 to vector<8x8xf32>
    %145 = arith.mulf %143, %144 : vector<8x8xf32>
    %146 = vector.extract_strided_slice %97 {offsets = [0, 0], sizes = [1, 8], strides = [1, 1]} : vector<2x8xf32> to vector<1x8xf32>
    %147 = vector.broadcast %146 : vector<1x8xf32> to vector<8x8xf32>
    %148 = arith.addf %145, %147 : vector<8x8xf32>
    %149 = vector.extract_strided_slice %111 {offsets = [0, 0], sizes = [8, 16], strides = [1, 1]} : vector<16x16xf32> to vector<8x16xf32>
    %150 = vector.extract_strided_slice %125 {offsets = [0, 0], sizes = [8, 16], strides = [1, 1]} : vector<16x16xf32> to vector<8x16xf32>
    %151 = tpu.transpose %150, [1, 0] : vector<8x16xf32> -> vector<16x8xf32>
    %cst_122 = arith.constant dense<0.000000e+00> : vector<8x8xf32>
    %152 = tpu.matmul %149, %151, %cst_122 {dimension_numbers = #tpu.dot_dimension_numbers<[1], [0], [0], [1], [0, 0, 1, 1], [], []>} : vector<8x16xf32>, vector<16x8xf32>, vector<8x8xf32> -> vector<8x8xf32>
    %cst_123 = arith.constant 2.500000e-01 : f32
    %153 = vector.broadcast %cst_123 : f32 to vector<8x8xf32>
    %154 = arith.mulf %152, %153 : vector<8x8xf32>
    %155 = vector.extract_strided_slice %97 {offsets = [0, 0], sizes = [1, 8], strides = [1, 1]} : vector<2x8xf32> to vector<1x8xf32>
    %156 = vector.broadcast %155 : vector<1x8xf32> to vector<8x8xf32>
    %157 = arith.addf %154, %156 : vector<8x8xf32>
    %158 = vector.extract_strided_slice %104 {offsets = [8, 0], sizes = [8, 16], strides = [1, 1]} : vector<16x16xf32> to vector<8x16xf32>
    %159 = vector.extract_strided_slice %118 {offsets = [8, 0], sizes = [8, 16], strides = [1, 1]} : vector<16x16xf32> to vector<8x16xf32>
    %160 = tpu.transpose %159, [1, 0] : vector<8x16xf32> -> vector<16x8xf32>
    %cst_124 = arith.constant dense<0.000000e+00> : vector<8x8xf32>
    %161 = tpu.matmul %158, %160, %cst_124 {dimension_numbers = #tpu.dot_dimension_numbers<[1], [0], [0], [1], [0, 0, 1, 1], [], []>} : vector<8x16xf32>, vector<16x8xf32>, vector<8x8xf32> -> vector<8x8xf32>
    %cst_125 = arith.constant 2.500000e-01 : f32
    %162 = vector.broadcast %cst_125 : f32 to vector<8x8xf32>
    %163 = arith.mulf %161, %162 : vector<8x8xf32>
    %164 = vector.extract_strided_slice %97 {offsets = [1, 0], sizes = [1, 8], strides = [1, 1]} : vector<2x8xf32> to vector<1x8xf32>
    %165 = vector.broadcast %164 : vector<1x8xf32> to vector<8x8xf32>
    %166 = arith.addf %163, %165 : vector<8x8xf32>
    %167 = vector.extract_strided_slice %111 {offsets = [8, 0], sizes = [8, 16], strides = [1, 1]} : vector<16x16xf32> to vector<8x16xf32>
    %168 = vector.extract_strided_slice %125 {offsets = [8, 0], sizes = [8, 16], strides = [1, 1]} : vector<16x16xf32> to vector<8x16xf32>
    %169 = tpu.transpose %168, [1, 0] : vector<8x16xf32> -> vector<16x8xf32>
    %cst_126 = arith.constant dense<0.000000e+00> : vector<8x8xf32>
    %170 = tpu.matmul %167, %169, %cst_126 {dimension_numbers = #tpu.dot_dimension_numbers<[1], [0], [0], [1], [0, 0, 1, 1], [], []>} : vector<8x16xf32>, vector<16x8xf32>, vector<8x8xf32> -> vector<8x8xf32>
    %cst_127 = arith.constant 2.500000e-01 : f32
    %171 = vector.broadcast %cst_127 : f32 to vector<8x8xf32>
    %172 = arith.mulf %170, %171 : vector<8x8xf32>
    %173 = vector.extract_strided_slice %97 {offsets = [1, 0], sizes = [1, 8], strides = [1, 1]} : vector<2x8xf32> to vector<1x8xf32>
    %174 = vector.broadcast %173 : vector<1x8xf32> to vector<8x8xf32>
    %175 = arith.addf %172, %174 : vector<8x8xf32>
    %176 = tpu.concatenate %148, %157, %166, %175 in 0 : vector<8x8xf32>, vector<8x8xf32>, vector<8x8xf32>, vector<8x8xf32> -> vector<32x8xf32>
    %cst_128 = arith.constant dense<0xFF800000> : vector<32xf32>
    %177 = vector.multi_reduction <maximumf>, %176, %cst_128 [1] : vector<32x8xf32> to vector<32xf32>
    %178 = vector.shape_cast %177 : vector<32xf32> to vector<32x1xf32>
    %179 = vector.broadcast %178 : vector<32x1xf32> to vector<32x8xf32>
    %180 = arith.subf %176, %179 : vector<32x8xf32>
    %181 = math.exp %180 : vector<32x8xf32>
    %cst_129 = arith.constant dense<0.000000e+00> : vector<32xf32>
    %182 = vector.multi_reduction <add>, %181, %cst_129 [1] : vector<32x8xf32> to vector<32xf32>
    %183 = vector.shape_cast %182 : vector<32xf32> to vector<32x1xf32>
    %184 = tpu.reciprocal %183 {approx = true} : vector<32x1xf32> -> vector<32x1xf32>
    %185 = vector.broadcast %184 : vector<32x1xf32> to vector<32x8xf32>
    %186 = arith.mulf %181, %185 : vector<32x8xf32>
    %187 = vector.extract_strided_slice %186 {offsets = [0, 0], sizes = [8, 8], strides = [1, 1]} : vector<32x8xf32> to vector<8x8xf32>
    %188 = vector.extract_strided_slice %132 {offsets = [0, 0], sizes = [8, 16], strides = [1, 1]} : vector<16x16xf32> to vector<8x16xf32>
    %cst_130 = arith.constant dense<0.000000e+00> : vector<8x16xf32>
    %189 = tpu.matmul %187, %188, %cst_130 {dimension_numbers = #tpu.dot_dimension_numbers<[1], [0], [0], [1], [0, 0, 1, 1], [], []>} : vector<8x8xf32>, vector<8x16xf32>, vector<8x16xf32> -> vector<8x16xf32>
    %c0_131 = arith.constant 0 : index
    %c0_132 = arith.constant 0 : index
    %190 = vector.load %arg31[%c0_131, %c0_132] : memref<16x32xf32, #tpu.memory_space<vmem>>, vector<8x16xf32>
    tpu.vector_store %arg31[%c0_131, %c0_132], %189 {strides = array<i32>} : memref<16x32xf32, #tpu.memory_space<vmem>>, vector<8x16xf32>,
    %191 = vector.extract_strided_slice %186 {offsets = [8, 0], sizes = [8, 8], strides = [1, 1]} : vector<32x8xf32> to vector<8x8xf32>
    %192 = vector.extract_strided_slice %139 {offsets = [0, 0], sizes = [8, 16], strides = [1, 1]} : vector<16x16xf32> to vector<8x16xf32>
    %cst_133 = arith.constant dense<0.000000e+00> : vector<8x16xf32>
    %193 = tpu.matmul %191, %192, %cst_133 {dimension_numbers = #tpu.dot_dimension_numbers<[1], [0], [0], [1], [0, 0, 1, 1], [], []>} : vector<8x8xf32>, vector<8x16xf32>, vector<8x16xf32> -> vector<8x16xf32>
    %c0_134 = arith.constant 0 : index
    %c16 = arith.constant 16 : index
    %194 = vector.load %arg31[%c0_134, %c16] : memref<16x32xf32, #tpu.memory_space<vmem>>, vector<8x16xf32>
    tpu.vector_store %arg31[%c0_134, %c16], %193 {strides = array<i32>} : memref<16x32xf32, #tpu.memory_space<vmem>>, vector<8x16xf32>,
    %195 = vector.extract_strided_slice %186 {offsets = [16, 0], sizes = [8, 8], strides = [1, 1]} : vector<32x8xf32> to vector<8x8xf32>
    %196 = vector.extract_strided_slice %132 {offsets = [8, 0], sizes = [8, 16], strides = [1, 1]} : vector<16x16xf32> to vector<8x16xf32>
    %cst_135 = arith.constant dense<0.000000e+00> : vector<8x16xf32>
    %197 = tpu.matmul %195, %196, %cst_135 {dimension_numbers = #tpu.dot_dimension_numbers<[1], [0], [0], [1], [0, 0, 1, 1], [], []>} : vector<8x8xf32>, vector<8x16xf32>, vector<8x16xf32> -> vector<8x16xf32>
    %c8_136 = arith.constant 8 : index
    %c0_137 = arith.constant 0 : index
    %198 = vector.load %arg31[%c8_136, %c0_137] : memref<16x32xf32, #tpu.memory_space<vmem>>, vector<8x16xf32>
    tpu.vector_store %arg31[%c8_136, %c0_137], %197 {strides = array<i32>} : memref<16x32xf32, #tpu.memory_space<vmem>>, vector<8x16xf32>,
    %199 = vector.extract_strided_slice %186 {offsets = [24, 0], sizes = [8, 8], strides = [1, 1]} : vector<32x8xf32> to vector<8x8xf32>
    %200 = vector.extract_strided_slice %139 {offsets = [8, 0], sizes = [8, 16], strides = [1, 1]} : vector<16x16xf32> to vector<8x16xf32>
    %cst_138 = arith.constant dense<0.000000e+00> : vector<8x16xf32>
    %201 = tpu.matmul %199, %200, %cst_138 {dimension_numbers = #tpu.dot_dimension_numbers<[1], [0], [0], [1], [0, 0, 1, 1], [], []>} : vector<8x8xf32>, vector<8x16xf32>, vector<8x16xf32> -> vector<8x16xf32>
    %c8_139 = arith.constant 8 : index
    %c16_140 = arith.constant 16 : index
    %202 = vector.load %arg31[%c8_139, %c16_140] : memref<16x32xf32, #tpu.memory_space<vmem>>, vector<8x16xf32>
    tpu.vector_store %arg31[%c8_139, %c16_140], %201 {strides = array<i32>} : memref<16x32xf32, #tpu.memory_space<vmem>>, vector<8x16xf32>,
    %c0_141 = arith.constant 0 : index
    %c0_142 = arith.constant 0 : index
    %203 = vector.load %arg31[%c0_141, %c0_142] : memref<16x32xf32, #tpu.memory_space<vmem>>, vector<16x32xf32>
    %c0_143 = arith.constant 0 : index
    %c0_144 = arith.constant 0 : index
    %c0_145 = arith.constant 0 : index
    %204 = vector.load %arg15[%c0_143, %c0_144, %c0_145] : memref<2x32x32xf32, #tpu.memory_space<vmem>>, vector<1x32x32xf32>
    %205 = vector.shape_cast %204 : vector<1x32x32xf32> to vector<32x32xf32>
    %cst_146 = arith.constant dense<0.000000e+00> : vector<16x32xf32>
    %206 = tpu.matmul %203, %205, %cst_146 {dimension_numbers = #tpu.dot_dimension_numbers<[1], [0], [0], [1], [0, 0, 1, 1], [], []>} : vector<16x32xf32>, vector<32x32xf32>, vector<16x32xf32> -> vector<16x32xf32>
    %c0_147 = arith.constant 0 : index
    %c0_148 = arith.constant 0 : index
    %c0_149 = arith.constant 0 : index
    %207 = vector.load %arg16[%c0_147, %c0_148, %c0_149] : memref<2x1x32xf32, #tpu.memory_space<vmem>>, vector<1x1x32xf32>
    %208 = vector.shape_cast %207 : vector<1x1x32xf32> to vector<1x32xf32>
    %209 = vector.broadcast %208 : vector<1x32xf32> to vector<16x32xf32>
    %210 = arith.addf %206, %209 : vector<16x32xf32>
    %211 = arith.addf %210, %92 : vector<16x32xf32>
    %c0_150 = arith.constant 0 : index
    %c0_151 = arith.constant 0 : index
    %c0_152 = arith.constant 0 : index
    %212 = vector.load %arg17[%c0_150, %c0_151, %c0_152] : memref<2x1x32xf32, #tpu.memory_space<vmem>>, vector<1x1x32xf32>
    %213 = vector.shape_cast %212 : vector<1x1x32xf32> to vector<1x32xf32>
    %c0_153 = arith.constant 0 : index
    %c0_154 = arith.constant 0 : index
    %c0_155 = arith.constant 0 : index
    %214 = vector.load %arg18[%c0_153, %c0_154, %c0_155] : memref<2x1x32xf32, #tpu.memory_space<vmem>>, vector<1x1x32xf32>
    %215 = vector.shape_cast %214 : vector<1x1x32xf32> to vector<1x32xf32>
    %cst_156 = arith.constant dense<0.000000e+00> : vector<16xf32>
    %216 = vector.multi_reduction <add>, %211, %cst_156 [1] : vector<16x32xf32> to vector<16xf32>
    %217 = vector.shape_cast %216 : vector<16xf32> to vector<16x1xf32>
    %cst_157 = arith.constant 3.200000e+01 : f32
    %218 = vector.broadcast %cst_157 : f32 to vector<16x1xf32>
    %219 = arith.divf %217, %218 : vector<16x1xf32>
    %220 = vector.broadcast %219 : vector<16x1xf32> to vector<16x32xf32>
    %221 = arith.subf %211, %220 : vector<16x32xf32>
    %222 = arith.mulf %221, %221 : vector<16x32xf32>
    %cst_158 = arith.constant dense<0.000000e+00> : vector<16xf32>
    %223 = vector.multi_reduction <add>, %222, %cst_158 [1] : vector<16x32xf32> to vector<16xf32>
    %224 = vector.shape_cast %223 : vector<16xf32> to vector<16x1xf32>
    %cst_159 = arith.constant 3.200000e+01 : f32
    %225 = vector.broadcast %cst_159 : f32 to vector<16x1xf32>
    %226 = arith.divf %224, %225 : vector<16x1xf32>
    %cst_160 = arith.constant 9.99999996E-13 : f32
    %227 = vector.broadcast %cst_160 : f32 to vector<16x1xf32>
    %228 = arith.addf %226, %227 : vector<16x1xf32>
    %229 = math.rsqrt %228 : vector<16x1xf32>
    %230 = vector.broadcast %229 : vector<16x1xf32> to vector<16x32xf32>
    %231 = arith.mulf %221, %230 : vector<16x32xf32>
    %232 = vector.broadcast %213 : vector<1x32xf32> to vector<16x32xf32>
    %233 = arith.mulf %231, %232 : vector<16x32xf32>
    %234 = vector.broadcast %215 : vector<1x32xf32> to vector<16x32xf32>
    %235 = arith.addf %233, %234 : vector<16x32xf32>
    %c0_161 = arith.constant 0 : index
    %c0_162 = arith.constant 0 : index
    %c0_163 = arith.constant 0 : index
    %236 = vector.load %arg19[%c0_161, %c0_162, %c0_163] : memref<2x32x64xf32, #tpu.memory_space<vmem>>, vector<1x32x64xf32>
    %237 = vector.shape_cast %236 : vector<1x32x64xf32> to vector<32x64xf32>
    %cst_164 = arith.constant dense<0.000000e+00> : vector<16x64xf32>
    %238 = tpu.matmul %235, %237, %cst_164 {dimension_numbers = #tpu.dot_dimension_numbers<[1], [0], [0], [1], [0, 0, 1, 1], [], []>} : vector<16x32xf32>, vector<32x64xf32>, vector<16x64xf32> -> vector<16x64xf32>
    %c0_165 = arith.constant 0 : index
    %c0_166 = arith.constant 0 : index
    %c0_167 = arith.constant 0 : index
    %239 = vector.load %arg20[%c0_165, %c0_166, %c0_167] : memref<2x1x64xf32, #tpu.memory_space<vmem>>, vector<1x1x64xf32>
    %240 = vector.shape_cast %239 : vector<1x1x64xf32> to vector<1x64xf32>
    %241 = vector.broadcast %240 : vector<1x64xf32> to vector<16x64xf32>
    %242 = arith.addf %238, %241 : vector<16x64xf32>
    %cst_168 = arith.constant 5.000000e-01 : f32
    %243 = vector.broadcast %cst_168 : f32 to vector<16x64xf32>
    %244 = arith.mulf %243, %242 : vector<16x64xf32>
    %cst_169 = arith.constant 4.471500e-02 : f32
    %245 = vector.broadcast %cst_169 : f32 to vector<16x64xf32>
    %246 = arith.mulf %245, %242 : vector<16x64xf32>
    %247 = arith.mulf %246, %242 : vector<16x64xf32>
    %248 = arith.mulf %247, %242 : vector<16x64xf32>
    %249 = arith.addf %242, %248 : vector<16x64xf32>
    %cst_170 = arith.constant 0.797884583 : f32
    %250 = vector.broadcast %cst_170 : f32 to vector<16x64xf32>
    %251 = arith.mulf %250, %249 : vector<16x64xf32>
    %252 = math.tanh %251 : vector<16x64xf32>
    %cst_171 = arith.constant 1.000000e+00 : f32
    %253 = vector.broadcast %cst_171 : f32 to vector<16x64xf32>
    %254 = arith.addf %253, %252 : vector<16x64xf32>
    %255 = arith.mulf %244, %254 : vector<16x64xf32>
    %c0_172 = arith.constant 0 : index
    %c0_173 = arith.constant 0 : index
    %c0_174 = arith.constant 0 : index
    %256 = vector.load %arg21[%c0_172, %c0_173, %c0_174] : memref<2x64x32xf32, #tpu.memory_space<vmem>>, vector<1x64x32xf32>
    %257 = vector.shape_cast %256 : vector<1x64x32xf32> to vector<64x32xf32>
    %cst_175 = arith.constant dense<0.000000e+00> : vector<16x32xf32>
    %258 = tpu.matmul %255, %257, %cst_175 {dimension_numbers = #tpu.dot_dimension_numbers<[1], [0], [0], [1], [0, 0, 1, 1], [], []>} : vector<16x64xf32>, vector<64x32xf32>, vector<16x32xf32> -> vector<16x32xf32>
    %c0_176 = arith.constant 0 : index
    %c0_177 = arith.constant 0 : index
    %c0_178 = arith.constant 0 : index
    %259 = vector.load %arg22[%c0_176, %c0_177, %c0_178] : memref<2x1x32xf32, #tpu.memory_space<vmem>>, vector<1x1x32xf32>
    %260 = vector.shape_cast %259 : vector<1x1x32xf32> to vector<1x32xf32>
    %261 = vector.broadcast %260 : vector<1x32xf32> to vector<16x32xf32>
    %262 = arith.addf %258, %261 : vector<16x32xf32>
    %263 = arith.addf %262, %235 : vector<16x32xf32>
    %c0_179 = arith.constant 0 : index
    %c0_180 = arith.constant 0 : index
    %c0_181 = arith.constant 0 : index
    %264 = vector.load %arg23[%c0_179, %c0_180, %c0_181] : memref<2x1x32xf32, #tpu.memory_space<vmem>>, vector<1x1x32xf32>
    %265 = vector.shape_cast %264 : vector<1x1x32xf32> to vector<1x32xf32>
    %c0_182 = arith.constant 0 : index
    %c0_183 = arith.constant 0 : index
    %c0_184 = arith.constant 0 : index
    %266 = vector.load %arg24[%c0_182, %c0_183, %c0_184] : memref<2x1x32xf32, #tpu.memory_space<vmem>>, vector<1x1x32xf32>
    %267 = vector.shape_cast %266 : vector<1x1x32xf32> to vector<1x32xf32>
    %cst_185 = arith.constant dense<0.000000e+00> : vector<16xf32>
    %268 = vector.multi_reduction <add>, %263, %cst_185 [1] : vector<16x32xf32> to vector<16xf32>
    %269 = vector.shape_cast %268 : vector<16xf32> to vector<16x1xf32>
    %cst_186 = arith.constant 3.200000e+01 : f32
    %270 = vector.broadcast %cst_186 : f32 to vector<16x1xf32>
    %271 = arith.divf %269, %270 : vector<16x1xf32>
    %272 = vector.broadcast %271 : vector<16x1xf32> to vector<16x32xf32>
    %273 = arith.subf %263, %272 : vector<16x32xf32>
    %274 = arith.mulf %273, %273 : vector<16x32xf32>
    %cst_187 = arith.constant dense<0.000000e+00> : vector<16xf32>
    %275 = vector.multi_reduction <add>, %274, %cst_187 [1] : vector<16x32xf32> to vector<16xf32>
    %276 = vector.shape_cast %275 : vector<16xf32> to vector<16x1xf32>
    %cst_188 = arith.constant 3.200000e+01 : f32
    %277 = vector.broadcast %cst_188 : f32 to vector<16x1xf32>
    %278 = arith.divf %276, %277 : vector<16x1xf32>
    %cst_189 = arith.constant 9.99999996E-13 : f32
    %279 = vector.broadcast %cst_189 : f32 to vector<16x1xf32>
    %280 = arith.addf %278, %279 : vector<16x1xf32>
    %281 = math.rsqrt %280 : vector<16x1xf32>
    %282 = vector.broadcast %281 : vector<16x1xf32> to vector<16x32xf32>
    %283 = arith.mulf %273, %282 : vector<16x32xf32>
    %284 = vector.broadcast %265 : vector<1x32xf32> to vector<16x32xf32>
    %285 = arith.mulf %283, %284 : vector<16x32xf32>
    %286 = vector.broadcast %267 : vector<1x32xf32> to vector<16x32xf32>
    %287 = arith.addf %285, %286 : vector<16x32xf32>
    %c1_190 = arith.constant 1 : index
    %c0_191 = arith.constant 0 : index
    %c0_192 = arith.constant 0 : index
    %c0_193 = arith.constant 0 : index
    %288 = vector.load %arg9[%c1_190, %c0_191, %c0_192, %c0_193] : memref<2x2x32x16xf32, #tpu.memory_space<vmem>>, vector<1x1x32x16xf32>
    %289 = vector.shape_cast %288 : vector<1x1x32x16xf32> to vector<32x16xf32>
    %cst_194 = arith.constant dense<0.000000e+00> : vector<16x16xf32>
    %290 = tpu.matmul %287, %289, %cst_194 {dimension_numbers = #tpu.dot_dimension_numbers<[1], [0], [0], [1], [0, 0, 1, 1], [], []>} : vector<16x32xf32>, vector<32x16xf32>, vector<16x16xf32> -> vector<16x16xf32>
    %c1_195 = arith.constant 1 : index
    %c0_196 = arith.constant 0 : index
    %c0_197 = arith.constant 0 : index
    %c0_198 = arith.constant 0 : index
    %291 = vector.load %arg12[%c1_195, %c0_196, %c0_197, %c0_198] : memref<2x2x1x16xf32, #tpu.memory_space<vmem>>, vector<1x1x1x16xf32>
    %292 = vector.shape_cast %291 : vector<1x1x1x16xf32> to vector<1x16xf32>
    %293 = vector.broadcast %292 : vector<1x16xf32> to vector<16x16xf32>
    %294 = arith.addf %290, %293 : vector<16x16xf32>
    %c1_199 = arith.constant 1 : index
    %c1_200 = arith.constant 1 : index
    %c0_201 = arith.constant 0 : index
    %c0_202 = arith.constant 0 : index
    %295 = vector.load %arg9[%c1_199, %c1_200, %c0_201, %c0_202] : memref<2x2x32x16xf32, #tpu.memory_space<vmem>>, vector<1x1x32x16xf32>
    %296 = vector.shape_cast %295 : vector<1x1x32x16xf32> to vector<32x16xf32>
    %cst_203 = arith.constant dense<0.000000e+00> : vector<16x16xf32>
    %297 = tpu.matmul %287, %296, %cst_203 {dimension_numbers = #tpu.dot_dimension_numbers<[1], [0], [0], [1], [0, 0, 1, 1], [], []>} : vector<16x32xf32>, vector<32x16xf32>, vector<16x16xf32> -> vector<16x16xf32>
    %c1_204 = arith.constant 1 : index
    %c1_205 = arith.constant 1 : index
    %c0_206 = arith.constant 0 : index
    %c0_207 = arith.constant 0 : index
    %298 = vector.load %arg12[%c1_204, %c1_205, %c0_206, %c0_207] : memref<2x2x1x16xf32, #tpu.memory_space<vmem>>, vector<1x1x1x16xf32>
    %299 = vector.shape_cast %298 : vector<1x1x1x16xf32> to vector<1x16xf32>
    %300 = vector.broadcast %299 : vector<1x16xf32> to vector<16x16xf32>
    %301 = arith.addf %297, %300 : vector<16x16xf32>
    %c1_208 = arith.constant 1 : index
    %c0_209 = arith.constant 0 : index
    %c0_210 = arith.constant 0 : index
    %c0_211 = arith.constant 0 : index
    %302 = vector.load %arg10[%c1_208, %c0_209, %c0_210, %c0_211] : memref<2x2x32x16xf32, #tpu.memory_space<vmem>>, vector<1x1x32x16xf32>
    %303 = vector.shape_cast %302 : vector<1x1x32x16xf32> to vector<32x16xf32>
    %cst_212 = arith.constant dense<0.000000e+00> : vector<16x16xf32>
    %304 = tpu.matmul %287, %303, %cst_212 {dimension_numbers = #tpu.dot_dimension_numbers<[1], [0], [0], [1], [0, 0, 1, 1], [], []>} : vector<16x32xf32>, vector<32x16xf32>, vector<16x16xf32> -> vector<16x16xf32>
    %c1_213 = arith.constant 1 : index
    %c0_214 = arith.constant 0 : index
    %c0_215 = arith.constant 0 : index
    %c0_216 = arith.constant 0 : index
    %305 = vector.load %arg13[%c1_213, %c0_214, %c0_215, %c0_216] : memref<2x2x1x16xf32, #tpu.memory_space<vmem>>, vector<1x1x1x16xf32>
    %306 = vector.shape_cast %305 : vector<1x1x1x16xf32> to vector<1x16xf32>
    %307 = vector.broadcast %306 : vector<1x16xf32> to vector<16x16xf32>
    %308 = arith.addf %304, %307 : vector<16x16xf32>
    %c1_217 = arith.constant 1 : index
    %c1_218 = arith.constant 1 : index
    %c0_219 = arith.constant 0 : index
    %c0_220 = arith.constant 0 : index
    %309 = vector.load %arg10[%c1_217, %c1_218, %c0_219, %c0_220] : memref<2x2x32x16xf32, #tpu.memory_space<vmem>>, vector<1x1x32x16xf32>
    %310 = vector.shape_cast %309 : vector<1x1x32x16xf32> to vector<32x16xf32>
    %cst_221 = arith.constant dense<0.000000e+00> : vector<16x16xf32>
    %311 = tpu.matmul %287, %310, %cst_221 {dimension_numbers = #tpu.dot_dimension_numbers<[1], [0], [0], [1], [0, 0, 1, 1], [], []>} : vector<16x32xf32>, vector<32x16xf32>, vector<16x16xf32> -> vector<16x16xf32>
    %c1_222 = arith.constant 1 : index
    %c1_223 = arith.constant 1 : index
    %c0_224 = arith.constant 0 : index
    %c0_225 = arith.constant 0 : index
    %312 = vector.load %arg13[%c1_222, %c1_223, %c0_224, %c0_225] : memref<2x2x1x16xf32, #tpu.memory_space<vmem>>, vector<1x1x1x16xf32>
    %313 = vector.shape_cast %312 : vector<1x1x1x16xf32> to vector<1x16xf32>
    %314 = vector.broadcast %313 : vector<1x16xf32> to vector<16x16xf32>
    %315 = arith.addf %311, %314 : vector<16x16xf32>
    %c1_226 = arith.constant 1 : index
    %c0_227 = arith.constant 0 : index
    %c0_228 = arith.constant 0 : index
    %c0_229 = arith.constant 0 : index
    %316 = vector.load %arg11[%c1_226, %c0_227, %c0_228, %c0_229] : memref<2x2x32x16xf32, #tpu.memory_space<vmem>>, vector<1x1x32x16xf32>
    %317 = vector.shape_cast %316 : vector<1x1x32x16xf32> to vector<32x16xf32>
    %cst_230 = arith.constant dense<0.000000e+00> : vector<16x16xf32>
    %318 = tpu.matmul %287, %317, %cst_230 {dimension_numbers = #tpu.dot_dimension_numbers<[1], [0], [0], [1], [0, 0, 1, 1], [], []>} : vector<16x32xf32>, vector<32x16xf32>, vector<16x16xf32> -> vector<16x16xf32>
    %c1_231 = arith.constant 1 : index
    %c0_232 = arith.constant 0 : index
    %c0_233 = arith.constant 0 : index
    %c0_234 = arith.constant 0 : index
    %319 = vector.load %arg14[%c1_231, %c0_232, %c0_233, %c0_234] : memref<2x2x1x16xf32, #tpu.memory_space<vmem>>, vector<1x1x1x16xf32>
    %320 = vector.shape_cast %319 : vector<1x1x1x16xf32> to vector<1x16xf32>
    %321 = vector.broadcast %320 : vector<1x16xf32> to vector<16x16xf32>
    %322 = arith.addf %318, %321 : vector<16x16xf32>
    %c1_235 = arith.constant 1 : index
    %c1_236 = arith.constant 1 : index
    %c0_237 = arith.constant 0 : index
    %c0_238 = arith.constant 0 : index
    %323 = vector.load %arg11[%c1_235, %c1_236, %c0_237, %c0_238] : memref<2x2x32x16xf32, #tpu.memory_space<vmem>>, vector<1x1x32x16xf32>
    %324 = vector.shape_cast %323 : vector<1x1x32x16xf32> to vector<32x16xf32>
    %cst_239 = arith.constant dense<0.000000e+00> : vector<16x16xf32>
    %325 = tpu.matmul %287, %324, %cst_239 {dimension_numbers = #tpu.dot_dimension_numbers<[1], [0], [0], [1], [0, 0, 1, 1], [], []>} : vector<16x32xf32>, vector<32x16xf32>, vector<16x16xf32> -> vector<16x16xf32>
    %c1_240 = arith.constant 1 : index
    %c1_241 = arith.constant 1 : index
    %c0_242 = arith.constant 0 : index
    %c0_243 = arith.constant 0 : index
    %326 = vector.load %arg14[%c1_240, %c1_241, %c0_242, %c0_243] : memref<2x2x1x16xf32, #tpu.memory_space<vmem>>, vector<1x1x1x16xf32>
    %327 = vector.shape_cast %326 : vector<1x1x1x16xf32> to vector<1x16xf32>
    %328 = vector.broadcast %327 : vector<1x16xf32> to vector<16x16xf32>
    %329 = arith.addf %325, %328 : vector<16x16xf32>
    %330 = vector.extract_strided_slice %294 {offsets = [0, 0], sizes = [8, 16], strides = [1, 1]} : vector<16x16xf32> to vector<8x16xf32>
    %331 = vector.extract_strided_slice %308 {offsets = [0, 0], sizes = [8, 16], strides = [1, 1]} : vector<16x16xf32> to vector<8x16xf32>
    %332 = tpu.transpose %331, [1, 0] : vector<8x16xf32> -> vector<16x8xf32>
    %cst_244 = arith.constant dense<0.000000e+00> : vector<8x8xf32>
    %333 = tpu.matmul %330, %332, %cst_244 {dimension_numbers = #tpu.dot_dimension_numbers<[1], [0], [0], [1], [0, 0, 1, 1], [], []>} : vector<8x16xf32>, vector<16x8xf32>, vector<8x8xf32> -> vector<8x8xf32>
    %cst_245 = arith.constant 2.500000e-01 : f32
    %334 = vector.broadcast %cst_245 : f32 to vector<8x8xf32>
    %335 = arith.mulf %333, %334 : vector<8x8xf32>
    %336 = vector.extract_strided_slice %97 {offsets = [0, 0], sizes = [1, 8], strides = [1, 1]} : vector<2x8xf32> to vector<1x8xf32>
    %337 = vector.broadcast %336 : vector<1x8xf32> to vector<8x8xf32>
    %338 = arith.addf %335, %337 : vector<8x8xf32>
    %339 = vector.extract_strided_slice %301 {offsets = [0, 0], sizes = [8, 16], strides = [1, 1]} : vector<16x16xf32> to vector<8x16xf32>
    %340 = vector.extract_strided_slice %315 {offsets = [0, 0], sizes = [8, 16], strides = [1, 1]} : vector<16x16xf32> to vector<8x16xf32>
    %341 = tpu.transpose %340, [1, 0] : vector<8x16xf32> -> vector<16x8xf32>
    %cst_246 = arith.constant dense<0.000000e+00> : vector<8x8xf32>
    %342 = tpu.matmul %339, %341, %cst_246 {dimension_numbers = #tpu.dot_dimension_numbers<[1], [0], [0], [1], [0, 0, 1, 1], [], []>} : vector<8x16xf32>, vector<16x8xf32>, vector<8x8xf32> -> vector<8x8xf32>
    %cst_247 = arith.constant 2.500000e-01 : f32
    %343 = vector.broadcast %cst_247 : f32 to vector<8x8xf32>
    %344 = arith.mulf %342, %343 : vector<8x8xf32>
    %345 = vector.extract_strided_slice %97 {offsets = [0, 0], sizes = [1, 8], strides = [1, 1]} : vector<2x8xf32> to vector<1x8xf32>
    %346 = vector.broadcast %345 : vector<1x8xf32> to vector<8x8xf32>
    %347 = arith.addf %344, %346 : vector<8x8xf32>
    %348 = vector.extract_strided_slice %294 {offsets = [8, 0], sizes = [8, 16], strides = [1, 1]} : vector<16x16xf32> to vector<8x16xf32>
    %349 = vector.extract_strided_slice %308 {offsets = [8, 0], sizes = [8, 16], strides = [1, 1]} : vector<16x16xf32> to vector<8x16xf32>
    %350 = tpu.transpose %349, [1, 0] : vector<8x16xf32> -> vector<16x8xf32>
    %cst_248 = arith.constant dense<0.000000e+00> : vector<8x8xf32>
    %351 = tpu.matmul %348, %350, %cst_248 {dimension_numbers = #tpu.dot_dimension_numbers<[1], [0], [0], [1], [0, 0, 1, 1], [], []>} : vector<8x16xf32>, vector<16x8xf32>, vector<8x8xf32> -> vector<8x8xf32>
    %cst_249 = arith.constant 2.500000e-01 : f32
    %352 = vector.broadcast %cst_249 : f32 to vector<8x8xf32>
    %353 = arith.mulf %351, %352 : vector<8x8xf32>
    %354 = vector.extract_strided_slice %97 {offsets = [1, 0], sizes = [1, 8], strides = [1, 1]} : vector<2x8xf32> to vector<1x8xf32>
    %355 = vector.broadcast %354 : vector<1x8xf32> to vector<8x8xf32>
    %356 = arith.addf %353, %355 : vector<8x8xf32>
    %357 = vector.extract_strided_slice %301 {offsets = [8, 0], sizes = [8, 16], strides = [1, 1]} : vector<16x16xf32> to vector<8x16xf32>
    %358 = vector.extract_strided_slice %315 {offsets = [8, 0], sizes = [8, 16], strides = [1, 1]} : vector<16x16xf32> to vector<8x16xf32>
    %359 = tpu.transpose %358, [1, 0] : vector<8x16xf32> -> vector<16x8xf32>
    %cst_250 = arith.constant dense<0.000000e+00> : vector<8x8xf32>
    %360 = tpu.matmul %357, %359, %cst_250 {dimension_numbers = #tpu.dot_dimension_numbers<[1], [0], [0], [1], [0, 0, 1, 1], [], []>} : vector<8x16xf32>, vector<16x8xf32>, vector<8x8xf32> -> vector<8x8xf32>
    %cst_251 = arith.constant 2.500000e-01 : f32
    %361 = vector.broadcast %cst_251 : f32 to vector<8x8xf32>
    %362 = arith.mulf %360, %361 : vector<8x8xf32>
    %363 = vector.extract_strided_slice %97 {offsets = [1, 0], sizes = [1, 8], strides = [1, 1]} : vector<2x8xf32> to vector<1x8xf32>
    %364 = vector.broadcast %363 : vector<1x8xf32> to vector<8x8xf32>
    %365 = arith.addf %362, %364 : vector<8x8xf32>
    %366 = tpu.concatenate %338, %347, %356, %365 in 0 : vector<8x8xf32>, vector<8x8xf32>, vector<8x8xf32>, vector<8x8xf32> -> vector<32x8xf32>
    %cst_252 = arith.constant dense<0xFF800000> : vector<32xf32>
    %367 = vector.multi_reduction <maximumf>, %366, %cst_252 [1] : vector<32x8xf32> to vector<32xf32>
    %368 = vector.shape_cast %367 : vector<32xf32> to vector<32x1xf32>
    %369 = vector.broadcast %368 : vector<32x1xf32> to vector<32x8xf32>
    %370 = arith.subf %366, %369 : vector<32x8xf32>
    %371 = math.exp %370 : vector<32x8xf32>
    %cst_253 = arith.constant dense<0.000000e+00> : vector<32xf32>
    %372 = vector.multi_reduction <add>, %371, %cst_253 [1] : vector<32x8xf32> to vector<32xf32>
    %373 = vector.shape_cast %372 : vector<32xf32> to vector<32x1xf32>
    %374 = tpu.reciprocal %373 {approx = true} : vector<32x1xf32> -> vector<32x1xf32>
    %375 = vector.broadcast %374 : vector<32x1xf32> to vector<32x8xf32>
    %376 = arith.mulf %371, %375 : vector<32x8xf32>
    %377 = vector.extract_strided_slice %376 {offsets = [0, 0], sizes = [8, 8], strides = [1, 1]} : vector<32x8xf32> to vector<8x8xf32>
    %378 = vector.extract_strided_slice %322 {offsets = [0, 0], sizes = [8, 16], strides = [1, 1]} : vector<16x16xf32> to vector<8x16xf32>
    %cst_254 = arith.constant dense<0.000000e+00> : vector<8x16xf32>
    %379 = tpu.matmul %377, %378, %cst_254 {dimension_numbers = #tpu.dot_dimension_numbers<[1], [0], [0], [1], [0, 0, 1, 1], [], []>} : vector<8x8xf32>, vector<8x16xf32>, vector<8x16xf32> -> vector<8x16xf32>
    %c0_255 = arith.constant 0 : index
    %c0_256 = arith.constant 0 : index
    %380 = vector.load %arg31[%c0_255, %c0_256] : memref<16x32xf32, #tpu.memory_space<vmem>>, vector<8x16xf32>
    tpu.vector_store %arg31[%c0_255, %c0_256], %379 {strides = array<i32>} : memref<16x32xf32, #tpu.memory_space<vmem>>, vector<8x16xf32>,
    %381 = vector.extract_strided_slice %376 {offsets = [8, 0], sizes = [8, 8], strides = [1, 1]} : vector<32x8xf32> to vector<8x8xf32>
    %382 = vector.extract_strided_slice %329 {offsets = [0, 0], sizes = [8, 16], strides = [1, 1]} : vector<16x16xf32> to vector<8x16xf32>
    %cst_257 = arith.constant dense<0.000000e+00> : vector<8x16xf32>
    %383 = tpu.matmul %381, %382, %cst_257 {dimension_numbers = #tpu.dot_dimension_numbers<[1], [0], [0], [1], [0, 0, 1, 1], [], []>} : vector<8x8xf32>, vector<8x16xf32>, vector<8x16xf32> -> vector<8x16xf32>
    %c0_258 = arith.constant 0 : index
    %c16_259 = arith.constant 16 : index
    %384 = vector.load %arg31[%c0_258, %c16_259] : memref<16x32xf32, #tpu.memory_space<vmem>>, vector<8x16xf32>
    tpu.vector_store %arg31[%c0_258, %c16_259], %383 {strides = array<i32>} : memref<16x32xf32, #tpu.memory_space<vmem>>, vector<8x16xf32>,
    %385 = vector.extract_strided_slice %376 {offsets = [16, 0], sizes = [8, 8], strides = [1, 1]} : vector<32x8xf32> to vector<8x8xf32>
    %386 = vector.extract_strided_slice %322 {offsets = [8, 0], sizes = [8, 16], strides = [1, 1]} : vector<16x16xf32> to vector<8x16xf32>
    %cst_260 = arith.constant dense<0.000000e+00> : vector<8x16xf32>
    %387 = tpu.matmul %385, %386, %cst_260 {dimension_numbers = #tpu.dot_dimension_numbers<[1], [0], [0], [1], [0, 0, 1, 1], [], []>} : vector<8x8xf32>, vector<8x16xf32>, vector<8x16xf32> -> vector<8x16xf32>
    %c8_261 = arith.constant 8 : index
    %c0_262 = arith.constant 0 : index
    %388 = vector.load %arg31[%c8_261, %c0_262] : memref<16x32xf32, #tpu.memory_space<vmem>>, vector<8x16xf32>
    tpu.vector_store %arg31[%c8_261, %c0_262], %387 {strides = array<i32>} : memref<16x32xf32, #tpu.memory_space<vmem>>, vector<8x16xf32>,
    %389 = vector.extract_strided_slice %376 {offsets = [24, 0], sizes = [8, 8], strides = [1, 1]} : vector<32x8xf32> to vector<8x8xf32>
    %390 = vector.extract_strided_slice %329 {offsets = [8, 0], sizes = [8, 16], strides = [1, 1]} : vector<16x16xf32> to vector<8x16xf32>
    %cst_263 = arith.constant dense<0.000000e+00> : vector<8x16xf32>
    %391 = tpu.matmul %389, %390, %cst_263 {dimension_numbers = #tpu.dot_dimension_numbers<[1], [0], [0], [1], [0, 0, 1, 1], [], []>} : vector<8x8xf32>, vector<8x16xf32>, vector<8x16xf32> -> vector<8x16xf32>
    %c8_264 = arith.constant 8 : index
    %c16_265 = arith.constant 16 : index
    %392 = vector.load %arg31[%c8_264, %c16_265] : memref<16x32xf32, #tpu.memory_space<vmem>>, vector<8x16xf32>
    tpu.vector_store %arg31[%c8_264, %c16_265], %391 {strides = array<i32>} : memref<16x32xf32, #tpu.memory_space<vmem>>, vector<8x16xf32>,
    %c0_266 = arith.constant 0 : index
    %c0_267 = arith.constant 0 : index
    %393 = vector.load %arg31[%c0_266, %c0_267] : memref<16x32xf32, #tpu.memory_space<vmem>>, vector<16x32xf32>
    %c1_268 = arith.constant 1 : index
    %c0_269 = arith.constant 0 : index
    %c0_270 = arith.constant 0 : index
    %394 = vector.load %arg15[%c1_268, %c0_269, %c0_270] : memref<2x32x32xf32, #tpu.memory_space<vmem>>, vector<1x32x32xf32>
    %395 = vector.shape_cast %394 : vector<1x32x32xf32> to vector<32x32xf32>
    %cst_271 = arith.constant dense<0.000000e+00> : vector<16x32xf32>
    %396 = tpu.matmul %393, %395, %cst_271 {dimension_numbers = #tpu.dot_dimension_numbers<[1], [0], [0], [1], [0, 0, 1, 1], [], []>} : vector<16x32xf32>, vector<32x32xf32>, vector<16x32xf32> -> vector<16x32xf32>
    %c1_272 = arith.constant 1 : index
    %c0_273 = arith.constant 0 : index
    %c0_274 = arith.constant 0 : index
    %397 = vector.load %arg16[%c1_272, %c0_273, %c0_274] : memref<2x1x32xf32, #tpu.memory_space<vmem>>, vector<1x1x32xf32>
    %398 = vector.shape_cast %397 : vector<1x1x32xf32> to vector<1x32xf32>
    %399 = vector.broadcast %398 : vector<1x32xf32> to vector<16x32xf32>
    %400 = arith.addf %396, %399 : vector<16x32xf32>
    %401 = arith.addf %400, %287 : vector<16x32xf32>
    %c1_275 = arith.constant 1 : index
    %c0_276 = arith.constant 0 : index
    %c0_277 = arith.constant 0 : index
    %402 = vector.load %arg17[%c1_275, %c0_276, %c0_277] : memref<2x1x32xf32, #tpu.memory_space<vmem>>, vector<1x1x32xf32>
    %403 = vector.shape_cast %402 : vector<1x1x32xf32> to vector<1x32xf32>
    %c1_278 = arith.constant 1 : index
    %c0_279 = arith.constant 0 : index
    %c0_280 = arith.constant 0 : index
    %404 = vector.load %arg18[%c1_278, %c0_279, %c0_280] : memref<2x1x32xf32, #tpu.memory_space<vmem>>, vector<1x1x32xf32>
    %405 = vector.shape_cast %404 : vector<1x1x32xf32> to vector<1x32xf32>
    %cst_281 = arith.constant dense<0.000000e+00> : vector<16xf32>
    %406 = vector.multi_reduction <add>, %401, %cst_281 [1] : vector<16x32xf32> to vector<16xf32>
    %407 = vector.shape_cast %406 : vector<16xf32> to vector<16x1xf32>
    %cst_282 = arith.constant 3.200000e+01 : f32
    %408 = vector.broadcast %cst_282 : f32 to vector<16x1xf32>
    %409 = arith.divf %407, %408 : vector<16x1xf32>
    %410 = vector.broadcast %409 : vector<16x1xf32> to vector<16x32xf32>
    %411 = arith.subf %401, %410 : vector<16x32xf32>
    %412 = arith.mulf %411, %411 : vector<16x32xf32>
    %cst_283 = arith.constant dense<0.000000e+00> : vector<16xf32>
    %413 = vector.multi_reduction <add>, %412, %cst_283 [1] : vector<16x32xf32> to vector<16xf32>
    %414 = vector.shape_cast %413 : vector<16xf32> to vector<16x1xf32>
    %cst_284 = arith.constant 3.200000e+01 : f32
    %415 = vector.broadcast %cst_284 : f32 to vector<16x1xf32>
    %416 = arith.divf %414, %415 : vector<16x1xf32>
    %cst_285 = arith.constant 9.99999996E-13 : f32
    %417 = vector.broadcast %cst_285 : f32 to vector<16x1xf32>
    %418 = arith.addf %416, %417 : vector<16x1xf32>
    %419 = math.rsqrt %418 : vector<16x1xf32>
    %420 = vector.broadcast %419 : vector<16x1xf32> to vector<16x32xf32>
    %421 = arith.mulf %411, %420 : vector<16x32xf32>
    %422 = vector.broadcast %403 : vector<1x32xf32> to vector<16x32xf32>
    %423 = arith.mulf %421, %422 : vector<16x32xf32>
    %424 = vector.broadcast %405 : vector<1x32xf32> to vector<16x32xf32>
    %425 = arith.addf %423, %424 : vector<16x32xf32>
    %c1_286 = arith.constant 1 : index
    %c0_287 = arith.constant 0 : index
    %c0_288 = arith.constant 0 : index
    %426 = vector.load %arg19[%c1_286, %c0_287, %c0_288] : memref<2x32x64xf32, #tpu.memory_space<vmem>>, vector<1x32x64xf32>
    %427 = vector.shape_cast %426 : vector<1x32x64xf32> to vector<32x64xf32>
    %cst_289 = arith.constant dense<0.000000e+00> : vector<16x64xf32>
    %428 = tpu.matmul %425, %427, %cst_289 {dimension_numbers = #tpu.dot_dimension_numbers<[1], [0], [0], [1], [0, 0, 1, 1], [], []>} : vector<16x32xf32>, vector<32x64xf32>, vector<16x64xf32> -> vector<16x64xf32>
    %c1_290 = arith.constant 1 : index
    %c0_291 = arith.constant 0 : index
    %c0_292 = arith.constant 0 : index
    %429 = vector.load %arg20[%c1_290, %c0_291, %c0_292] : memref<2x1x64xf32, #tpu.memory_space<vmem>>, vector<1x1x64xf32>
    %430 = vector.shape_cast %429 : vector<1x1x64xf32> to vector<1x64xf32>
    %431 = vector.broadcast %430 : vector<1x64xf32> to vector<16x64xf32>
    %432 = arith.addf %428, %431 : vector<16x64xf32>
    %cst_293 = arith.constant 5.000000e-01 : f32
    %433 = vector.broadcast %cst_293 : f32 to vector<16x64xf32>
    %434 = arith.mulf %433, %432 : vector<16x64xf32>
    %cst_294 = arith.constant 4.471500e-02 : f32
    %435 = vector.broadcast %cst_294 : f32 to vector<16x64xf32>
    %436 = arith.mulf %435, %432 : vector<16x64xf32>
    %437 = arith.mulf %436, %432 : vector<16x64xf32>
    %438 = arith.mulf %437, %432 : vector<16x64xf32>
    %439 = arith.addf %432, %438 : vector<16x64xf32>
    %cst_295 = arith.constant 0.797884583 : f32
    %440 = vector.broadcast %cst_295 : f32 to vector<16x64xf32>
    %441 = arith.mulf %440, %439 : vector<16x64xf32>
    %442 = math.tanh %441 : vector<16x64xf32>
    %cst_296 = arith.constant 1.000000e+00 : f32
    %443 = vector.broadcast %cst_296 : f32 to vector<16x64xf32>
    %444 = arith.addf %443, %442 : vector<16x64xf32>
    %445 = arith.mulf %434, %444 : vector<16x64xf32>
    %c1_297 = arith.constant 1 : index
    %c0_298 = arith.constant 0 : index
    %c0_299 = arith.constant 0 : index
    %446 = vector.load %arg21[%c1_297, %c0_298, %c0_299] : memref<2x64x32xf32, #tpu.memory_space<vmem>>, vector<1x64x32xf32>
    %447 = vector.shape_cast %446 : vector<1x64x32xf32> to vector<64x32xf32>
    %cst_300 = arith.constant dense<0.000000e+00> : vector<16x32xf32>
    %448 = tpu.matmul %445, %447, %cst_300 {dimension_numbers = #tpu.dot_dimension_numbers<[1], [0], [0], [1], [0, 0, 1, 1], [], []>} : vector<16x64xf32>, vector<64x32xf32>, vector<16x32xf32> -> vector<16x32xf32>
    %c1_301 = arith.constant 1 : index
    %c0_302 = arith.constant 0 : index
    %c0_303 = arith.constant 0 : index
    %449 = vector.load %arg22[%c1_301, %c0_302, %c0_303] : memref<2x1x32xf32, #tpu.memory_space<vmem>>, vector<1x1x32xf32>
    %450 = vector.shape_cast %449 : vector<1x1x32xf32> to vector<1x32xf32>
    %451 = vector.broadcast %450 : vector<1x32xf32> to vector<16x32xf32>
    %452 = arith.addf %448, %451 : vector<16x32xf32>
    %453 = arith.addf %452, %425 : vector<16x32xf32>
    %c1_304 = arith.constant 1 : index
    %c0_305 = arith.constant 0 : index
    %c0_306 = arith.constant 0 : index
    %454 = vector.load %arg23[%c1_304, %c0_305, %c0_306] : memref<2x1x32xf32, #tpu.memory_space<vmem>>, vector<1x1x32xf32>
    %455 = vector.shape_cast %454 : vector<1x1x32xf32> to vector<1x32xf32>
    %c1_307 = arith.constant 1 : index
    %c0_308 = arith.constant 0 : index
    %c0_309 = arith.constant 0 : index
    %456 = vector.load %arg24[%c1_307, %c0_308, %c0_309] : memref<2x1x32xf32, #tpu.memory_space<vmem>>, vector<1x1x32xf32>
    %457 = vector.shape_cast %456 : vector<1x1x32xf32> to vector<1x32xf32>
    %cst_310 = arith.constant dense<0.000000e+00> : vector<16xf32>
    %458 = vector.multi_reduction <add>, %453, %cst_310 [1] : vector<16x32xf32> to vector<16xf32>
    %459 = vector.shape_cast %458 : vector<16xf32> to vector<16x1xf32>
    %cst_311 = arith.constant 3.200000e+01 : f32
    %460 = vector.broadcast %cst_311 : f32 to vector<16x1xf32>
    %461 = arith.divf %459, %460 : vector<16x1xf32>
    %462 = vector.broadcast %461 : vector<16x1xf32> to vector<16x32xf32>
    %463 = arith.subf %453, %462 : vector<16x32xf32>
    %464 = arith.mulf %463, %463 : vector<16x32xf32>
    %cst_312 = arith.constant dense<0.000000e+00> : vector<16xf32>
    %465 = vector.multi_reduction <add>, %464, %cst_312 [1] : vector<16x32xf32> to vector<16xf32>
    %466 = vector.shape_cast %465 : vector<16xf32> to vector<16x1xf32>
    %cst_313 = arith.constant 3.200000e+01 : f32
    %467 = vector.broadcast %cst_313 : f32 to vector<16x1xf32>
    %468 = arith.divf %466, %467 : vector<16x1xf32>
    %cst_314 = arith.constant 9.99999996E-13 : f32
    %469 = vector.broadcast %cst_314 : f32 to vector<16x1xf32>
    %470 = arith.addf %468, %469 : vector<16x1xf32>
    %471 = math.rsqrt %470 : vector<16x1xf32>
    %472 = vector.broadcast %471 : vector<16x1xf32> to vector<16x32xf32>
    %473 = arith.mulf %463, %472 : vector<16x32xf32>
    %474 = vector.broadcast %455 : vector<1x32xf32> to vector<16x32xf32>
    %475 = arith.mulf %473, %474 : vector<16x32xf32>
    %476 = vector.broadcast %457 : vector<1x32xf32> to vector<16x32xf32>
    %477 = arith.addf %475, %476 : vector<16x32xf32>
    %478 = vector.extract_strided_slice %477 {offsets = [0, 0], sizes = [1, 32], strides = [1, 1]} : vector<16x32xf32> to vector<1x32xf32>
    %479 = vector.extract_strided_slice %477 {offsets = [8, 0], sizes = [1, 32], strides = [1, 1]} : vector<16x32xf32> to vector<1x32xf32>
    %480 = tpu.concatenate %478, %479 in 0 : vector<1x32xf32>, vector<1x32xf32> -> vector<2x32xf32>
    %c0_315 = arith.constant 0 : index
    %c0_316 = arith.constant 0 : index
    %481 = vector.load %arg25[%c0_315, %c0_316] : memref<32x32xf32, #tpu.memory_space<vmem>>, vector<32x32xf32>
    %cst_317 = arith.constant dense<0.000000e+00> : vector<2x32xf32>
    %482 = tpu.matmul %480, %481, %cst_317 {dimension_numbers = #tpu.dot_dimension_numbers<[1], [0], [0], [1], [0, 0, 1, 1], [], []>} : vector<2x32xf32>, vector<32x32xf32>, vector<2x32xf32> -> vector<2x32xf32>
    %c0_318 = arith.constant 0 : index
    %c0_319 = arith.constant 0 : index
    %483 = vector.load %arg26[%c0_318, %c0_319] : memref<1x32xf32, #tpu.memory_space<vmem>>, vector<1x32xf32>
    %484 = vector.broadcast %483 : vector<1x32xf32> to vector<2x32xf32>
    %485 = arith.addf %482, %484 : vector<2x32xf32>
    %486 = math.tanh %485 : vector<2x32xf32>
    %c0_320 = arith.constant 0 : index
    %c0_321 = arith.constant 0 : index
    %487 = vector.load %arg27[%c0_320, %c0_321] : memref<32x16xf32, #tpu.memory_space<vmem>>, vector<32x16xf32>
    %cst_322 = arith.constant dense<0.000000e+00> : vector<2x16xf32>
    %488 = tpu.matmul %486, %487, %cst_322 {dimension_numbers = #tpu.dot_dimension_numbers<[1], [0], [0], [1], [0, 0, 1, 1], [], []>} : vector<2x32xf32>, vector<32x16xf32>, vector<2x16xf32> -> vector<2x16xf32>
    %c0_323 = arith.constant 0 : index
    %c0_324 = arith.constant 0 : index
    %489 = vector.load %arg28[%c0_323, %c0_324] : memref<1x16xf32, #tpu.memory_space<vmem>>, vector<1x16xf32>
    %490 = vector.broadcast %489 : vector<1x16xf32> to vector<2x16xf32>
    %491 = arith.addf %488, %490 : vector<2x16xf32>
    %cst_325 = arith.constant 0.000000e+00 : f32
    %492 = vector.broadcast %cst_325 : f32 to vector<2x16xf32>
    %493 = arith.maximumf %491, %492 : vector<2x16xf32>
    %c0_326 = arith.constant 0 : index
    %c0_327 = arith.constant 0 : index
    %494 = vector.load %arg29[%c0_326, %c0_327] : memref<2x16xf32, #tpu.memory_space<vmem>>, vector<2x16xf32>
    tpu.vector_store %arg29[%c0_326, %c0_327], %493 {strides = array<i32>} : memref<2x16xf32, #tpu.memory_space<vmem>>, vector<2x16xf32>,
    return
  }
  func.func @transform_0(%arg0: i32) -> i32 {
    %c0_i32 = arith.constant 0 : i32
    %c0_i32_0 = arith.constant 0 : i32
    return %c0_i32 : i32
  }
  func.func @transform_1(%arg0: i32) -> i32 {
    %c0_i32 = arith.constant 0 : i32
    %c0_i32_0 = arith.constant 0 : i32
    return %c0_i32 : i32
  }
  func.func @transform_2(%arg0: i32) -> (i32, i32) {
    %c0_i32 = arith.constant 0 : i32
    %c0_i32_0 = arith.constant 0 : i32
    %c0_i32_1 = arith.constant 0 : i32
    return %c0_i32, %c0_i32_0 : i32, i32
  }
  func.func @transform_3(%arg0: i32) -> (i32, i32) {
    %c0_i32 = arith.constant 0 : i32
    %c0_i32_0 = arith.constant 0 : i32
    %c0_i32_1 = arith.constant 0 : i32
    return %c0_i32, %c0_i32_0 : i32, i32
  }
  func.func @transform_4(%arg0: i32) -> (i32, i32) {
    %c0_i32 = arith.constant 0 : i32
    %c0_i32_0 = arith.constant 0 : i32
    %c0_i32_1 = arith.constant 0 : i32
    return %c0_i32, %c0_i32_0 : i32, i32
  }
  func.func @transform_5(%arg0: i32) -> (i32, i32) {
    %c0_i32 = arith.constant 0 : i32
    %c0_i32_0 = arith.constant 0 : i32
    %c0_i32_1 = arith.constant 0 : i32
    return %c0_i32, %c0_i32_0 : i32, i32
  }
  func.func @transform_6(%arg0: i32) -> (i32, i32) {
    %c0_i32 = arith.constant 0 : i32
    %c0_i32_0 = arith.constant 0 : i32
    %c0_i32_1 = arith.constant 0 : i32
    return %c0_i32, %c0_i32_0 : i32, i32
  }
  func.func @transform_7(%arg0: i32) -> (i32, i32) {
    %c0_i32 = arith.constant 0 : i32
    %c0_i32_0 = arith.constant 0 : i32
    %c0_i32_1 = arith.constant 0 : i32
    return %c0_i32, %c0_i32_0 : i32, i32
  }
  func.func @transform_8(%arg0: i32) -> (i32, i32, i32, i32) {
    %c0_i32 = arith.constant 0 : i32
    %c0_i32_0 = arith.constant 0 : i32
    %c0_i32_1 = arith.constant 0 : i32
    %c0_i32_2 = arith.constant 0 : i32
    %c0_i32_3 = arith.constant 0 : i32
    return %c0_i32, %c0_i32_0, %c0_i32_1, %c0_i32_2 : i32, i32, i32, i32
  }
  func.func @transform_9(%arg0: i32) -> (i32, i32, i32, i32) {
    %c0_i32 = arith.constant 0 : i32
    %c0_i32_0 = arith.constant 0 : i32
    %c0_i32_1 = arith.constant 0 : i32
    %c0_i32_2 = arith.constant 0 : i32
    %c0_i32_3 = arith.constant 0 : i32
    return %c0_i32, %c0_i32_0, %c0_i32_1, %c0_i32_2 : i32, i32, i32, i32
  }
  func.func @transform_10(%arg0: i32) -> (i32, i32, i32, i32) {
    %c0_i32 = arith.constant 0 : i32
    %c0_i32_0 = arith.constant 0 : i32
    %c0_i32_1 = arith.constant 0 : i32
    %c0_i32_2 = arith.constant 0 : i32
    %c0_i32_3 = arith.constant 0 : i32
    return %c0_i32, %c0_i32_0, %c0_i32_1, %c0_i32_2 : i32, i32, i32, i32
  }
  func.func @transform_11(%arg0: i32) -> (i32, i32, i32, i32) {
    %c0_i32 = arith.constant 0 : i32
    %c0_i32_0 = arith.constant 0 : i32
    %c0_i32_1 = arith.constant 0 : i32
    %c0_i32_2 = arith.constant 0 : i32
    %c0_i32_3 = arith.constant 0 : i32
    return %c0_i32, %c0_i32_0, %c0_i32_1, %c0_i32_2 : i32, i32, i32, i32
  }
  func.func @transform_12(%arg0: i32) -> (i32, i32, i32, i32) {
    %c0_i32 = arith.constant 0 : i32
    %c0_i32_0 = arith.constant 0 : i32
    %c0_i32_1 = arith.constant 0 : i32
    %c0_i32_2 = arith.constant 0 : i32
    %c0_i32_3 = arith.constant 0 : i32
    return %c0_i32, %c0_i32_0, %c0_i32_1, %c0_i32_2 : i32, i32, i32, i32
  }
  func.func @transform_13(%arg0: i32) -> (i32, i32, i32, i32) {
    %c0_i32 = arith.constant 0 : i32
    %c0_i32_0 = arith.constant 0 : i32
    %c0_i32_1 = arith.constant 0 : i32
    %c0_i32_2 = arith.constant 0 : i32
    %c0_i32_3 = arith.constant 0 : i32
    return %c0_i32, %c0_i32_0, %c0_i32_1, %c0_i32_2 : i32, i32, i32, i32
  }
  func.func @transform_14(%arg0: i32) -> (i32, i32, i32) {
    %c0_i32 = arith.constant 0 : i32
    %c0_i32_0 = arith.constant 0 : i32
    %c0_i32_1 = arith.constant 0 : i32
    %c0_i32_2 = arith.constant 0 : i32
    return %c0_i32, %c0_i32_0, %c0_i32_1 : i32, i32, i32
  }
  func.func @transform_15(%arg0: i32) -> (i32, i32, i32) {
    %c0_i32 = arith.constant 0 : i32
    %c0_i32_0 = arith.constant 0 : i32
    %c0_i32_1 = arith.constant 0 : i32
    %c0_i32_2 = arith.constant 0 : i32
    return %c0_i32, %c0_i32_0, %c0_i32_1 : i32, i32, i32
  }
  func.func @transform_16(%arg0: i32) -> (i32, i32, i32) {
    %c0_i32 = arith.constant 0 : i32
    %c0_i32_0 = arith.constant 0 : i32
    %c0_i32_1 = arith.constant 0 : i32
    %c0_i32_2 = arith.constant 0 : i32
    return %c0_i32, %c0_i32_0, %c0_i32_1 : i32, i32, i32
  }
  func.func @transform_17(%arg0: i32) -> (i32, i32, i32) {
    %c0_i32 = arith.constant 0 : i32
    %c0_i32_0 = arith.constant 0 : i32
    %c0_i32_1 = arith.constant 0 : i32
    %c0_i32_2 = arith.constant 0 : i32
    return %c0_i32, %c0_i32_0, %c0_i32_1 : i32, i32, i32
  }
  func.func @transform_18(%arg0: i32) -> (i32, i32, i32) {
    %c0_i32 = arith.constant 0 : i32
    %c0_i32_0 = arith.constant 0 : i32
    %c0_i32_1 = arith.constant 0 : i32
    %c0_i32_2 = arith.constant 0 : i32
    return %c0_i32, %c0_i32_0, %c0_i32_1 : i32, i32, i32
  }
  func.func @transform_19(%arg0: i32) -> (i32, i32, i32) {
    %c0_i32 = arith.constant 0 : i32
    %c0_i32_0 = arith.constant 0 : i32
    %c0_i32_1 = arith.constant 0 : i32
    %c0_i32_2 = arith.constant 0 : i32
    return %c0_i32, %c0_i32_0, %c0_i32_1 : i32, i32, i32
  }
  func.func @transform_20(%arg0: i32) -> (i32, i32, i32) {
    %c0_i32 = arith.constant 0 : i32
    %c0_i32_0 = arith.constant 0 : i32
    %c0_i32_1 = arith.constant 0 : i32
    %c0_i32_2 = arith.constant 0 : i32
    return %c0_i32, %c0_i32_0, %c0_i32_1 : i32, i32, i32
  }
  func.func @transform_21(%arg0: i32) -> (i32, i32, i32) {
    %c0_i32 = arith.constant 0 : i32
    %c0_i32_0 = arith.constant 0 : i32
    %c0_i32_1 = arith.constant 0 : i32
    %c0_i32_2 = arith.constant 0 : i32
    return %c0_i32, %c0_i32_0, %c0_i32_1 : i32, i32, i32
  }
  func.func @transform_22(%arg0: i32) -> (i32, i32, i32) {
    %c0_i32 = arith.constant 0 : i32
    %c0_i32_0 = arith.constant 0 : i32
    %c0_i32_1 = arith.constant 0 : i32
    %c0_i32_2 = arith.constant 0 : i32
    return %c0_i32, %c0_i32_0, %c0_i32_1 : i32, i32, i32
  }
  func.func @transform_23(%arg0: i32) -> (i32, i32, i32) {
    %c0_i32 = arith.constant 0 : i32
    %c0_i32_0 = arith.constant 0 : i32
    %c0_i32_1 = arith.constant 0 : i32
    %c0_i32_2 = arith.constant 0 : i32
    return %c0_i32, %c0_i32_0, %c0_i32_1 : i32, i32, i32
  }
  func.func @transform_24(%arg0: i32) -> (i32, i32) {
    %c0_i32 = arith.constant 0 : i32
    %c0_i32_0 = arith.constant 0 : i32
    %c0_i32_1 = arith.constant 0 : i32
    return %c0_i32, %c0_i32_0 : i32, i32
  }
  func.func @transform_25(%arg0: i32) -> (i32, i32) {
    %c0_i32 = arith.constant 0 : i32
    %c0_i32_0 = arith.constant 0 : i32
    %c0_i32_1 = arith.constant 0 : i32
    return %c0_i32, %c0_i32_0 : i32, i32
  }
  func.func @transform_26(%arg0: i32) -> (i32, i32) {
    %c0_i32 = arith.constant 0 : i32
    %c0_i32_0 = arith.constant 0 : i32
    %c0_i32_1 = arith.constant 0 : i32
    return %c0_i32, %c0_i32_0 : i32, i32
  }
  func.func @transform_27(%arg0: i32) -> (i32, i32) {
    %c0_i32 = arith.constant 0 : i32
    %c0_i32_0 = arith.constant 0 : i32
    %c0_i32_1 = arith.constant 0 : i32
    return %c0_i32, %c0_i32_0 : i32, i32
  }
  func.func @transform_28(%arg0: i32) -> (i32, i32) {
    %c0_i32 = arith.constant 0 : i32
    %c0_i32_0 = arith.constant 0 : i32
    %c0_i32_1 = arith.constant 0 : i32
    return %c0_i32, %c0_i32_0 : i32, i32
  }
}

</mosaic_0001>

<bundles_post_ra>
// kernel: tpu_custom_call.1
= control target key start
LH: loop header
LB: loop body
LE: loop exit
PB: predicated region body
PF: predicated region fallthrough
CT: control target
= control target key end

     0   :  { %s5202_s0 = inlined_call_operand.<no memory space> [shape: s32[1], index: 0, kind: input, shape index: {}]   ;;  %s5203_s1 = inlined_call_operand.vmem [shape: s32[16], index: 1, kind: input, shape index: {}]   ;;  %s5204_s2 = inlined_call_operand.vmem [shape: f32[2,8], index: 2, kind: input, shape index: {}]   ;;  %s5205_s3 = inlined_call_operand.vmem [shape: f32[104,32], index: 3, kind: input, shape index: {}]   ;;  %s5206_s4 = inlined_call_operand.vmem [shape: f32[8,32], index: 4, kind: input, shape index: {}]   ;;  %s5207_s5 = inlined_call_operand.vmem [shape: f32[1,32], index: 5, kind: input, shape index: {}]   ;;  %s5208_s6 = inlined_call_operand.vmem [shape: f32[1,32], index: 6, kind: input, shape index: {}]   ;;  %s5209_s7 = inlined_call_operand.vmem [shape: f32[1,32], index: 7, kind: input, shape index: {}]   ;;  %s5210_s8 = inlined_call_operand.vmem [shape: f32[2,2,32,16], index: 8, kind: input, shape index: {}]   ;;  %s5211_s9 = inlined_call_operand.vmem [shape: f32[2,2,32,16], index: 9, kind: input, shape index: {}]   ;;  %s5212_s10 = inlined_call_operand.vmem [shape: f32[2,2,32,16], index: 10, kind: input, shape index: {}]   ;;  %s5213_s11 = inlined_call_operand.vmem [shape: f32[2,2,1,16], index: 11, kind: input, shape index: {}]   ;;  %s5214_s12 = inlined_call_operand.vmem [shape: f32[2,2,1,16], index: 12, kind: input, shape index: {}]   ;;  %s5215_s13 = inlined_call_operand.vmem [shape: f32[2,2,1,16], index: 13, kind: input, shape index: {}]   ;;  %s5216_s14 = inlined_call_operand.vmem [shape: f32[2,32,32], index: 14, kind: input, shape index: {}]   ;;  %s5217_s15 = inlined_call_operand.vmem [shape: f32[2,1,32], index: 15, kind: input, shape index: {}]   ;;  %s5218_s16 = inlined_call_operand.vmem [shape: f32[2,1,32], index: 16, kind: input, shape index: {}]   ;;  %s5219_s17 = inlined_call_operand.vmem [shape: f32[2,1,32], index: 17, kind: input, shape index: {}]   ;;  %s5220_s18 = inlined_call_operand.vmem [shape: f32[2,32,64], index: 18, kind: input, shape index: {}]   ;;  %s5221_s19 = inlined_call_operand.vmem [shape: f32[2,1,64], index: 19, kind: input, shape index: {}]   ;;  %s5222_s20 = inlined_call_operand.vmem [shape: f32[2,64,32], index: 20, kind: input, shape index: {}]   ;;  %s5223_s21 = inlined_call_operand.vmem [shape: f32[2,1,32], index: 21, kind: input, shape index: {}]   ;;  %s5224_s22 = inlined_call_operand.vmem [shape: f32[2,1,32], index: 22, kind: input, shape index: {}]   ;;  %s5225_s23 = inlined_call_operand.vmem [shape: f32[2,1,32], index: 23, kind: input, shape index: {}]   ;;  %s5226_s24 = inlined_call_operand.vmem [shape: f32[32,32], index: 24, kind: input, shape index: {}]   ;;  %s5227_s25 = inlined_call_operand.vmem [shape: f32[1,32], index: 25, kind: input, shape index: {}]   ;;  %s5228_s26 = inlined_call_operand.vmem [shape: f32[32,16], index: 26, kind: input, shape index: {}]   ;;  %s5229_s27 = inlined_call_operand.vmem [shape: f32[1,16], index: 27, kind: input, shape index: {}]   ;;  %s5230_s28 = inlined_call_operand.hbm [shape: f32[2,16], index: 28, kind: output, shape index: {}]  }
   0x1   :  { %5238 = sst [smem:[#allocation11_spill]] %s5203_s1 }
   0x2   :  { %5239 = sst [smem:[#allocation12_spill]] %s5204_s2 }
   0x3   :  { %5240 = sst [smem:[#allocation13_spill]] %s5205_s3 }
   0x4   :  { %5241 = sst [smem:[#allocation14_spill]] %s5206_s4 }
   0x5   :  { %5242 = sst [smem:[#allocation15_spill]] %s5207_s5 }
   0x6   :  { %5243 = sst [smem:[#allocation16_spill]] %s5208_s6 }
   0x7   :  { %5244 = sst [smem:[#allocation17_spill]] %s5209_s7 }
   0x8   :  { %5245 = sst [smem:[#allocation18_spill]] %s5210_s8 }
   0x9   :  { %5246 = sst [smem:[#allocation19_spill]] %s5211_s9 }
   0xa   :  { %5247 = sst [smem:[#allocation20_spill]] %s5212_s10 }
   0xb   :  { %5248 = sst [smem:[#allocation21_spill]] %s5213_s11 }
   0xc   :  { %5249 = sst [smem:[#allocation22_spill]] %s5214_s12 }
   0xd   :  { %5250 = sst [smem:[#allocation23_spill]] %s5227_s25 }
   0xe   :  { %5251 = sst [smem:[#allocation24_spill]] %s5228_s26 }
   0xf   :  { %5252 = sst [smem:[#allocation25_spill]] %s5229_s27 }
  0x10   :  { %5253 = sst [smem:[#allocation26_spill]] %s5230_s28 }
  0x11   :  { %34 = vsyncpa [#allocation7], 0 }
  0x12   :  { %35 = vsyncpa [#allocation6], 0  ;;  %s5254_s9 = sld [smem:[#allocation11_spill]] }
  0x18   :  { %s44_s30 = sshll.u32 %s5254_s9, 4  ;;  %s45_s30 = int_to_ptr.vmem [resolvable:$true] %s44_s30 }
  0x19   :  { %s4345_s3 = scalar_lea.vmem %s45_s30, 16  ;;  %p4350_p1 = scmp.lt.s32.totalorder %s45_s30, %s45_s30 }
  0x1a   :  { %p4346_p0 = scmp.ne.s32.totalorder %s45_s30, %s4345_s3  ;;  %p4351_p2 = scmp.lt.s32.totalorder %s4345_s3, %s4345_s3 }
  0x1c   :  { %p4352_p3 = por %p4351_p2, %p4350_p1 }
  0x1e   :  { %p4353_p4 = pnand %p4352_p3, %p4346_p0 }
  0x20   :  { %4356 = shalt.err (!%p4353_p4)
}
  0x21   :  { %s4381_s6 = smov [#allocation5]  }
  0x22   :  { %47 = dma.vmem_to_smem %s45_s30, 16, %s4381_s6, [#allocation7]  }
  0x23   :  { %4377 = dma.done.wait [#allocation7], 16  }
  0x24   :  { %4378 = vsyncadd [#allocation7], 4294967280 }
  0x25   :  { %103 = sfence }
  0x26   :  { %s104_s10 = sld [smem:[#allocation5]]  ;;  %vm107_vm0 = vcmask 253952   ;;  %vm185_vm1 = vcmask 261120   ;;  %vm4383_vm2 = vmmov 0   ;;  %vm760_vm3 = vcmask 130048   ;;  %s4384_s27 = smov 16  }
  0x27   :  { %s3628_s0 = sld [smem:[#allocation5 + $0x1]]  ;;  %vm1081_vm4 = vcmask 64512   ;;  %vm1277_vm5 = vcmask 261248   ;;  %vm1696_vm6 = vcmask 523264   ;;  %vm3423_vm7 = vcmask 1040384  }
  0x28   :  { %s3629_s11 = sld [smem:[#allocation5 + $0x2]]  ;;  %vm3595_vm8 = vcmask 123904  }
  0x29   :  { %s3630_s29 = sld [smem:[#allocation5 + $0x3]] }
  0x2a   :  { %s3631_s2 = sld [smem:[#allocation5 + $0x4]] }
  0x2b   :  { %s3632_s7 = sld [smem:[#allocation5 + $0x5]] }
  0x2c   :  { %s5255_s4 = sld [smem:[#allocation13_spill]] }
  0x2d   :  { %s3633_s5 = sld [smem:[#allocation5 + $0x6]] }
  0x2e   :  { %s3634_s6 = sld [smem:[#allocation5 + $0x7]] }
  0x2f   :  { %s3635_s26 = sld [smem:[#allocation5 + $0x8]] }
  0x32   :  { %s105_s8 = scalar_lea.vmem %s5255_s4, %s104_s10  ;;  %s110_s30 = scalar_lea.vmem %s5255_s4, %s3628_s0 }
  0x33   :  { %v106_v0 = vld [vmem:[%s105_s8] sm:$0x1]  ;;  %s114_s25 = scalar_lea.vmem %s5255_s4, %s3629_s11  ;;  %s118_s1 = scalar_lea.vmem %s5255_s4, %s3630_s29 }
  0x34   :  { %108 = vst.msk [vmem:[#allocation2] sm:$0x1] %vm107_vm0, %v106_v0  ;;  %v111_v1 = vld [vmem:[%s110_s30] sm:$0x1]  ;;  %s3636_s8 = sld [smem:[#allocation5 + $0x9]]  ;;  %s122_s3 = scalar_lea.vmem %s5255_s4, %s3631_s2 }
  0x35   :  { %112 = vst.msk [vmem:[#allocation2 + $0x1] sm:$0x1] %vm107_vm0, %v111_v1  ;;  %v115_v2 = vld [vmem:[%s114_s25] sm:$0x1]  ;;  %s3637_s30 = sld [smem:[#allocation5 + $0xa]]  ;;  %s126_s25 = scalar_lea.vmem %s5255_s4, %s3632_s7 }
  0x36   :  { %116 = vst.msk [vmem:[#allocation2 + $0x2] sm:$0x1] %vm107_vm0, %v115_v2  ;;  %v119_v3 = vld [vmem:[%s118_s1] sm:$0x1]  ;;  %s3638_s11 = sld [smem:[#allocation5 + $0xb]]  ;;  %s130_s10 = scalar_lea.vmem %s5255_s4, %s3633_s5 }
  0x37   :  { %120 = vst.msk [vmem:[#allocation2 + $0x3] sm:$0x1] %vm107_vm0, %v119_v3  ;;  %v123_v4 = vld [vmem:[%s122_s3] sm:$0x1]  ;;  %s3639_s1 = sld [smem:[#allocation5 + $0xc]]  ;;  %s134_s9 = scalar_lea.vmem %s5255_s4, %s3634_s6 }
  0x38   :  { %124 = vst.msk [vmem:[#allocation2 + $0x4] sm:$0x1] %vm107_vm0, %v123_v4  ;;  %v127_v5 = vld [vmem:[%s126_s25] sm:$0x1]  ;;  %s3640_s3 = sld [smem:[#allocation5 + $0xd]]  ;;  %s138_s28 = scalar_lea.vmem %s5255_s4, %s3635_s26 }
  0x39   :  { %128 = vst.msk [vmem:[#allocation2 + $0x5] sm:$0x1] %vm107_vm0, %v127_v5  ;;  %v131_v6 = vld [vmem:[%s130_s10] sm:$0x1]  ;;  %s3641_s25 = sld [smem:[#allocation5 + $0xe]] }
  0x3a   :  { %132 = vst.msk [vmem:[#allocation2 + $0x6] sm:$0x1] %vm107_vm0, %v131_v6  ;;  %v135_v7 = vld [vmem:[%s134_s9] sm:$0x1]  ;;  %s142_s12 = scalar_lea.vmem %s5255_s4, %s3636_s8  ;;  %s3642_s10 = sld [smem:[#allocation5 + $0xf]] }
  0x3b   :  { %136 = vst.msk [vmem:[#allocation2 + $0x7] sm:$0x1] %vm107_vm0, %v135_v7  ;;  %v139_v8 = vld [vmem:[%s138_s28] sm:$0x1]  ;;  %s146_s0 = scalar_lea.vmem %s5255_s4, %s3637_s30  ;;  %s5256_s2 = sld [smem:[#allocation14_spill]] }
  0x3c   :  { %140 = vst.msk [vmem:[#allocation2 + $0x8] sm:$0x1] %vm107_vm0, %v139_v8  ;;  %v143_v9 = vld [vmem:[%s142_s12] sm:$0x1]  ;;  %s150_s7 = scalar_lea.vmem %s5255_s4, %s3638_s11  ;;  %s5257_s8 = sld [smem:[#allocation15_spill]] }
  0x3d   :  { %144 = vst.msk [vmem:[#allocation2 + $0x9] sm:$0x1] %vm107_vm0, %v143_v9  ;;  %v147_v10 = vld [vmem:[%s146_s0] sm:$0x1]  ;;  %s154_s28 = scalar_lea.vmem %s5255_s4, %s3639_s1  ;;  %s5262_s12 = sld [smem:[#allocation20_spill]] }
  0x3e   :  { %148 = vst.msk [vmem:[#allocation2 + $0xa] sm:$0x1] %vm107_vm0, %v147_v10  ;;  %v151_v11 = vld [vmem:[%s150_s7] sm:$0x1]  ;;  %s158_s30 = scalar_lea.vmem %s5255_s4, %s3640_s3  ;;  %s5263_s6 = sld [smem:[#allocation22_spill]] }
  0x3f   :  { %152 = vst.msk [vmem:[#allocation2 + $0xb] sm:$0x1] %vm107_vm0, %v151_v11  ;;  %v155_v12 = vld [vmem:[%s154_s28] sm:$0x1]  ;;  %s162_s26 = scalar_lea.vmem %s5255_s4, %s3641_s25  ;;  %s5264_s1 = sld [smem:[#allocation21_spill]] }
  0x40   :  { %156 = vst.msk [vmem:[#allocation2 + $0xc] sm:$0x1] %vm107_vm0, %v155_v12  ;;  %v159_v14 = vld [vmem:[%s158_s30] sm:$0x1]  ;;  %s166_s7 = scalar_lea.vmem %s5255_s4, %s3642_s10  ;;  %s5258_s10 = sld [smem:[#allocation18_spill]]  ;;  %v4382_v12 = vmov 0.0  }
  0x41   :  { %v169_v13 = vld [vmem:[%s5256_s2] sm:$0xff]  ;;  %160 = vst.msk [vmem:[#allocation2 + $0xd] sm:$0x1] %vm107_vm0, %v159_v14  ;;  %s5259_s4 = sld [smem:[#allocation19_spill]]  ;;  %s4385_s0 = smov [#allocation8]  }
  0x42   :  { %v163_v15 = vld [vmem:[%s162_s26] sm:$0x1]  ;;  %s5260_s30 = sld [smem:[#allocation16_spill]] }
  0x43   :  { %v170_v16 = vld [vmem:[#allocation2] sm:$0xff]  ;;  %164 = vst.msk [vmem:[#allocation2 + $0xe] sm:$0x1] %vm107_vm0, %v163_v15  ;;  %s5261_s2 = sld [smem:[#allocation17_spill]]  ;;  %v589_v4 = vld [vmem:[%s5262_s12 + $0x18] sm:$0xff]  ;;  %v588_v6 = vld [vmem:[%s5262_s12 + $0x10] sm:$0xff] }
  0x44   :  { %v3643_v17 = vld [vmem:[%s5257_s8] ss:$0 sm:$0xff]  ;;  %v172_v19 = vadd.f32 %v170_v16, %v169_v13  ;;  %v3674_v5 = vld [vmem:[%s5262_s12 + $0x38] sm:$0xff]  ;;  %v3673_v7 = vld [vmem:[%s5262_s12 + $0x30] sm:$0xff]  ;;  %s5265_s29 = sld [smem:[#allocation12_spill]] }
  0x45   :  { %v167_v18 = vld [vmem:[%s166_s7] sm:$0x1]  ;;  %v587_v8 = vld [vmem:[%s5262_s12 + $0x8] sm:$0xff] }
  0x46   :  { %168 = vst.msk [vmem:[#allocation2 + $0xf] sm:$0x1] %vm107_vm0, %v167_v18  ;;  %v181_v20 = vadd.f32 %v3643_v17, %v172_v19  ;;  %v235_v36 = vld [vmem:[%s5258_s10 + $0x18] sm:$0xff]  ;;  %v234_v38 = vld [vmem:[%s5258_s10 + $0x10] sm:$0xff]  ;;  %v233_v40 = vld [vmem:[%s5258_s10 + $0x8] sm:$0xff] }
  0x47   :  { %v3652_v37 = vld [vmem:[%s5258_s10 + $0x38] sm:$0xff]  ;;  %3962 = vmatprep.subr.mxu0 %v235_v36  ;;  %v3651_v39 = vld [vmem:[%s5258_s10 + $0x30] sm:$0xff]  ;;  %v3650_v41 = vld [vmem:[%s5258_s10 + $0x28] sm:$0xff] }
  0x48   :  { %v186_v21 = vsel %vm185_vm1, %v181_v20, 0.0  ;;  %3973 = vmatprep.subr.mxu1 %v3652_v37  ;;  %3963 = vmatpush3.msra.mxu0 %v235_v36  ;;  %v232_v42 = vld [vmem:[%s5258_s10] sm:$0xff]  ;;  %v415_v44 = vld [vmem:[%s5259_s4 + $0x18] sm:$0xff]  ;;  %v414_v62 = vld [vmem:[%s5259_s4 + $0x10] sm:$0xff] }
  0x49   :  { %187 = vadd.xlane.f32.xlu0 %v186_v21  ;;  %3974 = vmatpush3.msra.mxu1 %v3652_v37  ;;  %v3649_v43 = vld [vmem:[%s5258_s10 + $0x20] sm:$0xff]  ;;  %v3663_v45 = vld [vmem:[%s5259_s4 + $0x38] sm:$0xff]  ;;  %v3662_v63 = vld [vmem:[%s5259_s4 + $0x30] sm:$0xff] }
  0x4a   :  { %3964 = vmatprep.subr.mxu0 %v234_v38  ;;  %3975 = vmatprep.subr.mxu1 %v3651_v39  ;;  %v3644_v53 = vld [vmem:[%s5260_s30] ss:$0 sm:$0xff]  ;;  %v413_v0 = vld [vmem:[%s5259_s4 + $0x8] sm:$0xff] }
  0x4b   :  { %3965 = vmatpush3.msra.mxu0 %v234_v38  ;;  %3976 = vmatpush3.msra.mxu1 %v3651_v39  ;;  %v3645_v55 = vld [vmem:[%s5261_s2] ss:$0 sm:$0xff]  ;;  %v3661_v1 = vld [vmem:[%s5259_s4 + $0x28] sm:$0xff] }
  0x4c   :  { %3966 = vmatprep.subr.mxu0 %v233_v40  ;;  %3977 = vmatprep.subr.mxu1 %v3650_v41  ;;  %v412_v2 = vld [vmem:[%s5259_s4] sm:$0xff]  ;;  %v3672_v9 = vld [vmem:[%s5262_s12 + $0x28] sm:$0xff] }
  0x4d   :  { %v171_v22 = vld [vmem:[#allocation2 + $0x8] sm:$0xff]  ;;  %3967 = vmatpush3.msra.mxu0 %v233_v40  ;;  %3978 = vmatpush3.msra.mxu1 %v3650_v41  ;;  %v3660_v3 = vld [vmem:[%s5259_s4 + $0x20] sm:$0xff] }
  0x4e   :  { %v173_v23 = vadd.f32 %v171_v22, %v169_v13  ;;  %3968 = vmatprep.subr.mxu0 %v232_v42  ;;  %3979 = vmatprep.subr.mxu1 %v3649_v43  ;;  %v586_v10 = vld [vmem:[%s5262_s12] sm:$0xff] }
  0x4f   :  { %3969 = vmatpush3.msra.mxu0 %v232_v42  ;;  %3980 = vmatpush3.msra.mxu1 %v3649_v43  ;;  %v3671_v11 = vld [vmem:[%s5262_s12 + $0x20] sm:$0xff]  ;;  %v838_v43 = vlaneseq }
  0x50   :  { %v182_v24 = vadd.f32 %v3643_v17, %v173_v23  ;;  %3984 = vmatprep.subr.mxu0 %v415_v44  ;;  %3995 = vmatprep.subr.mxu1 %v3663_v45  ;;  %v3657_v19 = vld [vmem:[%s5263_s6] ss:$0 sm:$0xff] }
  0x52   :  { %v189_v25 = vsel %vm185_vm1, %v182_v24, 0.0 }
  0x53   :  { %190 = vadd.xlane.f32.xlu0 %v189_v25  ;;  %v3646_v25 = vld [vmem:[%s5264_s1] ss:$0 sm:$0xff] }
  0xd2   :  { %v188_v26 = vpop.xlane.xlu0 %187 }
  0xd3   :  { %v193_v27 = vmul.f32 0.03125, %v188_v26  ;;  %v3654_v26 = vld [vmem:[%s5264_s1 + $0x1] ss:$0 sm:$0xff] }
  0xd5   :  { %v195_v28 = vsub.f32 %v181_v20, %v193_v27  ;;  %v3665_v20 = vld [vmem:[%s5263_s6 + $0x1] ss:$0 sm:$0xff] }
  0xd7   :  { %v197_v29 = vmul.f32 %v195_v28, %v195_v28 }
  0xd9   :  { %v199_v30 = vsel %vm185_vm1, %v197_v29, 0.0 }
  0xda   :  { %200 = vadd.xlane.f32.xlu1 %v199_v30 }
  0xdc   :  { %v191_v31 = vpop.xlane.xlu0 %190 }
  0xdd   :  { %v194_v32 = vmul.f32 0.03125, %v191_v31  ;;  %v3668_v31 = vld [vmem:[%s5215_s13] ss:$0 sm:$0xff] }
  0xdf   :  { %v196_v33 = vsub.f32 %v182_v24, %v194_v32  ;;  %v3676_v32 = vld [vmem:[%s5215_s13 + $0x1] ss:$0 sm:$0xff] }
  0xe1   :  { %v198_v34 = vmul.f32 %v196_v33, %v196_v33 }
  0xe3   :  { %v202_v35 = vsel %vm185_vm1, %v198_v34, 0.0 }
  0xe4   :  { %203 = vadd.xlane.f32.xlu1 %v202_v35 }
 0x163   :  { %v201_v46 = vpop.xlane.xlu1 %200 }
 0x164   :  { %v205_v47 = vmul.f32 0.03125, %v201_v46  ;;  %v839_v46 = vshrl.u32 %v838_v43, 7 }
 0x166   :  { %v207_v48 = vadd.f32 1e-12, %v205_v47 }
 0x168   :  { %4283 = vrsqrt.f32 %v207_v48  ;;  %v840_v48 = vsub.s32 0, %v839_v46 }
 0x16d   :  { %v204_v49 = vpop.xlane.xlu1 %203 }
 0x16e   :  { %v206_v50 = vmul.f32 0.03125, %v204_v49 }
 0x170   :  { %v208_v51 = vadd.f32 1e-12, %v206_v50  ;;  %v1000_v50 = vsub.s32 1, %v839_v46  ;;  %v1433_v46 = vld [vmem:[%s5216_s14] sm:$0xff] }
 0x172   :  { %4285 = vrsqrt.f32 %v208_v51 }
 0x175   :  { %v4284_v52 = vpop.eup %4283 }
 0x176   :  { %v211_v54 = vmul.f32 %v4284_v52, %v195_v28 }
 0x178   :  { %v219_v56 = vmul.f32 %v3644_v53, %v211_v54 }
 0x17a   :  { %v4644_v57 = vadd.f32 %v3645_v55, %v219_v56 }
 0x17c   :  { %3970 = vmatprep.mubr.msk.f32.mxu0 %vm185_vm1, %v4644_v57  ;;  %3981 = vmatprep.mubr.msk.f32.mxu1 %vm185_vm1, %v4644_v57 }
 0x17f   :  { %v4286_v58 = vpop.eup %4285 }
 0x180   :  { %v212_v59 = vmul.f32 %v4286_v58, %v196_v33 }
 0x182   :  { %v220_v60 = vmul.f32 %v3644_v53, %v212_v59 }
 0x184   :  { %v4650_v61 = vadd.f32 %v3645_v55, %v220_v60 }
 0x186   :  { %3971 = vmatmul.mubr.msk.f32.vlgmr.msra.gmra.mxu0 %vm185_vm1, %v4650_v61  ;;  %3982 = vmatmul.mubr.msk.f32.vlgmr.msra.gmra.mxu1 %vm185_vm1, %v4650_v61 }
 0x187   :  { %3985 = vmatpush3.msra.mxu0 %v415_v44  ;;  %3996 = vmatpush3.msra.mxu1 %v3663_v45  ;;  %v229_v44 = vld [vmem:[%s5265_s29] sm:$0x3] }
 0x188   :  { %3986 = vmatprep.subr.mxu0 %v414_v62  ;;  %3992 = vmatprep.mubr.msk.f32.mxu0 %vm185_vm1, %v4644_v57  ;;  %v230_v45 = vsub.f32 1.0, %v229_v44 }
 0x189   :  { %3997 = vmatprep.subr.mxu1 %v3662_v63  ;;  %4003 = vmatprep.mubr.msk.f32.mxu1 %vm185_vm1, %v4644_v57 }
 0x18a   :  { %3987 = vmatpush3.msra.mxu0 %v414_v62  ;;  %3998 = vmatpush3.msra.mxu1 %v3662_v63  ;;  %v231_v47 = vmul.f32 -1e+09, %v230_v45  ;;  %v1435_v45 = vld [vmem:[%s5216_s14 + $0x10] sm:$0xff] }
 0x18b   :  { %3988 = vmatprep.subr.mxu0 %v413_v0  ;;  %3999 = vmatprep.subr.mxu1 %v3661_v1 }
 0x18c   :  { %3989 = vmatpush3.msra.mxu0 %v413_v0  ;;  %4000 = vmatpush3.msra.mxu1 %v3661_v1  ;;  %v4767_v49 = vrot.slane %v231_v47, %v840_v48  ;;  %v4770_v59 = vrot.slane %v231_v47, %v1000_v50 }
 0x18d   :  { %3990 = vmatprep.subr.mxu0 %v412_v2  ;;  %4001 = vmatprep.subr.mxu1 %v3660_v3 }
 0x18e   :  { %3991 = vmatpush3.msra.mxu0 %v412_v2  ;;  %4002 = vmatpush3.msra.mxu1 %v3660_v3 }
 0x18f   :  { %3993 = vmatmul.mubr.msk.f32.vlgmr.msra.gmra.mxu0 %vm185_vm1, %v4650_v61  ;;  %4004 = vmatmul.mubr.msk.f32.vlgmr.msra.gmra.mxu1 %vm185_vm1, %v4650_v61 }
 0x190   :  { %4006 = vmatprep.subr.mxu0 %v589_v4  ;;  %4017 = vmatprep.subr.mxu1 %v3674_v5 }
 0x191   :  { %4007 = vmatpush3.msra.mxu0 %v589_v4  ;;  %4014 = vmatprep.mubr.msk.f32.mxu0 %vm185_vm1, %v4644_v57 }
 0x192   :  { %4018 = vmatpush3.msra.mxu1 %v3674_v5  ;;  %4025 = vmatprep.mubr.msk.f32.mxu1 %vm185_vm1, %v4644_v57 }
 0x193   :  { %4008 = vmatprep.subr.mxu0 %v588_v6  ;;  %4019 = vmatprep.subr.mxu1 %v3673_v7 }
 0x194   :  { %4009 = vmatpush3.msra.mxu0 %v588_v6  ;;  %4020 = vmatpush3.msra.mxu1 %v3673_v7 }
 0x195   :  { %4010 = vmatprep.subr.mxu0 %v587_v8  ;;  %4021 = vmatprep.subr.mxu1 %v3672_v9 }
 0x196   :  { %4011 = vmatpush3.msra.mxu0 %v587_v8  ;;  %4022 = vmatpush3.msra.mxu1 %v3672_v9 }
 0x197   :  { %4012 = vmatprep.subr.mxu0 %v586_v10  ;;  %4023 = vmatprep.subr.mxu1 %v3671_v11 }
 0x198   :  { %4013 = vmatpush3.msra.mxu0 %v586_v10  ;;  %4024 = vmatpush3.msra.mxu1 %v3671_v11 }
 0x199   :  { %4015 = vmatmul.mubr.msk.f32.vlgmr.msra.gmra.mxu0 %vm185_vm1, %v4650_v61  ;;  %4026 = vmatmul.mubr.msk.f32.vlgmr.msra.gmra.mxu1 %vm185_vm1, %v4650_v61 }
 0x19a   :  { %4028 = vmatprep.subr.mxu0 %v4382_v12  ;;  %4033 = vmatprep.subr.mxu1 %v4382_v12 }
 0x19b   :  { %4030 = vmatprep.mubr.msk.f32.mxu0 %vm4383_vm2, %v4382_v12  ;;  %4035 = vmatprep.mubr.msk.f32.mxu1 %vm4383_vm2, %v4382_v12 }
 0x246   :  { %v3972_v13 = vpop.f32.mrf.mxu0  ;;  %v3983_v14 = vpop.f32.mrf.mxu1 }
 0x247   :  { %v321_v33 = vadd.f32 %v3972_v13, %v3646_v25  ;;  %v409_v34 = vadd.f32 %v3983_v14, %v3654_v26 }
 0x248   :  { %v315_v15 = vpop.f32.mrf.mxu0  ;;  %v403_v16 = vpop.f32.mrf.mxu1 }
 0x249   :  { %v316_v27 = vadd.f32 %v3646_v25, %v315_v15  ;;  %v404_v28 = vadd.f32 %v3654_v26, %v403_v16 }
 0x24f   :  { %v3994_v17 = vpop.f32.mrf.mxu0  ;;  %v4005_v18 = vpop.f32.mrf.mxu1 }
 0x250   :  { %v495_v29 = vadd.f32 %v3994_v17, %v3657_v19  ;;  %v583_v30 = vadd.f32 %v4005_v18, %v3665_v20 }
 0x251   :  { %v489_v21 = vpop.f32.mrf.mxu0  ;;  %v577_v22 = vpop.f32.mrf.mxu1 }
 0x252   :  { %v490_v23 = vadd.f32 %v3657_v19, %v489_v21  ;;  %v578_v24 = vadd.f32 %v3665_v20, %v577_v22 }
 0x254   :  { %4029 = vmatpush3.xpose.msk.msra.mxu0 %vm760_vm3, %v490_v23  ;;  %4034 = vmatpush3.xpose.msk.msra.mxu1 %vm760_vm3, %v578_v24 }
 0x255   :  { %4038 = vmatprep.subr.mxu0 %v4382_v12  ;;  %4043 = vmatprep.subr.mxu1 %v4382_v12 }
 0x257   :  { %4031 = vmatmul.mubr.msk.f32.vlgmr.msra.gmra.mxu0 %vm760_vm3, %v316_v27  ;;  %4036 = vmatmul.mubr.msk.f32.vlgmr.msra.gmra.mxu1 %vm760_vm3, %v404_v28 }
 0x258   :  { %4039 = vmatpush3.xpose.msk.msra.mxu0 %vm760_vm3, %v495_v29  ;;  %4044 = vmatpush3.xpose.msk.msra.mxu1 %vm760_vm3, %v583_v30 }
 0x259   :  { %v4016_v35 = vpop.f32.mrf.mxu0  ;;  %v4027_v36 = vpop.f32.mrf.mxu1  ;;  %4040 = vmatprep.mubr.msk.f32.mxu0 %vm4383_vm2, %v4382_v12  ;;  %4045 = vmatprep.mubr.msk.f32.mxu1 %vm4383_vm2, %v4382_v12 }
 0x25a   :  { %v4750_v37 = vadd.f32 %v4016_v35, %v3668_v31  ;;  %v4752_v38 = vadd.f32 %v4027_v36, %v3676_v32  ;;  %4048 = vmatprep.subr.mxu0 %v4382_v12  ;;  %4053 = vmatprep.subr.mxu1 %v4382_v12 }
 0x25b   :  { %v663_v39 = vpop.f32.mrf.mxu0  ;;  %v751_v40 = vpop.f32.mrf.mxu1  ;;  %4041 = vmatmul.mubr.msk.f32.vlgmr.msra.gmra.mxu0 %vm760_vm3, %v321_v33  ;;  %4046 = vmatmul.mubr.msk.f32.vlgmr.msra.gmra.mxu1 %vm760_vm3, %v409_v34 }
 0x25c   :  { %v664_v41 = vadd.f32 %v3668_v31, %v663_v39  ;;  %v752_v42 = vadd.f32 %v3676_v32, %v751_v40  ;;  %4055 = vmatprep.mubr.msk.f32.mxu1 %vm4383_vm2, %v4382_v12  ;;  %4050 = vmatprep.mubr.msk.f32.mxu0 %vm4383_vm2, %v4382_v12 }
 0x25e   :  { %4049 = vmatpush3.msra.mxu0 %v664_v41  ;;  %4054 = vmatpush3.msra.mxu1 %v752_v42 }
 0x25f   :  { %4063 = vmatprep.subr.mxu1 %v4382_v12  ;;  %4058 = vmatprep.subr.mxu0 %v4382_v12 }
 0x317   :  { %v833_v51 = vpop.f32.mrf.mxu0  ;;  %v915_v52 = vpop.f32.mrf.mxu1 }
 0x318   :  { %v837_v53 = vmul.f32 0.25, %v833_v51  ;;  %v919_v54 = vmul.f32 0.25, %v915_v52 }
 0x319   :  { %v4032_v55 = vpop.f32.mrf.mxu0  ;;  %v4037_v56 = vpop.f32.mrf.mxu1 }
 0x31a   :  { %v920_v58 = vadd.f32 %v919_v54, %v4767_v49  ;;  %v842_v2 = vadd.f32 %v4767_v49, %v837_v53 }
 0x31b   :  { %v993_v60 = vpop.f32.mrf.mxu0  ;;  %v1075_v62 = vpop.f32.mrf.mxu1 }
 0x31c   :  { %v997_v63 = vmul.f32 0.25, %v993_v60  ;;  %v1079_v0 = vmul.f32 0.25, %v1075_v62  ;;  %v1085_v1 = vsel %vm1081_vm4, %v920_v58, -inf  ;;  %v1082_v7 = vsel %vm1081_vm4, %v842_v2, -inf }
 0x31d   :  { %1086 = vmax.xlane.f32.xlu0 %v1085_v1  ;;  %v4042_v3 = vpop.f32.mrf.mxu0  ;;  %v4047_v4 = vpop.f32.mrf.mxu1 }
 0x31e   :  { %v1080_v5 = vadd.f32 %v1079_v0, %v4770_v59  ;;  %v1002_v8 = vadd.f32 %v4770_v59, %v997_v63  ;;  %v3691_v63 = vld [vmem:[%s5217_s15] ss:$0 sm:$0xff] }
 0x320   :  { %v1091_v6 = vsel %vm1081_vm4, %v1080_v5, -inf  ;;  %v1088_v9 = vsel %vm1081_vm4, %v1002_v8, -inf }
 0x321   :  { %1092 = vmax.xlane.f32.xlu1 %v1091_v6  ;;  %1083 = vmax.xlane.f32.xlu0 %v1082_v7 }
 0x325   :  { %1089 = vmax.xlane.f32.xlu1 %v1088_v9 }
 0x3a6   :  { %v1087_v10 = vpop.xlane.xlu0 %1086 }
 0x3a7   :  { %v1095_v11 = vsub.f32 %v920_v58, %v1087_v10 }
 0x3a9   :  { %v1100_v13 = vmul.f32 1.442695, %v1095_v11 }
 0x3aa   :  { %v1093_v14 = vpop.xlane.xlu1 %1092  ;;  %v1084_v15 = vpop.xlane.xlu0 %1083 }
 0x3ab   :  { %4287 = vpow2.f32 %v1100_v13  ;;  %v1097_v16 = vsub.f32 %v1080_v5, %v1093_v14  ;;  %v1094_v17 = vsub.f32 %v842_v2, %v1084_v15 }
 0x3ad   :  { %v1104_v18 = vmul.f32 1.442695, %v1097_v16  ;;  %v1098_v19 = vmul.f32 1.442695, %v1094_v17 }
 0x3ae   :  { %v1090_v20 = vpop.xlane.xlu1 %1089 }
 0x3af   :  { %4289 = vpow2.f32 %v1104_v18  ;;  %v1096_v21 = vsub.f32 %v1002_v8, %v1090_v20  ;;  %v1573_v18 = vld [vmem:[%s5220_s18 + $0x10] sm:$0xff]  ;;  %v1571_v20 = vld [vmem:[%s5220_s18] sm:$0xff] }
 0x3b0   :  { %4291 = vpow2.f32 %v1098_v19  ;;  %v1572_v19 = vld [vmem:[%s5220_s18 + $0x8] sm:$0xff] }
 0x3b1   :  { %v1102_v22 = vmul.f32 1.442695, %v1096_v21 }
 0x3b3   :  { %4293 = vpow2.f32 %v1102_v22 }
 0x3b8   :  { %v4288_v23 = vpop.eup %4287 }
 0x3b9   :  { %v1109_v24 = vsel %vm1081_vm4, %v4288_v23, 0.0 }
 0x3ba   :  { %1110 = vadd.xlane.f32.xlu0 %v1109_v24 }
 0x3bc   :  { %v4290_v25 = vpop.eup %4289 }
 0x3bd   :  { %v4292_v26 = vpop.eup %4291  ;;  %v1115_v27 = vsel %vm1081_vm4, %v4290_v25, 0.0 }
 0x3be   :  { %v1106_v28 = vsel %vm1081_vm4, %v4292_v26, 0.0  ;;  %1116 = vadd.xlane.f32.xlu1 %v1115_v27 }
 0x3bf   :  { %1107 = vadd.xlane.f32.xlu0 %v1106_v28  ;;  %v3694_v28 = vld [vmem:[%s5218_s16] ss:$0 sm:$0xff] }
 0x3c0   :  { %v4294_v29 = vpop.eup %4293 }
 0x3c1   :  { %v1112_v30 = vsel %vm1081_vm4, %v4294_v29, 0.0 }
 0x3c2   :  { %1113 = vadd.xlane.f32.xlu1 %v1112_v30 }
 0x443   :  { %v1111_v31 = vpop.xlane.xlu0 %1110 }
 0x444   :  { %4295 = vrcp.f32 %v1111_v31 }
 0x447   :  { %v1117_v32 = vpop.xlane.xlu1 %1116 }
 0x448   :  { %v1108_v33 = vpop.xlane.xlu0 %1107  ;;  %4297 = vrcp.f32 %v1117_v32 }
 0x449   :  { %4299 = vrcp.f32 %v1108_v33  ;;  %v3695_v33 = vld [vmem:[%s5219_s17] ss:$0 sm:$0xff] }
 0x44b   :  { %v1114_v34 = vpop.xlane.xlu1 %1113 }
 0x44c   :  { %4301 = vrcp.f32 %v1114_v34 }
 0x451   :  { %v4296_v35 = vpop.eup %4295 }
 0x452   :  { %v1123_v36 = vmul.f32 %v4296_v35, %v4288_v23 }
 0x454   :  { %4056 = vmatmul.mubr.msk.f32.vlgmr.msra.gmra.mxu1 %vm1081_vm4, %v1123_v36 }
 0x455   :  { %v4298_v39 = vpop.eup %4297  ;;  %4064 = vmatpush3.msra.mxu1 %v4752_v38  ;;  %4065 = vmatprep.mubr.msk.f32.mxu1 %vm4383_vm2, %v4382_v12  ;;  %v1436_v38 = vld [vmem:[%s5216_s14 + $0x18] sm:$0xff] }
 0x456   :  { %v4300_v40 = vpop.eup %4299  ;;  %v1125_v41 = vmul.f32 %v4298_v39, %v4290_v25  ;;  %v1688_v39 = vld [vmem:[%s5222_s20 + $0x38] sm:$0xff] }
 0x457   :  { %v1122_v42 = vmul.f32 %v4300_v40, %v4292_v26  ;;  %v1687_v40 = vld [vmem:[%s5222_s20 + $0x30] sm:$0xff] }
 0x458   :  { %4066 = vmatmul.mubr.msk.f32.vlgmr.msra.gmra.mxu1 %vm1081_vm4, %v1125_v41  ;;  %v1686_v41 = vld [vmem:[%s5222_s20 + $0x28] sm:$0xff] }
 0x459   :  { %v4302_v43 = vpop.eup %4301  ;;  %4051 = vmatmul.mubr.msk.f32.vlgmr.msra.gmra.mxu0 %vm1081_vm4, %v1122_v42  ;;  %v1685_v42 = vld [vmem:[%s5222_s20 + $0x20] sm:$0xff] }
 0x45a   :  { %4059 = vmatpush3.msra.mxu0 %v4750_v37  ;;  %4060 = vmatprep.mubr.msk.f32.mxu0 %vm4383_vm2, %v4382_v12  ;;  %v1124_v44 = vmul.f32 %v4302_v43, %v4294_v29  ;;  %v1434_v37 = vld [vmem:[%s5216_s14 + $0x8] sm:$0xff]  ;;  %v1684_v43 = vld [vmem:[%s5222_s20 + $0x18] sm:$0xff] }
 0x45b   :  { %4068 = vmatprep.subr.mxu0 %v1436_v38 }
 0x45d   :  { %4061 = vmatmul.mubr.msk.f32.vlgmr.msra.gmra.mxu0 %vm1081_vm4, %v1124_v44  ;;  %v1683_v44 = vld [vmem:[%s5222_s20 + $0x10] sm:$0xff] }
 0x45e   :  { %4069 = vmatpush3.msra.mxu0 %v1436_v38  ;;  %v1682_v38 = vld [vmem:[%s5222_s20 + $0x8] sm:$0xff] }
 0x45f   :  { %4070 = vmatprep.subr.mxu0 %v1435_v45 }
 0x460   :  { %4071 = vmatpush3.msra.mxu0 %v1435_v45  ;;  %v1681_v45 = vld [vmem:[%s5222_s20] sm:$0xff] }
 0x461   :  { %4072 = vmatprep.subr.mxu0 %v1434_v37 }
 0x462   :  { %4073 = vmatpush3.msra.mxu0 %v1434_v37  ;;  %v3696_v37 = vld [vmem:[%s5221_s19] ss:$0 sm:$0xff] }
 0x463   :  { %4074 = vmatprep.subr.mxu0 %v1433_v46 }
 0x464   :  { %4075 = vmatpush3.msra.mxu0 %v1433_v46 }
 0x465   :  { %4090 = vmatprep.subr.mxu0 %v1688_v39 }
 0x514   :  { %v1269_v47 = vpop.f32.mrf.mxu1 }
 0x515   :  { %1274 = vrot.lane.b32.xlu0 %v1269_v47, %s4384_s27 }
 0x516   :  { %v4057_v48 = vpop.f32.mrf.mxu1 }
 0x518   :  { %v1422_v50 = vpop.f32.mrf.mxu1 }
 0x519   :  { %v1195_v51 = vpop.f32.mrf.mxu0  ;;  %1427 = vrot.lane.b32.xlu1 %v1422_v50, %s4384_s27 }
 0x51a   :  { %1199 = vst.msk [vmem:[#allocation3] sm:$0xff] %vm760_vm3, %v1195_v51  ;;  %v4067_v52 = vpop.f32.mrf.mxu1 }
 0x51b   :  { %v4052_v53 = vpop.f32.mrf.mxu0 }
 0x51d   :  { %v1348_v54 = vpop.f32.mrf.mxu0 }
 0x51e   :  { %1352 = vst.msk [vmem:[#allocation3 + $0x8] sm:$0xff] %vm760_vm3, %v1348_v54 }
 0x51f   :  { %v4062_v55 = vpop.f32.mrf.mxu0 }
 0x587   :  { %v1275_v56 = vpop.permute.xlu0 %1274 }
 0x588   :  { %1278 = vst.msk [vmem:[#allocation3] sm:$0xff] %vm1277_vm5, %v1275_v56 }
 0x58b   :  { %v1428_v58 = vpop.permute.xlu1 %1427 }
 0x58c   :  { %1430 = vst.msk [vmem:[#allocation3 + $0x8] sm:$0xff] %vm1277_vm5, %v1428_v58 }
 0x58f   :  { %v1431_v60 = vld [vmem:[#allocation3] sm:$0xff] }
 0x590   :  { %4076 = vmatprep.mubr.msk.f32.mxu0 %vm185_vm1, %v1431_v60 }
 0x593   :  { %v1432_v62 = vld [vmem:[#allocation3 + $0x8] sm:$0xff] }
 0x594   :  { %4077 = vmatmul.mubr.msk.f32.vlgmr.msra.gmra.mxu0 %vm185_vm1, %v1432_v62 }
 0x595   :  { %4091 = vmatpush3.msra.mxu0 %v1688_v39 }
 0x596   :  { %4092 = vmatprep.subr.mxu0 %v1687_v40 }
 0x597   :  { %4093 = vmatpush3.msra.mxu0 %v1687_v40 }
 0x598   :  { %4094 = vmatprep.subr.mxu0 %v1686_v41 }
 0x599   :  { %4095 = vmatpush3.msra.mxu0 %v1686_v41 }
 0x59a   :  { %4096 = vmatprep.subr.mxu0 %v1685_v42 }
 0x59b   :  { %4097 = vmatpush3.msra.mxu0 %v1685_v42 }
 0x59c   :  { %4098 = vmatprep.subr.mxu0 %v1684_v43 }
 0x59d   :  { %4099 = vmatpush3.msra.mxu0 %v1684_v43 }
 0x59e   :  { %4100 = vmatprep.subr.mxu0 %v1683_v44 }
 0x59f   :  { %4101 = vmatpush3.msra.mxu0 %v1683_v44 }
 0x5a0   :  { %4102 = vmatprep.subr.mxu0 %v1682_v38 }
 0x5a1   :  { %4103 = vmatpush3.msra.mxu0 %v1682_v38  ;;  %v3702_v38 = vld [vmem:[%s5224_s22] ss:$0 sm:$0xff] }
 0x5a2   :  { %4104 = vmatprep.subr.mxu0 %v1681_v45 }
 0x5a3   :  { %4105 = vmatpush3.msra.mxu0 %v1681_v45 }
 0x654   :  { %v4078_v0 = vpop.f32.mrf.mxu0 }
 0x655   :  { %v1522_v1 = vadd.f32 %v4078_v0, %v3691_v63 }
 0x656   :  { %v1516_v2 = vpop.f32.mrf.mxu0 }
 0x657   :  { %v1517_v3 = vadd.f32 %v3691_v63, %v1516_v2  ;;  %v1526_v4 = vadd.f32 %v1522_v1, %v4650_v61 }
 0x659   :  { %v1532_v5 = vsel %vm185_vm1, %v1526_v4, 0.0  ;;  %v1525_v6 = vadd.f32 %v1517_v3, %v4644_v57  ;;  %v1574_v57 = vld [vmem:[%s5220_s18 + $0x18] sm:$0xff] }
 0x65a   :  { %1533 = vadd.xlane.f32.xlu0 %v1532_v5  ;;  %4079 = vmatprep.subr.mxu1 %v1574_v57 }
 0x65b   :  { %v1529_v7 = vsel %vm185_vm1, %v1525_v6, 0.0  ;;  %4080 = vmatpush3.msra.mxu1 %v1574_v57 }
 0x65c   :  { %1530 = vadd.xlane.f32.xlu1 %v1529_v7  ;;  %4081 = vmatprep.subr.mxu1 %v1573_v18 }
 0x65d   :  { %4082 = vmatpush3.msra.mxu1 %v1573_v18 }
 0x65e   :  { %4083 = vmatprep.subr.mxu1 %v1572_v19 }
 0x65f   :  { %4084 = vmatpush3.msra.mxu1 %v1572_v19 }
 0x660   :  { %4085 = vmatprep.subr.mxu1 %v1571_v20 }
 0x661   :  { %4086 = vmatpush3.msra.mxu1 %v1571_v20 }
 0x6e3   :  { %v1534_v8 = vpop.xlane.xlu0 %1533 }
 0x6e4   :  { %v1536_v9 = vmul.f32 0.03125, %v1534_v8  ;;  %v3699_v8 = vld [vmem:[%s5223_s21] ss:$0 sm:$0xff] }
 0x6e5   :  { %v1531_v10 = vpop.xlane.xlu1 %1530 }
 0x6e6   :  { %v1538_v11 = vsub.f32 %v1526_v4, %v1536_v9  ;;  %v1535_v13 = vmul.f32 0.03125, %v1531_v10 }
 0x6e8   :  { %v1537_v14 = vsub.f32 %v1525_v6, %v1535_v13  ;;  %v1540_v15 = vmul.f32 %v1538_v11, %v1538_v11 }
 0x6ea   :  { %v1544_v16 = vsel %vm185_vm1, %v1540_v15, 0.0  ;;  %v1539_v17 = vmul.f32 %v1537_v14, %v1537_v14 }
 0x6eb   :  { %1545 = vadd.xlane.f32.xlu1 %v1544_v16 }
 0x6ec   :  { %v1541_v61 = vsel %vm185_vm1, %v1539_v17, 0.0 }
 0x6ed   :  { %1542 = vadd.xlane.f32.xlu0 %v1541_v61 }
 0x774   :  { %v1546_v21 = vpop.xlane.xlu1 %1545 }
 0x775   :  { %v1548_v22 = vmul.f32 0.03125, %v1546_v21 }
 0x776   :  { %v1543_v23 = vpop.xlane.xlu0 %1542 }
 0x777   :  { %v1550_v24 = vadd.f32 1e-12, %v1548_v22  ;;  %v1547_v25 = vmul.f32 0.03125, %v1543_v23 }
 0x779   :  { %4303 = vrsqrt.f32 %v1550_v24  ;;  %v1549_v26 = vadd.f32 1e-12, %v1547_v25 }
 0x77b   :  { %4305 = vrsqrt.f32 %v1549_v26  ;;  %v3707_v26 = vld [vmem:[%s5258_s10 + $0x58] sm:$0xff] }
 0x77c   :  { %4109 = vmatprep.subr.mxu1 %v3707_v26 }
 0x786   :  { %v4304_v27 = vpop.eup %4303 }
 0x787   :  { %v1554_v29 = vmul.f32 %v4304_v27, %v1538_v11  ;;  %v3723_v27 = vld [vmem:[%s5259_s4 + $0x58] sm:$0xff] }
 0x788   :  { %v4306_v30 = vpop.eup %4305  ;;  %4131 = vmatprep.subr.mxu0 %v3723_v27 }
 0x789   :  { %v1553_v31 = vmul.f32 %v4306_v30, %v1537_v14  ;;  %v1562_v32 = vmul.f32 %v3694_v28, %v1554_v29  ;;  %v3722_v29 = vld [vmem:[%s5259_s4 + $0x50] sm:$0xff]  ;;  %v3705_v30 = vld [vmem:[%s5258_s10 + $0x48] sm:$0xff] }
 0x78b   :  { %v1561_v34 = vmul.f32 %v3694_v28, %v1553_v31  ;;  %v1570_v36 = vadd.f32 %v3695_v33, %v1562_v32  ;;  %v3706_v28 = vld [vmem:[%s5258_s10 + $0x50] sm:$0xff]  ;;  %v3721_v31 = vld [vmem:[%s5259_s4 + $0x48] sm:$0xff]  ;;  %v3704_v32 = vld [vmem:[%s5258_s10 + $0x40] sm:$0xff] }
 0x78d   :  { %v4840_v35 = vadd.f32 %v3695_v33, %v1561_v34  ;;  %v3720_v33 = vld [vmem:[%s5259_s4 + $0x40] sm:$0xff]  ;;  %v3715_v34 = vld [vmem:[%s5258_s10 + $0x78] sm:$0xff] }
 0x78f   :  { %4087 = vmatprep.mubr.msk.f32.mxu1 %vm185_vm1, %v4840_v35 }
 0x790   :  { %4088 = vmatmul.mubr.msk.f32.vlgmr.msra.gmra.mxu1 %vm185_vm1, %v1570_v36 }
 0x791   :  { %4110 = vmatpush3.msra.mxu1 %v3707_v26  ;;  %v3717_v26 = vld [vmem:[%s5264_s1 + $0x3] ss:$0 sm:$0xff] }
 0x792   :  { %4111 = vmatprep.subr.mxu1 %v3706_v28 }
 0x793   :  { %4112 = vmatpush3.msra.mxu1 %v3706_v28  ;;  %v3749_v28 = vld [vmem:[%s5215_s13 + $0x3] ss:$0 sm:$0xff] }
 0x794   :  { %4113 = vmatprep.subr.mxu1 %v3705_v30 }
 0x795   :  { %4114 = vmatpush3.msra.mxu1 %v3705_v30 }
 0x796   :  { %4115 = vmatprep.subr.mxu1 %v3704_v32 }
 0x797   :  { %4116 = vmatpush3.msra.mxu1 %v3704_v32 }
 0x798   :  { %4120 = vmatprep.subr.mxu1 %v3715_v34 }
 0x850   :  { %v4089_v46 = vpop.f32.mrf.mxu1 }
 0x851   :  { %v1660_v47 = vadd.f32 %v4089_v46, %v3696_v37 }
 0x852   :  { %v1654_v48 = vpop.f32.mrf.mxu1 }
 0x853   :  { %v1666_v50 = vmul.f32 0.044715, %v1660_v47  ;;  %v1655_v51 = vadd.f32 %v3696_v37, %v1654_v48  ;;  %v1664_v5 = vmul.f32 0.5, %v1660_v47  ;;  %v3703_v48 = vld [vmem:[%s5225_s23] ss:$0 sm:$0xff] }
 0x855   :  { %v1668_v52 = vmul.f32 %v1666_v50, %v1660_v47  ;;  %v1665_v53 = vmul.f32 0.044715, %v1655_v51  ;;  %v1663_v3 = vmul.f32 0.5, %v1655_v51 }
 0x857   :  { %v1670_v54 = vmul.f32 %v1668_v52, %v1660_v47  ;;  %v1667_v55 = vmul.f32 %v1665_v53, %v1655_v51  ;;  %v3714_v53 = vld [vmem:[%s5258_s10 + $0x70] sm:$0xff] }
 0x859   :  { %v1672_v56 = vadd.f32 %v1670_v54, %v1660_v47  ;;  %v1669_v58 = vmul.f32 %v1667_v55, %v1655_v51  ;;  %v3738_v54 = vld [vmem:[%s5262_s12 + $0x50] sm:$0xff]  ;;  %v3713_v55 = vld [vmem:[%s5258_s10 + $0x68] sm:$0xff] }
 0x85b   :  { %v1674_v60 = vmul.f32 0.7978846, %v1672_v56  ;;  %v1671_v62 = vadd.f32 %v1669_v58, %v1655_v51  ;;  %v3737_v56 = vld [vmem:[%s5262_s12 + $0x48] sm:$0xff]  ;;  %v3712_v58 = vld [vmem:[%s5258_s10 + $0x60] sm:$0xff]  ;;  %s3603_s10 = sshll.u32 %s4385_s0, 4  ;;  %s3604_s10 = int_to_ptr.vmem [resolvable:$true] %s3603_s10 }
 0x85c   :  { %p4362_p6 = scmp.lt.s32.totalorder %s3604_s10, %s3604_s10 }
 0x85d   :  { %4307 = vtanh.f32 %v1674_v60  ;;  %v1673_v63 = vmul.f32 0.7978846, %v1671_v62  ;;  %v3736_v60 = vld [vmem:[%s5262_s12 + $0x40] sm:$0xff]  ;;  %v3731_v62 = vld [vmem:[%s5259_s4 + $0x78] sm:$0xff] }
 0x85f   :  { %4309 = vtanh.f32 %v1673_v63  ;;  %v3730_v63 = vld [vmem:[%s5259_s4 + $0x70] sm:$0xff] }
 0x86a   :  { %v4308_v0 = vpop.eup %4307 }
 0x86b   :  { %v1678_v2 = vadd.f32 1.0, %v4308_v0  ;;  %v3729_v0 = vld [vmem:[%s5259_s4 + $0x68] sm:$0xff] }
 0x86c   :  { %v4310_v1 = vpop.eup %4309 }
 0x86d   :  { %v1677_v4 = vadd.f32 1.0, %v4310_v1  ;;  %v1680_v7 = vmul.f32 %v1678_v2, %v1664_v5  ;;  %v3728_v1 = vld [vmem:[%s5259_s4 + $0x60] sm:$0xff]  ;;  %v3747_v2 = vld [vmem:[%s5262_s12 + $0x78] sm:$0xff] }
 0x86e   :  { %v3744_v5 = vld [vmem:[%s5262_s12 + $0x60] sm:$0xff] }
 0x86f   :  { %v1679_v6 = vmul.f32 %v1677_v4, %v1663_v3  ;;  %v3746_v3 = vld [vmem:[%s5262_s12 + $0x70] sm:$0xff]  ;;  %v3745_v4 = vld [vmem:[%s5262_s12 + $0x68] sm:$0xff] }
 0x871   :  { %4106 = vmatprep.mubr.msk.f32.mxu0 %vm1696_vm6, %v1679_v6 }
 0x872   :  { %4107 = vmatmul.mubr.msk.f32.vlgmr.msra.gmra.mxu0 %vm1696_vm6, %v1680_v7 }
 0x873   :  { %4132 = vmatpush3.msra.mxu0 %v3723_v27 }
 0x874   :  { %4133 = vmatprep.subr.mxu0 %v3722_v29 }
 0x875   :  { %4134 = vmatpush3.msra.mxu0 %v3722_v29 }
 0x876   :  { %4135 = vmatprep.subr.mxu0 %v3721_v31 }
 0x877   :  { %4136 = vmatpush3.msra.mxu0 %v3721_v31 }
 0x878   :  { %4137 = vmatprep.subr.mxu0 %v3720_v33 }
 0x879   :  { %4138 = vmatpush3.msra.mxu0 %v3720_v33 }
 0x932   :  { %v4108_v9 = vpop.f32.mrf.mxu0 }
 0x933   :  { %v1775_v10 = vadd.f32 %v4108_v9, %v3699_v8 }
 0x934   :  { %v1769_v11 = vpop.f32.mrf.mxu0 }
 0x935   :  { %v1770_v13 = vadd.f32 %v3699_v8, %v1769_v11  ;;  %v1779_v14 = vadd.f32 %v1775_v10, %v1570_v36  ;;  %v3725_v8 = vld [vmem:[%s5263_s6 + $0x2] ss:$0 sm:$0xff] }
 0x937   :  { %v1785_v15 = vsel %vm185_vm1, %v1779_v14, 0.0  ;;  %v1778_v16 = vadd.f32 %v1770_v13, %v4840_v35  ;;  %v3739_v35 = vld [vmem:[%s5262_s12 + $0x58] sm:$0xff]  ;;  %v3709_v13 = vld [vmem:[%s5264_s1 + $0x2] ss:$0 sm:$0xff]  ;;  %s5268_s12 = sld [smem:[#allocation25_spill]] }
 0x938   :  { %1786 = vadd.xlane.f32.xlu1 %v1785_v15  ;;  %4153 = vmatprep.subr.mxu0 %v3739_v35 }
 0x939   :  { %v1782_v17 = vsel %vm185_vm1, %v1778_v16, 0.0 }
 0x93a   :  { %1783 = vadd.xlane.f32.xlu0 %v1782_v17 }
 0x9c1   :  { %v1787_v61 = vpop.xlane.xlu1 %1786 }
 0x9c2   :  { %v1789_v57 = vmul.f32 0.03125, %v1787_v61 }
 0x9c3   :  { %v1784_v18 = vpop.xlane.xlu0 %1783 }
 0x9c4   :  { %v1791_v19 = vsub.f32 %v1779_v14, %v1789_v57  ;;  %v1788_v20 = vmul.f32 0.03125, %v1784_v18 }
 0x9c6   :  { %v1790_v21 = vsub.f32 %v1778_v16, %v1788_v20  ;;  %v1793_v22 = vmul.f32 %v1791_v19, %v1791_v19  ;;  %v3741_v16 = vld [vmem:[%s5215_s13 + $0x2] ss:$0 sm:$0xff] }
 0x9c8   :  { %v1797_v23 = vsel %vm185_vm1, %v1793_v22, 0.0  ;;  %v1792_v24 = vmul.f32 %v1790_v21, %v1790_v21 }
 0x9c9   :  { %1798 = vadd.xlane.f32.xlu1 %v1797_v23  ;;  %v3733_v23 = vld [vmem:[%s5263_s6 + $0x3] ss:$0 sm:$0xff] }
 0x9ca   :  { %v1794_v25 = vsel %vm185_vm1, %v1792_v24, 0.0 }
 0x9cb   :  { %1795 = vadd.xlane.f32.xlu0 %v1794_v25 }
 0xa52   :  { %v1799_v36 = vpop.xlane.xlu1 %1798 }
 0xa53   :  { %v1801_v39 = vmul.f32 0.03125, %v1799_v36 }
 0xa54   :  { %v1796_v40 = vpop.xlane.xlu0 %1795 }
 0xa55   :  { %v1803_v41 = vadd.f32 1e-12, %v1801_v39  ;;  %v1800_v42 = vmul.f32 0.03125, %v1796_v40 }
 0xa57   :  { %4311 = vrsqrt.f32 %v1803_v41  ;;  %v1802_v43 = vadd.f32 1e-12, %v1800_v42 }
 0xa59   :  { %4313 = vrsqrt.f32 %v1802_v43 }
 0xa64   :  { %v4312_v44 = vpop.eup %4311 }
 0xa65   :  { %v1807_v45 = vmul.f32 %v4312_v44, %v1791_v19 }
 0xa66   :  { %v4314_v37 = vpop.eup %4313 }
 0xa67   :  { %v1806_v46 = vmul.f32 %v4314_v37, %v1790_v21  ;;  %v1815_v47 = vmul.f32 %v3702_v38, %v1807_v45 }
 0xa69   :  { %v1814_v50 = vmul.f32 %v3702_v38, %v1806_v46  ;;  %v4920_v52 = vadd.f32 %v3703_v48, %v1815_v47 }
 0xa6b   :  { %v4918_v51 = vadd.f32 %v3703_v48, %v1814_v50 }
 0xa6d   :  { %4117 = vmatprep.mubr.msk.f32.mxu1 %vm185_vm1, %v4918_v51  ;;  %4139 = vmatprep.mubr.msk.f32.mxu0 %vm185_vm1, %v4918_v51 }
 0xa6e   :  { %4118 = vmatmul.mubr.msk.f32.vlgmr.msra.gmra.mxu1 %vm185_vm1, %v4920_v52  ;;  %4140 = vmatmul.mubr.msk.f32.vlgmr.msra.gmra.mxu0 %vm185_vm1, %v4920_v52 }
 0xa6f   :  { %4121 = vmatpush3.msra.mxu1 %v3715_v34  ;;  %4154 = vmatpush3.msra.mxu0 %v3739_v35 }
 0xa70   :  { %4122 = vmatprep.subr.mxu1 %v3714_v53  ;;  %4128 = vmatprep.mubr.msk.f32.mxu1 %vm185_vm1, %v4918_v51 }
 0xa71   :  { %4155 = vmatprep.subr.mxu0 %v3738_v54  ;;  %4161 = vmatprep.mubr.msk.f32.mxu0 %vm185_vm1, %v4918_v51 }
 0xa72   :  { %4123 = vmatpush3.msra.mxu1 %v3714_v53  ;;  %4156 = vmatpush3.msra.mxu0 %v3738_v54 }
 0xa73   :  { %4124 = vmatprep.subr.mxu1 %v3713_v55  ;;  %4157 = vmatprep.subr.mxu0 %v3737_v56 }
 0xa74   :  { %4125 = vmatpush3.msra.mxu1 %v3713_v55  ;;  %4158 = vmatpush3.msra.mxu0 %v3737_v56 }
 0xa75   :  { %4126 = vmatprep.subr.mxu1 %v3712_v58  ;;  %4159 = vmatprep.subr.mxu0 %v3736_v60 }
 0xa76   :  { %4127 = vmatpush3.msra.mxu1 %v3712_v58  ;;  %4160 = vmatpush3.msra.mxu0 %v3736_v60 }
 0xa77   :  { %4129 = vmatmul.mubr.msk.f32.vlgmr.msra.gmra.mxu1 %vm185_vm1, %v4920_v52  ;;  %4142 = vmatprep.subr.mxu1 %v3731_v62 }
 0xa78   :  { %4162 = vmatmul.mubr.msk.f32.vlgmr.msra.gmra.mxu0 %vm185_vm1, %v4920_v52  ;;  %4143 = vmatpush3.msra.mxu1 %v3731_v62 }
 0xa79   :  { %4150 = vmatprep.mubr.msk.f32.mxu1 %vm185_vm1, %v4918_v51  ;;  %4144 = vmatprep.subr.mxu1 %v3730_v63 }
 0xa7a   :  { %4145 = vmatpush3.msra.mxu1 %v3730_v63  ;;  %4175 = vmatprep.subr.mxu0 %v4382_v12 }
 0xa7b   :  { %4146 = vmatprep.subr.mxu1 %v3729_v0  ;;  %4177 = vmatprep.mubr.msk.f32.mxu0 %vm4383_vm2, %v4382_v12 }
 0xa7c   :  { %4147 = vmatpush3.msra.mxu1 %v3729_v0 }
 0xa7d   :  { %4148 = vmatprep.subr.mxu1 %v3728_v1 }
 0xa7e   :  { %4149 = vmatpush3.msra.mxu1 %v3728_v1 }
 0xa7f   :  { %4151 = vmatmul.mubr.msk.f32.vlgmr.msra.gmra.mxu1 %vm185_vm1, %v4920_v52  ;;  %4164 = vmatprep.subr.mxu1 %v3747_v2 }
 0xa80   :  { %4165 = vmatpush3.msra.mxu1 %v3747_v2  ;;  %4172 = vmatprep.mubr.msk.f32.mxu1 %vm185_vm1, %v4918_v51 }
 0xa81   :  { %4166 = vmatprep.subr.mxu1 %v3746_v3 }
 0xa82   :  { %4167 = vmatpush3.msra.mxu1 %v3746_v3 }
 0xa83   :  { %4168 = vmatprep.subr.mxu1 %v3745_v4 }
 0xa84   :  { %4169 = vmatpush3.msra.mxu1 %v3745_v4 }
 0xa85   :  { %4170 = vmatprep.subr.mxu1 %v3744_v5 }
 0xa86   :  { %4171 = vmatpush3.msra.mxu1 %v3744_v5 }
 0xa87   :  { %4173 = vmatmul.mubr.msk.f32.vlgmr.msra.gmra.mxu1 %vm185_vm1, %v4920_v52  ;;  %4180 = vmatprep.subr.mxu1 %v4382_v12 }
 0xa88   :  { %4182 = vmatprep.mubr.msk.f32.mxu1 %vm4383_vm2, %v4382_v12 }
 0xb2e   :  { %v4119_v6 = vpop.f32.mrf.mxu1  ;;  %v4141_v7 = vpop.f32.mrf.mxu0 }
 0xb2f   :  { %v2091_v15 = vadd.f32 %v4141_v7, %v3725_v8  ;;  %v1915_v17 = vadd.f32 %v4119_v6, %v3709_v13 }
 0xb30   :  { %v2085_v9 = vpop.f32.mrf.mxu0  ;;  %v1909_v10 = vpop.f32.mrf.mxu1 }
 0xb31   :  { %v2086_v11 = vadd.f32 %v3725_v8, %v2085_v9  ;;  %v1910_v14 = vadd.f32 %v3709_v13, %v1909_v10 }
 0xb33   :  { %4176 = vmatpush3.xpose.msk.msra.mxu0 %vm760_vm3, %v2086_v11 }
 0xb34   :  { %4185 = vmatprep.subr.mxu0 %v4382_v12 }
 0xb36   :  { %4178 = vmatmul.mubr.msk.f32.vlgmr.msra.gmra.mxu0 %vm760_vm3, %v1910_v14 }
 0xb37   :  { %4186 = vmatpush3.xpose.msk.msra.mxu0 %vm760_vm3, %v2091_v15  ;;  %4187 = vmatprep.mubr.msk.f32.mxu0 %vm4383_vm2, %v4382_v12  ;;  %v4130_v57 = vpop.f32.mrf.mxu1 }
 0xb38   :  { %v4163_v61 = vpop.f32.mrf.mxu0  ;;  %4195 = vmatprep.subr.mxu0 %v4382_v12  ;;  %v2003_v32 = vadd.f32 %v4130_v57, %v3717_v26 }
 0xb39   :  { %v5010_v18 = vadd.f32 %v4163_v61, %v3741_v16  ;;  %v1997_v21 = vpop.f32.mrf.mxu1 }
 0xb3a   :  { %v2261_v19 = vpop.f32.mrf.mxu0  ;;  %4188 = vmatmul.mubr.msk.f32.vlgmr.msra.gmra.mxu0 %vm760_vm3, %v1915_v17  ;;  %v1998_v27 = vadd.f32 %v3717_v26, %v1997_v21 }
 0xb3b   :  { %v2262_v20 = vadd.f32 %v3741_v16, %v2261_v19  ;;  %4197 = vmatprep.mubr.msk.f32.mxu0 %vm4383_vm2, %v4382_v12 }
 0xb3d   :  { %4196 = vmatpush3.msra.mxu0 %v2262_v20 }
 0xb3e   :  { %4205 = vmatprep.subr.mxu0 %v4382_v12 }
 0xb3f   :  { %v4152_v22 = vpop.f32.mrf.mxu1 }
 0xb40   :  { %v2179_v29 = vadd.f32 %v4152_v22, %v3733_v23 }
 0xb41   :  { %v2173_v24 = vpop.f32.mrf.mxu1 }
 0xb42   :  { %v2174_v25 = vadd.f32 %v3733_v23, %v2173_v24 }
 0xb44   :  { %4181 = vmatpush3.xpose.msk.msra.mxu1 %vm760_vm3, %v2174_v25 }
 0xb45   :  { %4190 = vmatprep.subr.mxu1 %v4382_v12 }
 0xb47   :  { %v4174_v30 = vpop.f32.mrf.mxu1  ;;  %4183 = vmatmul.mubr.msk.f32.vlgmr.msra.gmra.mxu1 %vm760_vm3, %v1998_v27  ;;  %v3767_v27 = vld [vmem:[%s5216_s14 + $0x38] sm:$0xff] }
 0xb48   :  { %v5028_v31 = vadd.f32 %v4174_v30, %v3749_v28  ;;  %4191 = vmatpush3.xpose.msk.msra.mxu1 %vm760_vm3, %v2179_v29  ;;  %4192 = vmatprep.mubr.msk.f32.mxu1 %vm4383_vm2, %v4382_v12  ;;  %v3764_v29 = vld [vmem:[%s5216_s14 + $0x20] sm:$0xff] }
 0xb49   :  { %v2349_v33 = vpop.f32.mrf.mxu1  ;;  %4200 = vmatprep.subr.mxu1 %v4382_v12 }
 0xb4a   :  { %v2350_v34 = vadd.f32 %v3749_v28, %v2349_v33  ;;  %v3766_v28 = vld [vmem:[%s5216_s14 + $0x30] sm:$0xff] }
 0xb4b   :  { %4193 = vmatmul.mubr.msk.f32.vlgmr.msra.gmra.mxu1 %vm760_vm3, %v2003_v32 }
 0xb4c   :  { %4201 = vmatpush3.msra.mxu1 %v2350_v34  ;;  %4202 = vmatprep.mubr.msk.f32.mxu1 %vm4383_vm2, %v4382_v12 }
 0xb4d   :  { %4210 = vmatprep.subr.mxu1 %v4382_v12 }
 0xbf6   :  { %v2430_v35 = vpop.f32.mrf.mxu0 }
 0xbf7   :  { %v2434_v42 = vmul.f32 0.25, %v2430_v35 }
 0xbf8   :  { %v4179_v36 = vpop.f32.mrf.mxu0 }
 0xbf9   :  { %v2435_v48 = vadd.f32 %v2434_v42, %v4767_v49 }
 0xbfa   :  { %v2586_v39 = vpop.f32.mrf.mxu0 }
 0xbfb   :  { %v2590_v37 = vmul.f32 0.25, %v2586_v39  ;;  %v2670_v55 = vsel %vm1081_vm4, %v2435_v48, -inf }
 0xbfc   :  { %v4189_v40 = vpop.f32.mrf.mxu0 }
 0xbfd   :  { %v2591_v56 = vadd.f32 %v2590_v37, %v4770_v59 }
 0xbff   :  { %v2676_v58 = vsel %vm1081_vm4, %v2591_v56, -inf }
 0xc07   :  { %v2508_v41 = vpop.f32.mrf.mxu1 }
 0xc08   :  { %v2512_v43 = vmul.f32 0.25, %v2508_v41 }
 0xc09   :  { %v4184_v44 = vpop.f32.mrf.mxu1 }
 0xc0a   :  { %v2513_v38 = vadd.f32 %v2512_v43, %v4767_v49  ;;  %v3769_v44 = vld [vmem:[%s5217_s15 + $0x1] ss:$0 sm:$0xff] }
 0xc0b   :  { %v2664_v45 = vpop.f32.mrf.mxu1 }
 0xc0c   :  { %v2668_v46 = vmul.f32 0.25, %v2664_v45  ;;  %v2673_v47 = vsel %vm1081_vm4, %v2513_v38, -inf }
 0xc0d   :  { %2674 = vmax.xlane.f32.xlu0 %v2673_v47  ;;  %v4194_v50 = vpop.f32.mrf.mxu1 }
 0xc0e   :  { %v2669_v53 = vadd.f32 %v2668_v46, %v4770_v59 }
 0xc10   :  { %v2679_v54 = vsel %vm1081_vm4, %v2669_v53, -inf }
 0xc11   :  { %2680 = vmax.xlane.f32.xlu1 %v2679_v54  ;;  %2671 = vmax.xlane.f32.xlu0 %v2670_v55 }
 0xc15   :  { %2677 = vmax.xlane.f32.xlu1 %v2676_v58 }
 0xc96   :  { %v2675_v60 = vpop.xlane.xlu0 %2674 }
 0xc97   :  { %v2683_v62 = vsub.f32 %v2513_v38, %v2675_v60 }
 0xc99   :  { %v2688_v63 = vmul.f32 1.442695, %v2683_v62 }
 0xc9a   :  { %v2681_v0 = vpop.xlane.xlu1 %2680  ;;  %v2672_v49 = vpop.xlane.xlu0 %2671 }
 0xc9b   :  { %4315 = vpow2.f32 %v2688_v63  ;;  %v2685_v1 = vsub.f32 %v2669_v53, %v2681_v0  ;;  %v2682_v2 = vsub.f32 %v2435_v48, %v2672_v49 }
 0xc9d   :  { %v2692_v3 = vmul.f32 1.442695, %v2685_v1  ;;  %v2686_v4 = vmul.f32 1.442695, %v2682_v2  ;;  %v3778_v1 = vld [vmem:[%s5220_s18 + $0x30] sm:$0xff]  ;;  %v3777_v2 = vld [vmem:[%s5220_s18 + $0x28] sm:$0xff] }
 0xc9e   :  { %v2678_v5 = vpop.xlane.xlu1 %2677 }
 0xc9f   :  { %4317 = vpow2.f32 %v2692_v3  ;;  %v2684_v6 = vsub.f32 %v2591_v56, %v2678_v5  ;;  %v3776_v3 = vld [vmem:[%s5220_s18 + $0x20] sm:$0xff] }
 0xca0   :  { %4319 = vpow2.f32 %v2686_v4 }
 0xca1   :  { %v2690_v59 = vmul.f32 1.442695, %v2684_v6 }
 0xca3   :  { %4321 = vpow2.f32 %v2690_v59 }
 0xca8   :  { %v4316_v7 = vpop.eup %4315 }
 0xca9   :  { %v2697_v8 = vsel %vm1081_vm4, %v4316_v7, 0.0 }
 0xcaa   :  { %2698 = vadd.xlane.f32.xlu0 %v2697_v8 }
 0xcac   :  { %v4318_v9 = vpop.eup %4317 }
 0xcad   :  { %v4320_v10 = vpop.eup %4319  ;;  %v2703_v11 = vsel %vm1081_vm4, %v4318_v9, 0.0 }
 0xcae   :  { %v2694_v13 = vsel %vm1081_vm4, %v4320_v10, 0.0  ;;  %2704 = vadd.xlane.f32.xlu1 %v2703_v11 }
 0xcaf   :  { %2695 = vadd.xlane.f32.xlu0 %v2694_v13 }
 0xcb0   :  { %v4322_v14 = vpop.eup %4321 }
 0xcb1   :  { %v2700_v15 = vsel %vm1081_vm4, %v4322_v14, 0.0 }
 0xcb2   :  { %2701 = vadd.xlane.f32.xlu1 %v2700_v15 }
 0xd33   :  { %v2699_v16 = vpop.xlane.xlu0 %2698 }
 0xd34   :  { %4323 = vrcp.f32 %v2699_v16  ;;  %v3775_v16 = vld [vmem:[%s5219_s17 + $0x1] ss:$0 sm:$0xff]  ;;  %s5266_s17 = sld [smem:[#allocation24_spill]] }
 0xd37   :  { %v2705_v17 = vpop.xlane.xlu1 %2704 }
 0xd38   :  { %v2696_v61 = vpop.xlane.xlu0 %2695  ;;  %4325 = vrcp.f32 %v2705_v17 }
 0xd39   :  { %4327 = vrcp.f32 %v2696_v61 }
 0xd3b   :  { %v2702_v57 = vpop.xlane.xlu1 %2701 }
 0xd3c   :  { %4329 = vrcp.f32 %v2702_v57 }
 0xd41   :  { %v4324_v19 = vpop.eup %4323 }
 0xd42   :  { %v2711_v20 = vmul.f32 %v4324_v19, %v4316_v7  ;;  %v3791_v19 = vld [vmem:[%s5222_s20 + $0x78] sm:$0xff] }
 0xd44   :  { %4203 = vmatmul.mubr.msk.f32.vlgmr.msra.gmra.mxu1 %vm1081_vm4, %v2711_v20  ;;  %v3790_v20 = vld [vmem:[%s5222_s20 + $0x70] sm:$0xff] }
 0xd45   :  { %v4326_v21 = vpop.eup %4325  ;;  %4211 = vmatpush3.msra.mxu1 %v5028_v31  ;;  %4212 = vmatprep.mubr.msk.f32.mxu1 %vm4383_vm2, %v4382_v12 }
 0xd46   :  { %v4328_v22 = vpop.eup %4327  ;;  %v2713_v23 = vmul.f32 %v4326_v21, %v4318_v9  ;;  %v3789_v21 = vld [vmem:[%s5222_s20 + $0x68] sm:$0xff] }
 0xd47   :  { %v2710_v24 = vmul.f32 %v4328_v22, %v4320_v10  ;;  %v3774_v10 = vld [vmem:[%s5218_s16 + $0x1] ss:$0 sm:$0xff] }
 0xd48   :  { %4213 = vmatmul.mubr.msk.f32.vlgmr.msra.gmra.mxu1 %vm1081_vm4, %v2713_v23  ;;  %v3788_v22 = vld [vmem:[%s5222_s20 + $0x60] sm:$0xff]  ;;  %v3787_v23 = vld [vmem:[%s5222_s20 + $0x58] sm:$0xff] }
 0xd49   :  { %v4330_v25 = vpop.eup %4329  ;;  %4198 = vmatmul.mubr.msk.f32.vlgmr.msra.gmra.mxu0 %vm1081_vm4, %v2710_v24  ;;  %v3786_v24 = vld [vmem:[%s5222_s20 + $0x50] sm:$0xff] }
 0xd4a   :  { %4206 = vmatpush3.msra.mxu0 %v5010_v18  ;;  %4207 = vmatprep.mubr.msk.f32.mxu0 %vm4383_vm2, %v4382_v12  ;;  %v2712_v26 = vmul.f32 %v4330_v25, %v4322_v14  ;;  %v3765_v18 = vld [vmem:[%s5216_s14 + $0x28] sm:$0xff] }
 0xd4b   :  { %4215 = vmatprep.subr.mxu0 %v3767_v27  ;;  %v3785_v25 = vld [vmem:[%s5222_s20 + $0x48] sm:$0xff] }
 0xd4d   :  { %4208 = vmatmul.mubr.msk.f32.vlgmr.msra.gmra.mxu0 %vm1081_vm4, %v2712_v26  ;;  %v3784_v26 = vld [vmem:[%s5222_s20 + $0x40] sm:$0xff] }
 0xd4e   :  { %4216 = vmatpush3.msra.mxu0 %v3767_v27  ;;  %v3781_v27 = vld [vmem:[%s5221_s19 + $0x1] ss:$0 sm:$0xff]  ;;  %s4357_s19 = scalar_lea.vmem %s3604_s10, 32 }
 0xd4f   :  { %4217 = vmatprep.subr.mxu0 %v3766_v28  ;;  %p4358_p5 = scmp.ne.s32.totalorder %s3604_s10, %s4357_s19  ;;  %p4363_p7 = scmp.lt.s32.totalorder %s4357_s19, %s4357_s19 }
 0xd50   :  { %4218 = vmatpush3.msra.mxu0 %v3766_v28 }
 0xd51   :  { %4219 = vmatprep.subr.mxu0 %v3765_v18  ;;  %p4364_p8 = por %p4363_p7, %p4362_p6 }
 0xd52   :  { %4220 = vmatpush3.msra.mxu0 %v3765_v18 }
 0xd53   :  { %4221 = vmatprep.subr.mxu0 %v3764_v29  ;;  %p4365_p9 = pnand %p4364_p8, %p4358_p5 }
 0xd54   :  { %4222 = vmatpush3.msra.mxu0 %v3764_v29 }
 0xd55   :  { %4237 = vmatprep.subr.mxu0 %v3791_v19 }
 0xe04   :  { %v2857_v30 = vpop.f32.mrf.mxu1 }
 0xe05   :  { %2862 = vrot.lane.b32.xlu0 %v2857_v30, %s4384_s27 }
 0xe06   :  { %v4204_v31 = vpop.f32.mrf.mxu1 }
 0xe08   :  { %v3009_v32 = vpop.f32.mrf.mxu1 }
 0xe09   :  { %v2783_v33 = vpop.f32.mrf.mxu0  ;;  %3014 = vrot.lane.b32.xlu1 %v3009_v32, %s4384_s27  ;;  %s5267_s27 = sld [smem:[#allocation23_spill]] }
 0xe0a   :  { %2787 = vst.msk [vmem:[#allocation3] sm:$0xff] %vm760_vm3, %v2783_v33  ;;  %v4214_v34 = vpop.f32.mrf.mxu1 }
 0xe0b   :  { %v4199_v35 = vpop.f32.mrf.mxu0 }
 0xe0d   :  { %v2935_v36 = vpop.f32.mrf.mxu0 }
 0xe0e   :  { %2939 = vst.msk [vmem:[#allocation3 + $0x8] sm:$0xff] %vm760_vm3, %v2935_v36 }
 0xe0f   :  { %v4209_v39 = vpop.f32.mrf.mxu0 }
 0xe77   :  { %v2863_v40 = vpop.permute.xlu0 %2862 }
 0xe78   :  { %2865 = vst.msk [vmem:[#allocation3] sm:$0xff] %vm1277_vm5, %v2863_v40 }
 0xe7b   :  { %v3015_v41 = vpop.permute.xlu1 %3014 }
 0xe7c   :  { %3017 = vst.msk [vmem:[#allocation3 + $0x8] sm:$0xff] %vm1277_vm5, %v3015_v41 }
 0xe7f   :  { %v3018_v42 = vld [vmem:[#allocation3] sm:$0xff] }
 0xe80   :  { %4223 = vmatprep.mubr.msk.f32.mxu0 %vm185_vm1, %v3018_v42 }
 0xe83   :  { %v3019_v43 = vld [vmem:[#allocation3 + $0x8] sm:$0xff] }
 0xe84   :  { %4224 = vmatmul.mubr.msk.f32.vlgmr.msra.gmra.mxu0 %vm185_vm1, %v3019_v43 }
 0xe85   :  { %4238 = vmatpush3.msra.mxu0 %v3791_v19 }
 0xe86   :  { %4239 = vmatprep.subr.mxu0 %v3790_v20 }
 0xe87   :  { %4240 = vmatpush3.msra.mxu0 %v3790_v20  ;;  %v3799_v20 = vld [vmem:[%s5225_s23 + $0x1] ss:$0 sm:$0xff] }
 0xe88   :  { %4241 = vmatprep.subr.mxu0 %v3789_v21 }
 0xe89   :  { %4242 = vmatpush3.msra.mxu0 %v3789_v21 }
 0xe8a   :  { %4243 = vmatprep.subr.mxu0 %v3788_v22 }
 0xe8b   :  { %4244 = vmatpush3.msra.mxu0 %v3788_v22 }
 0xe8c   :  { %4245 = vmatprep.subr.mxu0 %v3787_v23 }
 0xe8d   :  { %4246 = vmatpush3.msra.mxu0 %v3787_v23 }
 0xe8e   :  { %4247 = vmatprep.subr.mxu0 %v3786_v24 }
 0xe8f   :  { %4248 = vmatpush3.msra.mxu0 %v3786_v24 }
 0xe90   :  { %4249 = vmatprep.subr.mxu0 %v3785_v25 }
 0xe91   :  { %4250 = vmatpush3.msra.mxu0 %v3785_v25 }
 0xe92   :  { %4251 = vmatprep.subr.mxu0 %v3784_v26 }
 0xe93   :  { %4252 = vmatpush3.msra.mxu0 %v3784_v26 }
 0xf44   :  { %v4225_v38 = vpop.f32.mrf.mxu0 }
 0xf45   :  { %v3111_v45 = vadd.f32 %v4225_v38, %v3769_v44 }
 0xf46   :  { %v3105_v37 = vpop.f32.mrf.mxu0 }
 0xf47   :  { %v3106_v46 = vadd.f32 %v3769_v44, %v3105_v37  ;;  %v3115_v47 = vadd.f32 %v3111_v45, %v4920_v52 }
 0xf49   :  { %v3123_v48 = vsel %vm185_vm1, %v3115_v47, 0.0  ;;  %v3114_v50 = vadd.f32 %v3106_v46, %v4918_v51  ;;  %v3779_v51 = vld [vmem:[%s5220_s18 + $0x38] sm:$0xff] }
 0xf4a   :  { %3124 = vadd.xlane.f32.xlu0 %v3123_v48  ;;  %4226 = vmatprep.subr.mxu1 %v3779_v51 }
 0xf4b   :  { %v3120_v53 = vsel %vm185_vm1, %v3114_v50, 0.0  ;;  %4227 = vmatpush3.msra.mxu1 %v3779_v51 }
 0xf4c   :  { %3121 = vadd.xlane.f32.xlu1 %v3120_v53  ;;  %4228 = vmatprep.subr.mxu1 %v3778_v1 }
 0xf4d   :  { %4229 = vmatpush3.msra.mxu1 %v3778_v1 }
 0xf4e   :  { %4230 = vmatprep.subr.mxu1 %v3777_v2 }
 0xf4f   :  { %4231 = vmatpush3.msra.mxu1 %v3777_v2 }
 0xf50   :  { %4232 = vmatprep.subr.mxu1 %v3776_v3 }
 0xf51   :  { %4233 = vmatpush3.msra.mxu1 %v3776_v3 }
 0xf52   :  { %4256 = vmatprep.subr.mxu1 %v4382_v12 }
 0xfd3   :  { %v3125_v54 = vpop.xlane.xlu0 %3124 }
 0xfd4   :  { %v3127_v55 = vmul.f32 0.03125, %v3125_v54 }
 0xfd5   :  { %v3122_v56 = vpop.xlane.xlu1 %3121 }
 0xfd6   :  { %v3129_v58 = vsub.f32 %v3115_v47, %v3127_v55  ;;  %v3126_v60 = vmul.f32 0.03125, %v3122_v56 }
 0xfd8   :  { %v3128_v62 = vsub.f32 %v3114_v50, %v3126_v60  ;;  %v3131_v63 = vmul.f32 %v3129_v58, %v3129_v58  ;;  %v3793_v50 = vld [vmem:[%s5223_s21 + $0x1] ss:$0 sm:$0xff] }
 0xfda   :  { %v3135_v0 = vsel %vm185_vm1, %v3131_v63, 0.0  ;;  %v3130_v49 = vmul.f32 %v3128_v62, %v3128_v62 }
 0xfdb   :  { %3136 = vadd.xlane.f32.xlu1 %v3135_v0 }
 0xfdc   :  { %v3132_v52 = vsel %vm185_vm1, %v3130_v49, 0.0 }
 0xfdd   :  { %3133 = vadd.xlane.f32.xlu0 %v3132_v52 }
0x1064   :  { %v3137_v4 = vpop.xlane.xlu1 %3136 }
0x1065   :  { %v3139_v5 = vmul.f32 0.03125, %v3137_v4 }
0x1066   :  { %v3134_v6 = vpop.xlane.xlu0 %3133 }
0x1067   :  { %v3141_v59 = vadd.f32 1e-12, %v3139_v5  ;;  %v3138_v7 = vmul.f32 0.03125, %v3134_v6 }
0x1069   :  { %4331 = vrsqrt.f32 %v3141_v59  ;;  %v3140_v8 = vadd.f32 1e-12, %v3138_v7  ;;  %v3428_v59 = vld [vmem:[%s5226_s24 + $0x18] sm:$0xff]  ;;  %v3427_v7 = vld [vmem:[%s5226_s24 + $0x10] sm:$0xff] }
0x106b   :  { %4333 = vrsqrt.f32 %v3140_v8  ;;  %v3426_v8 = vld [vmem:[%s5226_s24 + $0x8] sm:$0xff] }
0x1076   :  { %v4332_v9 = vpop.eup %4331 }
0x1077   :  { %v3145_v11 = vmul.f32 %v4332_v9, %v3129_v58  ;;  %v3425_v9 = vld [vmem:[%s5226_s24] sm:$0xff] }
0x1078   :  { %v4334_v13 = vpop.eup %4333 }
0x1079   :  { %v3144_v14 = vmul.f32 %v4334_v13, %v3128_v62  ;;  %v3153_v15 = vmul.f32 %v3774_v10, %v3145_v11 }
0x107b   :  { %v3152_v17 = vmul.f32 %v3774_v10, %v3144_v14  ;;  %v3161_v57 = vadd.f32 %v3775_v16, %v3153_v15 }
0x107d   :  { %v5108_v61 = vadd.f32 %v3775_v16, %v3152_v17 }
0x107f   :  { %4234 = vmatprep.mubr.msk.f32.mxu1 %vm185_vm1, %v5108_v61 }
0x1080   :  { %4235 = vmatmul.mubr.msk.f32.vlgmr.msra.gmra.mxu1 %vm185_vm1, %v3161_v57 }
0x1081   :  { %4264 = vmatprep.mubr.msk.f32.mxu1 %vm4383_vm2, %v4382_v12  ;;  %4257 = vmatpush3.msra.mxu1 %v3428_v59 }
0x1082   :  { %4258 = vmatprep.subr.mxu1 %v4382_v12 }
0x1083   :  { %4259 = vmatpush3.msra.mxu1 %v3427_v7 }
0x1084   :  { %4260 = vmatprep.subr.mxu1 %v4382_v12 }
0x1085   :  { %4261 = vmatpush3.msra.mxu1 %v3426_v8 }
0x1086   :  { %4262 = vmatprep.subr.mxu1 %v4382_v12 }
0x1087   :  { %4263 = vmatpush3.msra.mxu1 %v3425_v9 }
0x1088   :  { %4267 = vmatprep.subr.mxu1 %v4382_v12 }
0x1140   :  { %v4236_v28 = vpop.f32.mrf.mxu1 }
0x1141   :  { %v3253_v18 = vadd.f32 %v4236_v28, %v3781_v27  ;;  %v3513_v28 = vld [vmem:[%s5266_s17 + $0x18] sm:$0xff] }
0x1142   :  { %v3247_v29 = vpop.f32.mrf.mxu1 }
0x1143   :  { %v3259_v30 = vmul.f32 0.044715, %v3253_v18  ;;  %v3248_v31 = vadd.f32 %v3781_v27, %v3247_v29  ;;  %v3257_v46 = vmul.f32 0.5, %v3253_v18  ;;  %v3511_v29 = vld [vmem:[%s5266_s17 + $0x8] sm:$0xff] }
0x1145   :  { %v3261_v32 = vmul.f32 %v3259_v30, %v3253_v18  ;;  %v3258_v33 = vmul.f32 0.044715, %v3248_v31  ;;  %v3256_v45 = vmul.f32 0.5, %v3248_v31  ;;  %v3510_v30 = vld [vmem:[%s5266_s17] sm:$0xff] }
0x1147   :  { %v3263_v34 = vmul.f32 %v3261_v32, %v3253_v18  ;;  %v3260_v35 = vmul.f32 %v3258_v33, %v3248_v31 }
0x1149   :  { %v3265_v36 = vadd.f32 %v3263_v34, %v3253_v18  ;;  %v3262_v39 = vmul.f32 %v3260_v35, %v3248_v31  ;;  %v3512_v18 = vld [vmem:[%s5266_s17 + $0x10] sm:$0xff] }
0x114b   :  { %v3267_v40 = vmul.f32 0.7978846, %v3265_v36  ;;  %v3264_v41 = vadd.f32 %v3262_v39, %v3248_v31  ;;  %v3800_v31 = vld [vmem:[%s5267_s27] ss:$0 sm:$0xff] }
0x114c   :  { %v3802_v36 = vld [vmem:[%s5268_s12] ss:$0 sm:$0xff] }
0x114d   :  { %4335 = vtanh.f32 %v3267_v40  ;;  %v3266_v42 = vmul.f32 0.7978846, %v3264_v41 }
0x114f   :  { %4337 = vtanh.f32 %v3266_v42 }
0x115a   :  { %v4336_v43 = vpop.eup %4335 }
0x115b   :  { %v3271_v38 = vadd.f32 1.0, %v4336_v43 }
0x115c   :  { %v4338_v44 = vpop.eup %4337 }
0x115d   :  { %v3270_v37 = vadd.f32 1.0, %v4338_v44  ;;  %v3273_v48 = vmul.f32 %v3271_v38, %v3257_v46 }
0x115f   :  { %v3272_v47 = vmul.f32 %v3270_v37, %v3256_v45 }
0x1161   :  { %4253 = vmatprep.mubr.msk.f32.mxu0 %vm1696_vm6, %v3272_v47 }
0x1162   :  { %4254 = vmatmul.mubr.msk.f32.vlgmr.msra.gmra.mxu0 %vm1696_vm6, %v3273_v48 }
0x1222   :  { %v4255_v53 = vpop.f32.mrf.mxu0 }
0x1223   :  { %v3369_v54 = vadd.f32 %v4255_v53, %v3793_v50 }
0x1224   :  { %v3363_v55 = vpop.f32.mrf.mxu0 }
0x1225   :  { %v3364_v56 = vadd.f32 %v3793_v50, %v3363_v55  ;;  %v3373_v58 = vadd.f32 %v3369_v54, %v3161_v57 }
0x1227   :  { %v3381_v60 = vsel %vm185_vm1, %v3373_v58, 0.0  ;;  %v3372_v62 = vadd.f32 %v3364_v56, %v5108_v61  ;;  %v3798_v61 = vld [vmem:[%s5224_s22 + $0x1] ss:$0 sm:$0xff] }
0x1228   :  { %3382 = vadd.xlane.f32.xlu0 %v3381_v60 }
0x1229   :  { %v3378_v63 = vsel %vm185_vm1, %v3372_v62, 0.0 }
0x122a   :  { %3379 = vadd.xlane.f32.xlu1 %v3378_v63 }
0x12b1   :  { %v3383_v0 = vpop.xlane.xlu0 %3382 }
0x12b2   :  { %v3385_v49 = vmul.f32 0.03125, %v3383_v0 }
0x12b3   :  { %v3380_v52 = vpop.xlane.xlu1 %3379 }
0x12b4   :  { %v3387_v51 = vsub.f32 %v3373_v58, %v3385_v49  ;;  %v3384_v1 = vmul.f32 0.03125, %v3380_v52 }
0x12b6   :  { %v3386_v2 = vsub.f32 %v3372_v62, %v3384_v1  ;;  %v3389_v3 = vmul.f32 %v3387_v51, %v3387_v51 }
0x12b8   :  { %v3393_v4 = vsel %vm185_vm1, %v3389_v3, 0.0  ;;  %v3388_v5 = vmul.f32 %v3386_v2, %v3386_v2 }
0x12b9   :  { %3394 = vadd.xlane.f32.xlu0 %v3393_v4 }
0x12ba   :  { %v3390_v6 = vsel %vm185_vm1, %v3388_v5, 0.0 }
0x12bb   :  { %3391 = vadd.xlane.f32.xlu1 %v3390_v6 }
0x1342   :  { %v3395_v10 = vpop.xlane.xlu0 %3394 }
0x1343   :  { %v3397_v11 = vmul.f32 0.03125, %v3395_v10 }
0x1344   :  { %v3392_v13 = vpop.xlane.xlu1 %3391 }
0x1345   :  { %v3399_v14 = vadd.f32 1e-12, %v3397_v11  ;;  %v3396_v15 = vmul.f32 0.03125, %v3392_v13 }
0x1347   :  { %4339 = vrsqrt.f32 %v3399_v14  ;;  %v3398_v16 = vadd.f32 1e-12, %v3396_v15 }
0x1349   :  { %4341 = vrsqrt.f32 %v3398_v16 }
0x1354   :  { %v4340_v17 = vpop.eup %4339 }
0x1355   :  { %v3403_v57 = vmul.f32 %v4340_v17, %v3387_v51 }
0x1356   :  { %v4342_v19 = vpop.eup %4341 }
0x1357   :  { %v3402_v21 = vmul.f32 %v4342_v19, %v3386_v2  ;;  %v3411_v22 = vmul.f32 %v3798_v61, %v3403_v57 }
0x1359   :  { %v3410_v23 = vmul.f32 %v3798_v61, %v3402_v21  ;;  %v3419_v24 = vadd.f32 %v3799_v20, %v3411_v22 }
0x135b   :  { %v3418_v25 = vadd.f32 %v3799_v20, %v3410_v23  ;;  %v3421_v26 = vrot.slane %v3419_v24, 7 }
0x135d   :  { %v3424_v27 = vsel %vm3423_vm7, %v3418_v25, %v3421_v26 }
0x135e   :  { %4265 = vmatmul.mubr.msk.f32.vlgmr.msra.gmra.mxu1 %vm185_vm1, %v3424_v27 }
0x135f   :  { %4275 = vmatprep.mubr.msk.f32.mxu1 %vm4383_vm2, %v4382_v12  ;;  %4268 = vmatpush3.msra.mxu1 %v3513_v28 }
0x1360   :  { %4269 = vmatprep.subr.mxu1 %v4382_v12 }
0x1361   :  { %4270 = vmatpush3.msra.mxu1 %v3512_v18 }
0x1362   :  { %4271 = vmatprep.subr.mxu1 %v4382_v12 }
0x1363   :  { %4272 = vmatpush3.msra.mxu1 %v3511_v29 }
0x1364   :  { %4273 = vmatprep.subr.mxu1 %v4382_v12 }
0x1365   :  { %4274 = vmatpush3.msra.mxu1 %v3510_v30 }
0x141e   :  { %v3505_v32 = vpop.f32.mrf.mxu1 }
0x141f   :  { %v3506_v33 = vadd.f32 %v3800_v31, %v3505_v32 }
0x1420   :  { %v4266_v34 = vpop.f32.mrf.mxu1 }
0x1421   :  { %4343 = vtanh.f32 %v3506_v33 }
0x142e   :  { %v4344_v35 = vpop.eup %4343 }
0x142f   :  { %4276 = vmatmul.mubr.msk.f32.vlgmr.msra.gmra.mxu1 %vm185_vm1, %v4344_v35 }
0x14ef   :  { %v3590_v39 = vpop.f32.mrf.mxu1 }
0x14f0   :  { %v3591_v12 = vadd.f32 %v3802_v36, %v3590_v39 }
0x14f1   :  { %v4277_v40 = vpop.f32.mrf.mxu1 }
0x14f2   :  { %v3594_v41 = vmax.f32 %v3591_v12, 0.0 }
0x14f4   :  { %3596 = vst.msk [vmem:[#allocation8] sm:$0x3] %vm3595_vm8, %v3594_v41 }
0x14f5   :  { %4368 = shalt.err (!%p4365_p9)
}
0x14f6   :  { %s5269_s26 = sld [smem:[#allocation26_spill]] }
0x14fc   :  { %3606 = dma.vmem_to_hbm [thread:$0]  %s3604_s10, 32, %s5269_s26, [#allocation6]  }
0x14fd   :  { %4379 = dma.done.wait [#allocation6], 32  }
0x14fe   :  { %4380 = vsyncadd [#allocation6], 4294967264 }
0x14ff   :  { %3610 = vsyncpa [#allocation6], 1 }
0x1500   :  { %3611 = vsyncpa [#allocation7], 1 }

</bundles_post_ra>
